<compile_context>
chip_gen: v7x
topology: tpu7x:2x2x1
jax: 0.10.0
libtpu: 0.0.40
codegen_flags: <defaults>
</compile_context>

<pallas_src>
import functools

import jax
import jax.numpy as jnp
import numpy as np
from jax.experimental import pallas as pl
from jax.experimental.pallas import tpu as pltpu

EMBED_DIM = 32
DENSE_DIM = 32
NUM_HEADS = 4
LN_EPS = 1e-5
NEG_INF = -1e30


# ----------------------------- kernel helpers ------------------------------ #

def _layer_norm(x, gamma, beta):
    """LayerNorm over the last dim. x: (N, E); gamma/beta: (1, E)."""
    mu = jnp.mean(x, axis=-1, keepdims=True)
    xc = x - mu
    var = jnp.mean(xc * xc, axis=-1, keepdims=True)
    return xc * jax.lax.rsqrt(var + LN_EPS) * gamma + beta


def _recip(x):
    """Approx reciprocal (EUP) + one Newton step -> ~full f32 accuracy."""
    r = pl.reciprocal(x, approx=True)
    return r * (2.0 - x * r)


# --------------------------------- kernel ---------------------------------- #

def decoder_kernel(x_ref, enc_ref, wqkv_ref, wsmall_ref, bias_ref, ln_ref,
                   mask_s_ref, mask_c_ref, out_ref,
                   qs1, ks1, vs1, qs2, ks2, vs2, *, num_heads):
    T, B, E = x_ref.shape
    Sp = enc_ref.shape[0]
    N = T * B                 # query rows (seq-first flatten)
    M = Sp * B                # padded encoder key rows
    H = num_heads
    hd = E // H
    scale = 1.0 / float(np.sqrt(hd))

    # -------- unpack parameter slabs (static value slices) --------
    wq = wqkv_ref[...]                     # (2E, 3E)
    w_qkv1 = wq[0:E, :]
    w_qkv2 = wq[E:2 * E, :]
    wsm = wsmall_ref[...]                  # (E, 3E)
    w_o1 = wsm[:, 0:E]
    w_o2 = wsm[:, E:2 * E]
    w_ff = wsm[:, 2 * E:3 * E]             # folded dense1 @ dense2
    bias = bias_ref[...]                   # (3, 3E)
    b_qkv1 = bias[0:1, :]
    b_qkv2 = bias[1:2, :]
    b_o1 = bias[2:3, 0:E]
    b_o2 = bias[2:3, E:2 * E]
    b_ff = bias[2:3, 2 * E:3 * E]
    ln = ln_ref[...]                       # (8, E): rows 0-3 gamma, 4-7 beta

    def stack_heads(val, col_off, rows, dst):
        # Scatter per-head lane slices into a row-stacked (H*rows, hd) scratch.
        for h in range(H):
            dst[h * rows:(h + 1) * rows, :] = (
                val[:, col_off + h * hd: col_off + (h + 1) * hd])

    def attention(qs_r, ks_r, vs_r, mask_add, w_o, b_o, n_q):
        # One batched score matmul / softmax / ctx matmul over all (head,batch);
        # cross-head, cross-batch and padded-key entries are masked to -1e30.
        s = jnp.einsum('nd,md->nm', qs_r[...], ks_r[...],
                       preferred_element_type=jnp.float32) * scale + mask_add
        m = jnp.max(s, axis=-1, keepdims=True)
        e = jnp.exp(s - m)
        p = e * _recip(jnp.sum(e, axis=-1, keepdims=True))
        ctx = jnp.dot(p, vs_r[...], preferred_element_type=jnp.float32)  # (H*n_q, hd)
        out = b_o
        for h in range(H):    # independent partial out-projections (ILP)
            out = out + jnp.dot(ctx[h * n_q:(h + 1) * n_q, :],
                                w_o[h * hd:(h + 1) * hd, :],
                                preferred_element_type=jnp.float32)
        return out                                               # (n_q, E)

    # ---- hoisted: encoder K/V projection + stacking (depends only on enc) ----
    enc2 = enc_ref[...].reshape(M, E)
    kv_e = jnp.dot(enc2, w_qkv2[:, E:],
                   preferred_element_type=jnp.float32) + b_qkv2[:, E:]
    stack_heads(kv_e, 0, M, ks2)
    stack_heads(kv_e, E, M, vs2)

    # ---- block 1: self-attention + add & norm (dropout1 = identity) ----
    x2 = x_ref[...].reshape(N, E)
    qkv = jnp.dot(x2, w_qkv1, preferred_element_type=jnp.float32) + b_qkv1
    stack_heads(qkv, 0, N, qs1)
    stack_heads(qkv, E, N, ks1)
    stack_heads(qkv, 2 * E, N, vs1)
    attn1 = attention(qs1, ks1, vs1, mask_s_ref[...], w_o1, b_o1, N)
    out1 = _layer_norm(x2 + attn1, ln[0:1, :], ln[4:5, :])

    # ---- block 2: cross-attention + add & norm (dropout2 = identity) ----
    q_c = jnp.dot(out1, w_qkv2[:, :E],
                  preferred_element_type=jnp.float32) + b_qkv2[:, :E]
    stack_heads(q_c, 0, N, qs2)
    attn2 = attention(qs2, ks2, vs2, mask_c_ref[...], w_o2, b_o2, N)
    out2 = _layer_norm(out1 + attn2, ln[1:2, :], ln[5:6, :])

    # ---- blocks 3/4: folded FFN (same dense1/dense2 weights, applied twice) ----
    ff1 = jnp.dot(out2, w_ff, preferred_element_type=jnp.float32) + b_ff
    out3 = _layer_norm(out2 + ff1, ln[2:3, :], ln[6:7, :])
    ff2 = jnp.dot(out3, w_ff, preferred_element_type=jnp.float32) + b_ff
    out4 = _layer_norm(out3 + ff2, ln[3:4, :], ln[7:8, :])

    out_ref[...] = out4.reshape(T, B, E)


# -------------------------------- wrapper ----------------------------------- #

def _round_up(x, m):
    return ((x + m - 1) // m) * m


def _build_attn_mask(n_q, n_k, n_k_valid, batch, num_heads):
    """Additive mask (H*n_q, H*n_k): 0 where (same head, same batch, valid key)."""
    i = np.arange(num_heads * n_q)[:, None]
    j = np.arange(num_heads * n_k)[None, :]
    same_head = (i // n_q) == (j // n_k)
    same_batch = ((i % n_q) % batch) == ((j % n_k) % batch)
    key_valid = (j % n_k) < n_k_valid
    valid = same_head & same_batch & key_valid
    return np.where(valid, 0.0, NEG_INF).astype(np.float32)


def transformer_decoder(inputs, encoder_outputs, params):
    """inputs: (T, B, E); encoder_outputs: (S, B, E) — torch seq-first layout."""
    T, B, E = inputs.shape
    S = encoder_outputs.shape[0]
    H = NUM_HEADS
    hd = E // H
    N = T * B
    M_valid = S * B
    Sp = _round_up(M_valid, 8) // B        # padded encoder sequence length
    M = Sp * B
    assert N % 8 == 0 and M % 8 == 0, "per-head blocks must be sublane aligned"

    # Pad encoder memory so each per-head KV block is 8-row aligned; padded
    # key columns are disabled through the mask.
    if Sp > S:
        enc_p = jnp.concatenate(
            [encoder_outputs,
             jnp.zeros((Sp - S, B, E), encoder_outputs.dtype)], axis=0)
    else:
        enc_p = encoder_outputs

    # ---- host-side parameter packing / FFN folding ----
    w12 = jnp.dot(params['w_d1'], params['w_d2'])                       # (E, E)
    b12 = jnp.dot(params['b_d1'], params['w_d2']) + params['b_d2']      # (1, E)
    wqkv_all = jnp.concatenate([params['w_qkv1'], params['w_qkv2']], axis=0)  # (2E,3E)
    w_small = jnp.concatenate([params['w_o1'], params['w_o2'], w12], axis=1)  # (E,3E)
    bias3 = jnp.concatenate(
        [params['b_qkv1'], params['b_qkv2'],
         jnp.concatenate([params['b_o1'], params['b_o2'], b12], axis=1)],
        axis=0)                                                          # (3,3E)
    ln_slab = jnp.concatenate([params['ln_g'], params['ln_b']], axis=0)  # (8,E)

    mask_s = jnp.asarray(_build_attn_mask(N, N, N, B, H))        # (H*N, H*N)
    mask_c = jnp.asarray(_build_attn_mask(N, M, M_valid, B, H))  # (H*N, H*M)

    vmem = pl.BlockSpec(memory_space=pltpu.MemorySpace.VMEM)
    args = (inputs, enc_p, wqkv_all, w_small, bias3, ln_slab, mask_s, mask_c)

    return pl.pallas_call(
        functools.partial(decoder_kernel, num_heads=H),
        out_shape=jax.ShapeDtypeStruct((T, B, E), jnp.float32),
        in_specs=[vmem] * len(args),
        out_specs=vmem,
        scratch_shapes=[
            pltpu.VMEM((H * N, hd), jnp.float32),   # qs1 (self-attn queries)
            pltpu.VMEM((H * N, hd), jnp.float32),   # ks1
            pltpu.VMEM((H * N, hd), jnp.float32),   # vs1
            pltpu.VMEM((H * N, hd), jnp.float32),   # qs2 (cross-attn queries)
            pltpu.VMEM((H * M, hd), jnp.float32),   # ks2 (encoder keys)
            pltpu.VMEM((H * M, hd), jnp.float32),   # vs2 (encoder values)
        ],
    )(*args)


# ------------------------- pure-JAX reference ------------------------------- #

def transformer_decoder_reference(inputs, encoder_outputs, params):
    E = inputs.shape[-1]
    H = NUM_HEADS
    hd = E // H

    def mha(q_in, kv_in, w_qkv, b_qkv, w_o, b_o):
        T, B, _ = q_in.shape
        S = kv_in.shape[0]
        q = q_in @ w_qkv[:, :E] + b_qkv[0, :E]
        k = kv_in @ w_qkv[:, E:2 * E] + b_qkv[0, E:2 * E]
        v = kv_in @ w_qkv[:, 2 * E:] + b_qkv[0, 2 * E:]
        q = q.reshape(T, B, H, hd).transpose(1, 2, 0, 3)   # (B, H, T, hd)
        k = k.reshape(S, B, H, hd).transpose(1, 2, 0, 3)
        v = v.reshape(S, B, H, hd).transpose(1, 2, 0, 3)
        s = jnp.einsum('bhtd,bhsd->bhts', q, k) / jnp.sqrt(jnp.float32(hd))
        p = jax.nn.softmax(s, axis=-1)
        ctx = jnp.einsum('bhts,bhsd->bhtd', p, v)
        ctx = ctx.transpose(2, 0, 1, 3).reshape(T, B, E)
        return ctx @ w_o + b_o[0]

    def ln(x, g, b):
        mu = jnp.mean(x, axis=-1, keepdims=True)
        var = jnp.mean((x - mu) ** 2, axis=-1, keepdims=True)
        return (x - mu) / jnp.sqrt(var + LN_EPS) * g + b

    def ffn(x):
        h = x @ params['w_d1'] + params['b_d1'][0]
        return h @ params['w_d2'] + params['b_d2'][0]

    lng, lnb = params['ln_g'], params['ln_b']
    attn1 = mha(inputs, inputs, params['w_qkv1'], params['b_qkv1'],
                params['w_o1'], params['b_o1'])
    out1 = ln(inputs + attn1, lng[0], lnb[0])
    attn2 = mha(out1, encoder_outputs, params['w_qkv2'], params['b_qkv2'],
                params['w_o2'], params['b_o2'])
    out2 = ln(out1 + attn2, lng[1], lnb[1])
    out3 = ln(out2 + ffn(out2), lng[2], lnb[2])
    out4 = ln(out3 + ffn(out3), lng[3], lnb[3])
    return out4


# ---------------------------------- main ------------------------------------ #

if __name__ == "__main__":
    T, S, B = 8, 10, 2
    E, D = EMBED_DIM, DENSE_DIM

    key = jax.random.PRNGKey(0)
    ks = jax.random.split(key, 16)

    def xavier(k, shape):
        fan_in, fan_out = shape[0], shape[-1]
        bound = float(np.sqrt(6.0 / (fan_in + fan_out)))
        return jax.random.uniform(k, shape, jnp.float32, minval=-bound, maxval=bound)

    params = {
        'w_qkv1': xavier(ks[0], (E, 3 * E)),
        'b_qkv1': 0.05 * jax.random.normal(ks[1], (1, 3 * E), jnp.float32),
        'w_o1':   xavier(ks[2], (E, E)),
        'b_o1':   0.05 * jax.random.normal(ks[3], (1, E), jnp.float32),
        'w_qkv2': xavier(ks[4], (E, 3 * E)),
        'b_qkv2': 0.05 * jax.random.normal(ks[5], (1, 3 * E), jnp.float32),
        'w_o2':   xavier(ks[6], (E, E)),
        'b_o2':   0.05 * jax.random.normal(ks[7], (1, E), jnp.float32),
        'w_d1':   xavier(ks[8], (E, D)),
        'b_d1':   0.05 * jax.random.normal(ks[9], (1, D), jnp.float32),
        'w_d2':   xavier(ks[10], (D, E)),
        'b_d2':   0.05 * jax.random.normal(ks[11], (1, E), jnp.float32),
        'ln_g':   1.0 + 0.05 * jax.random.normal(ks[12], (4, E), jnp.float32),
        'ln_b':   0.05 * jax.random.normal(ks[13], (4, E), jnp.float32),
    }

    inputs = jax.random.normal(ks[14], (T, B, E), jnp.float32)           # decoder input
    encoder_outputs = jax.random.normal(ks[15], (S, B, E), jnp.float32)  # encoder memory

    out = jax.block_until_ready(transformer_decoder(inputs, encoder_outputs, params))

    ref = transformer_decoder_reference(inputs, encoder_outputs, params)
    np.testing.assert_allclose(np.asarray(out), np.asarray(ref), rtol=1e-4, atol=1e-4)

    print("KERNEL_OK")
</pallas_src>

<mosaic_0001>
module attributes {stable_mosaic.version = 11 : i64} {
  func.func @decoder_kernel(%arg0: memref<8x2x32xf32, #tpu.memory_space<vmem>>, %arg1: memref<12x2x32xf32, #tpu.memory_space<vmem>>, %arg2: memref<64x96xf32, #tpu.memory_space<vmem>>, %arg3: memref<32x96xf32, #tpu.memory_space<vmem>>, %arg4: memref<3x96xf32, #tpu.memory_space<vmem>>, %arg5: memref<8x32xf32, #tpu.memory_space<vmem>>, %arg6: memref<64x64xf32, #tpu.memory_space<vmem>>, %arg7: memref<64x96xf32, #tpu.memory_space<vmem>>, %arg8: memref<8x2x32xf32, #tpu.memory_space<vmem>>, %arg9: memref<64x8xf32, #tpu.memory_space<vmem>>, %arg10: memref<64x8xf32, #tpu.memory_space<vmem>>, %arg11: memref<64x8xf32, #tpu.memory_space<vmem>>, %arg12: memref<64x8xf32, #tpu.memory_space<vmem>>, %arg13: memref<96x8xf32, #tpu.memory_space<vmem>>, %arg14: memref<96x8xf32, #tpu.memory_space<vmem>>) attributes {dimension_semantics = [], scalar_prefetch = 0 : i64, scratch_operands = 6 : i64, tpu.core_type = #tpu.core_type<tc>} {
    %c0 = arith.constant 0 : index
    %c0_0 = arith.constant 0 : index
    %0 = vector.load %arg2[%c0, %c0_0] : memref<64x96xf32, #tpu.memory_space<vmem>>, vector<64x96xf32>
    %1 = vector.extract_strided_slice %0 {offsets = [0, 0], sizes = [32, 96], strides = [1, 1]} : vector<64x96xf32> to vector<32x96xf32>
    %2 = vector.extract_strided_slice %0 {offsets = [32, 0], sizes = [32, 96], strides = [1, 1]} : vector<64x96xf32> to vector<32x96xf32>
    %c0_1 = arith.constant 0 : index
    %c0_2 = arith.constant 0 : index
    %3 = vector.load %arg3[%c0_1, %c0_2] : memref<32x96xf32, #tpu.memory_space<vmem>>, vector<32x96xf32>
    %4 = vector.extract_strided_slice %3 {offsets = [0, 0], sizes = [32, 32], strides = [1, 1]} : vector<32x96xf32> to vector<32x32xf32>
    %5 = vector.extract_strided_slice %3 {offsets = [0, 32], sizes = [32, 32], strides = [1, 1]} : vector<32x96xf32> to vector<32x32xf32>
    %6 = vector.extract_strided_slice %3 {offsets = [0, 64], sizes = [32, 32], strides = [1, 1]} : vector<32x96xf32> to vector<32x32xf32>
    %c0_3 = arith.constant 0 : index
    %c0_4 = arith.constant 0 : index
    %7 = vector.load %arg4[%c0_3, %c0_4] : memref<3x96xf32, #tpu.memory_space<vmem>>, vector<3x96xf32>
    %8 = vector.extract_strided_slice %7 {offsets = [0, 0], sizes = [1, 96], strides = [1, 1]} : vector<3x96xf32> to vector<1x96xf32>
    %9 = vector.extract_strided_slice %7 {offsets = [1, 0], sizes = [1, 96], strides = [1, 1]} : vector<3x96xf32> to vector<1x96xf32>
    %10 = vector.extract_strided_slice %7 {offsets = [2, 0], sizes = [1, 32], strides = [1, 1]} : vector<3x96xf32> to vector<1x32xf32>
    %11 = vector.extract_strided_slice %7 {offsets = [2, 32], sizes = [1, 32], strides = [1, 1]} : vector<3x96xf32> to vector<1x32xf32>
    %12 = vector.extract_strided_slice %7 {offsets = [2, 64], sizes = [1, 32], strides = [1, 1]} : vector<3x96xf32> to vector<1x32xf32>
    %c0_5 = arith.constant 0 : index
    %c0_6 = arith.constant 0 : index
    %13 = vector.load %arg5[%c0_5, %c0_6] : memref<8x32xf32, #tpu.memory_space<vmem>>, vector<8x32xf32>
    %c0_7 = arith.constant 0 : index
    %c0_8 = arith.constant 0 : index
    %c0_9 = arith.constant 0 : index
    %14 = vector.load %arg1[%c0_7, %c0_8, %c0_9] : memref<12x2x32xf32, #tpu.memory_space<vmem>>, vector<12x2x32xf32>
    %15 = vector.shape_cast %14 : vector<12x2x32xf32> to vector<24x32xf32>
    %16 = vector.extract_strided_slice %2 {offsets = [0, 32], sizes = [32, 64], strides = [1, 1]} : vector<32x96xf32> to vector<32x64xf32>
    %cst = arith.constant dense<0.000000e+00> : vector<24x64xf32>
    %17 = tpu.matmul %15, %16, %cst {dimension_numbers = #tpu.dot_dimension_numbers<[1], [0], [0], [1], [0, 0, 1, 1], [], []>} : vector<24x32xf32>, vector<32x64xf32>, vector<24x64xf32> -> vector<24x64xf32>
    %18 = vector.extract_strided_slice %9 {offsets = [0, 32], sizes = [1, 64], strides = [1, 1]} : vector<1x96xf32> to vector<1x64xf32>
    %19 = vector.broadcast %18 : vector<1x64xf32> to vector<24x64xf32>
    %20 = arith.addf %17, %19 : vector<24x64xf32>
    %21 = vector.extract_strided_slice %20 {offsets = [0, 0], sizes = [24, 8], strides = [1, 1]} : vector<24x64xf32> to vector<24x8xf32>
    %c0_10 = arith.constant 0 : index
    %c0_11 = arith.constant 0 : index
    %22 = vector.load %arg13[%c0_10, %c0_11] : memref<96x8xf32, #tpu.memory_space<vmem>>, vector<24x8xf32>
    tpu.vector_store %arg13[%c0_10, %c0_11], %21 {strides = array<i32>} : memref<96x8xf32, #tpu.memory_space<vmem>>, vector<24x8xf32>,
    %23 = vector.extract_strided_slice %20 {offsets = [0, 8], sizes = [24, 8], strides = [1, 1]} : vector<24x64xf32> to vector<24x8xf32>
    %c24 = arith.constant 24 : index
    %c0_12 = arith.constant 0 : index
    %24 = vector.load %arg13[%c24, %c0_12] : memref<96x8xf32, #tpu.memory_space<vmem>>, vector<24x8xf32>
    tpu.vector_store %arg13[%c24, %c0_12], %23 {strides = array<i32>} : memref<96x8xf32, #tpu.memory_space<vmem>>, vector<24x8xf32>,
    %25 = vector.extract_strided_slice %20 {offsets = [0, 16], sizes = [24, 8], strides = [1, 1]} : vector<24x64xf32> to vector<24x8xf32>
    %c48 = arith.constant 48 : index
    %c0_13 = arith.constant 0 : index
    %26 = vector.load %arg13[%c48, %c0_13] : memref<96x8xf32, #tpu.memory_space<vmem>>, vector<24x8xf32>
    tpu.vector_store %arg13[%c48, %c0_13], %25 {strides = array<i32>} : memref<96x8xf32, #tpu.memory_space<vmem>>, vector<24x8xf32>,
    %27 = vector.extract_strided_slice %20 {offsets = [0, 24], sizes = [24, 8], strides = [1, 1]} : vector<24x64xf32> to vector<24x8xf32>
    %c72 = arith.constant 72 : index
    %c0_14 = arith.constant 0 : index
    %28 = vector.load %arg13[%c72, %c0_14] : memref<96x8xf32, #tpu.memory_space<vmem>>, vector<24x8xf32>
    tpu.vector_store %arg13[%c72, %c0_14], %27 {strides = array<i32>} : memref<96x8xf32, #tpu.memory_space<vmem>>, vector<24x8xf32>,
    %29 = vector.extract_strided_slice %20 {offsets = [0, 32], sizes = [24, 8], strides = [1, 1]} : vector<24x64xf32> to vector<24x8xf32>
    %c0_15 = arith.constant 0 : index
    %c0_16 = arith.constant 0 : index
    %30 = vector.load %arg14[%c0_15, %c0_16] : memref<96x8xf32, #tpu.memory_space<vmem>>, vector<24x8xf32>
    tpu.vector_store %arg14[%c0_15, %c0_16], %29 {strides = array<i32>} : memref<96x8xf32, #tpu.memory_space<vmem>>, vector<24x8xf32>,
    %31 = vector.extract_strided_slice %20 {offsets = [0, 40], sizes = [24, 8], strides = [1, 1]} : vector<24x64xf32> to vector<24x8xf32>
    %c24_17 = arith.constant 24 : index
    %c0_18 = arith.constant 0 : index
    %32 = vector.load %arg14[%c24_17, %c0_18] : memref<96x8xf32, #tpu.memory_space<vmem>>, vector<24x8xf32>
    tpu.vector_store %arg14[%c24_17, %c0_18], %31 {strides = array<i32>} : memref<96x8xf32, #tpu.memory_space<vmem>>, vector<24x8xf32>,
    %33 = vector.extract_strided_slice %20 {offsets = [0, 48], sizes = [24, 8], strides = [1, 1]} : vector<24x64xf32> to vector<24x8xf32>
    %c48_19 = arith.constant 48 : index
    %c0_20 = arith.constant 0 : index
    %34 = vector.load %arg14[%c48_19, %c0_20] : memref<96x8xf32, #tpu.memory_space<vmem>>, vector<24x8xf32>
    tpu.vector_store %arg14[%c48_19, %c0_20], %33 {strides = array<i32>} : memref<96x8xf32, #tpu.memory_space<vmem>>, vector<24x8xf32>,
    %35 = vector.extract_strided_slice %20 {offsets = [0, 56], sizes = [24, 8], strides = [1, 1]} : vector<24x64xf32> to vector<24x8xf32>
    %c72_21 = arith.constant 72 : index
    %c0_22 = arith.constant 0 : index
    %36 = vector.load %arg14[%c72_21, %c0_22] : memref<96x8xf32, #tpu.memory_space<vmem>>, vector<24x8xf32>
    tpu.vector_store %arg14[%c72_21, %c0_22], %35 {strides = array<i32>} : memref<96x8xf32, #tpu.memory_space<vmem>>, vector<24x8xf32>,
    %c0_23 = arith.constant 0 : index
    %c0_24 = arith.constant 0 : index
    %c0_25 = arith.constant 0 : index
    %37 = vector.load %arg0[%c0_23, %c0_24, %c0_25] : memref<8x2x32xf32, #tpu.memory_space<vmem>>, vector<8x2x32xf32>
    %38 = vector.shape_cast %37 : vector<8x2x32xf32> to vector<16x32xf32>
    %cst_26 = arith.constant dense<0.000000e+00> : vector<16x96xf32>
    %39 = tpu.matmul %38, %1, %cst_26 {dimension_numbers = #tpu.dot_dimension_numbers<[1], [0], [0], [1], [0, 0, 1, 1], [], []>} : vector<16x32xf32>, vector<32x96xf32>, vector<16x96xf32> -> vector<16x96xf32>
    %40 = vector.broadcast %8 : vector<1x96xf32> to vector<16x96xf32>
    %41 = arith.addf %39, %40 : vector<16x96xf32>
    %42 = vector.extract_strided_slice %41 {offsets = [0, 0], sizes = [16, 8], strides = [1, 1]} : vector<16x96xf32> to vector<16x8xf32>
    %c0_27 = arith.constant 0 : index
    %c0_28 = arith.constant 0 : index
    %43 = vector.load %arg9[%c0_27, %c0_28] : memref<64x8xf32, #tpu.memory_space<vmem>>, vector<16x8xf32>
    tpu.vector_store %arg9[%c0_27, %c0_28], %42 {strides = array<i32>} : memref<64x8xf32, #tpu.memory_space<vmem>>, vector<16x8xf32>,
    %44 = vector.extract_strided_slice %41 {offsets = [0, 8], sizes = [16, 8], strides = [1, 1]} : vector<16x96xf32> to vector<16x8xf32>
    %c16 = arith.constant 16 : index
    %c0_29 = arith.constant 0 : index
    %45 = vector.load %arg9[%c16, %c0_29] : memref<64x8xf32, #tpu.memory_space<vmem>>, vector<16x8xf32>
    tpu.vector_store %arg9[%c16, %c0_29], %44 {strides = array<i32>} : memref<64x8xf32, #tpu.memory_space<vmem>>, vector<16x8xf32>,
    %46 = vector.extract_strided_slice %41 {offsets = [0, 16], sizes = [16, 8], strides = [1, 1]} : vector<16x96xf32> to vector<16x8xf32>
    %c32 = arith.constant 32 : index
    %c0_30 = arith.constant 0 : index
    %47 = vector.load %arg9[%c32, %c0_30] : memref<64x8xf32, #tpu.memory_space<vmem>>, vector<16x8xf32>
    tpu.vector_store %arg9[%c32, %c0_30], %46 {strides = array<i32>} : memref<64x8xf32, #tpu.memory_space<vmem>>, vector<16x8xf32>,
    %48 = vector.extract_strided_slice %41 {offsets = [0, 24], sizes = [16, 8], strides = [1, 1]} : vector<16x96xf32> to vector<16x8xf32>
    %c48_31 = arith.constant 48 : index
    %c0_32 = arith.constant 0 : index
    %49 = vector.load %arg9[%c48_31, %c0_32] : memref<64x8xf32, #tpu.memory_space<vmem>>, vector<16x8xf32>
    tpu.vector_store %arg9[%c48_31, %c0_32], %48 {strides = array<i32>} : memref<64x8xf32, #tpu.memory_space<vmem>>, vector<16x8xf32>,
    %50 = vector.extract_strided_slice %41 {offsets = [0, 32], sizes = [16, 8], strides = [1, 1]} : vector<16x96xf32> to vector<16x8xf32>
    %c0_33 = arith.constant 0 : index
    %c0_34 = arith.constant 0 : index
    %51 = vector.load %arg10[%c0_33, %c0_34] : memref<64x8xf32, #tpu.memory_space<vmem>>, vector<16x8xf32>
    tpu.vector_store %arg10[%c0_33, %c0_34], %50 {strides = array<i32>} : memref<64x8xf32, #tpu.memory_space<vmem>>, vector<16x8xf32>,
    %52 = vector.extract_strided_slice %41 {offsets = [0, 40], sizes = [16, 8], strides = [1, 1]} : vector<16x96xf32> to vector<16x8xf32>
    %c16_35 = arith.constant 16 : index
    %c0_36 = arith.constant 0 : index
    %53 = vector.load %arg10[%c16_35, %c0_36] : memref<64x8xf32, #tpu.memory_space<vmem>>, vector<16x8xf32>
    tpu.vector_store %arg10[%c16_35, %c0_36], %52 {strides = array<i32>} : memref<64x8xf32, #tpu.memory_space<vmem>>, vector<16x8xf32>,
    %54 = vector.extract_strided_slice %41 {offsets = [0, 48], sizes = [16, 8], strides = [1, 1]} : vector<16x96xf32> to vector<16x8xf32>
    %c32_37 = arith.constant 32 : index
    %c0_38 = arith.constant 0 : index
    %55 = vector.load %arg10[%c32_37, %c0_38] : memref<64x8xf32, #tpu.memory_space<vmem>>, vector<16x8xf32>
    tpu.vector_store %arg10[%c32_37, %c0_38], %54 {strides = array<i32>} : memref<64x8xf32, #tpu.memory_space<vmem>>, vector<16x8xf32>,
    %56 = vector.extract_strided_slice %41 {offsets = [0, 56], sizes = [16, 8], strides = [1, 1]} : vector<16x96xf32> to vector<16x8xf32>
    %c48_39 = arith.constant 48 : index
    %c0_40 = arith.constant 0 : index
    %57 = vector.load %arg10[%c48_39, %c0_40] : memref<64x8xf32, #tpu.memory_space<vmem>>, vector<16x8xf32>
    tpu.vector_store %arg10[%c48_39, %c0_40], %56 {strides = array<i32>} : memref<64x8xf32, #tpu.memory_space<vmem>>, vector<16x8xf32>,
    %58 = vector.extract_strided_slice %41 {offsets = [0, 64], sizes = [16, 8], strides = [1, 1]} : vector<16x96xf32> to vector<16x8xf32>
    %c0_41 = arith.constant 0 : index
    %c0_42 = arith.constant 0 : index
    %59 = vector.load %arg11[%c0_41, %c0_42] : memref<64x8xf32, #tpu.memory_space<vmem>>, vector<16x8xf32>
    tpu.vector_store %arg11[%c0_41, %c0_42], %58 {strides = array<i32>} : memref<64x8xf32, #tpu.memory_space<vmem>>, vector<16x8xf32>,
    %60 = vector.extract_strided_slice %41 {offsets = [0, 72], sizes = [16, 8], strides = [1, 1]} : vector<16x96xf32> to vector<16x8xf32>
    %c16_43 = arith.constant 16 : index
    %c0_44 = arith.constant 0 : index
    %61 = vector.load %arg11[%c16_43, %c0_44] : memref<64x8xf32, #tpu.memory_space<vmem>>, vector<16x8xf32>
    tpu.vector_store %arg11[%c16_43, %c0_44], %60 {strides = array<i32>} : memref<64x8xf32, #tpu.memory_space<vmem>>, vector<16x8xf32>,
    %62 = vector.extract_strided_slice %41 {offsets = [0, 80], sizes = [16, 8], strides = [1, 1]} : vector<16x96xf32> to vector<16x8xf32>
    %c32_45 = arith.constant 32 : index
    %c0_46 = arith.constant 0 : index
    %63 = vector.load %arg11[%c32_45, %c0_46] : memref<64x8xf32, #tpu.memory_space<vmem>>, vector<16x8xf32>
    tpu.vector_store %arg11[%c32_45, %c0_46], %62 {strides = array<i32>} : memref<64x8xf32, #tpu.memory_space<vmem>>, vector<16x8xf32>,
    %64 = vector.extract_strided_slice %41 {offsets = [0, 88], sizes = [16, 8], strides = [1, 1]} : vector<16x96xf32> to vector<16x8xf32>
    %c48_47 = arith.constant 48 : index
    %c0_48 = arith.constant 0 : index
    %65 = vector.load %arg11[%c48_47, %c0_48] : memref<64x8xf32, #tpu.memory_space<vmem>>, vector<16x8xf32>
    tpu.vector_store %arg11[%c48_47, %c0_48], %64 {strides = array<i32>} : memref<64x8xf32, #tpu.memory_space<vmem>>, vector<16x8xf32>,
    %c0_49 = arith.constant 0 : index
    %c0_50 = arith.constant 0 : index
    %66 = vector.load %arg6[%c0_49, %c0_50] : memref<64x64xf32, #tpu.memory_space<vmem>>, vector<64x64xf32>
    %c0_51 = arith.constant 0 : index
    %c0_52 = arith.constant 0 : index
    %67 = vector.load %arg9[%c0_51, %c0_52] : memref<64x8xf32, #tpu.memory_space<vmem>>, vector<64x8xf32>
    %c0_53 = arith.constant 0 : index
    %c0_54 = arith.constant 0 : index
    %68 = vector.load %arg10[%c0_53, %c0_54] : memref<64x8xf32, #tpu.memory_space<vmem>>, vector<64x8xf32>
    "tpu.trace_start"() <{level = 10 : i32, message = "nd,md->nm"}> : () -> ()
    %cst_55 = arith.constant dense<0.000000e+00> : vector<64x64xf32>
    %69 = tpu.matmul %67, %68, %cst_55 {dimension_numbers = #tpu.dot_dimension_numbers<[1], [1], [0], [0], [0, 0, 1, 0], [], []>} : vector<64x8xf32>, vector<64x8xf32>, vector<64x64xf32> -> vector<64x64xf32>
    "tpu.trace_stop"() : () -> ()
    %cst_56 = arith.constant 0.353553385 : f32
    %70 = vector.broadcast %cst_56 : f32 to vector<64x64xf32>
    %71 = arith.mulf %69, %70 : vector<64x64xf32>
    %72 = arith.addf %71, %66 : vector<64x64xf32>
    %cst_57 = arith.constant dense<0xFF800000> : vector<64xf32>
    %73 = vector.multi_reduction <maximumf>, %72, %cst_57 [1] : vector<64x64xf32> to vector<64xf32>
    %74 = vector.shape_cast %73 : vector<64xf32> to vector<64x1xf32>
    %75 = vector.broadcast %74 : vector<64x1xf32> to vector<64x64xf32>
    %76 = arith.subf %72, %75 : vector<64x64xf32>
    %77 = math.exp %76 : vector<64x64xf32>
    %cst_58 = arith.constant dense<0.000000e+00> : vector<64xf32>
    %78 = vector.multi_reduction <add>, %77, %cst_58 [1] : vector<64x64xf32> to vector<64xf32>
    %79 = vector.shape_cast %78 : vector<64xf32> to vector<64x1xf32>
    %80 = tpu.reciprocal %79 {approx = true} : vector<64x1xf32> -> vector<64x1xf32>
    %81 = arith.mulf %79, %80 : vector<64x1xf32>
    %cst_59 = arith.constant 2.000000e+00 : f32
    %82 = vector.broadcast %cst_59 : f32 to vector<64x1xf32>
    %83 = arith.subf %82, %81 : vector<64x1xf32>
    %84 = arith.mulf %80, %83 : vector<64x1xf32>
    %85 = vector.broadcast %84 : vector<64x1xf32> to vector<64x64xf32>
    %86 = arith.mulf %77, %85 : vector<64x64xf32>
    %c0_60 = arith.constant 0 : index
    %c0_61 = arith.constant 0 : index
    %87 = vector.load %arg11[%c0_60, %c0_61] : memref<64x8xf32, #tpu.memory_space<vmem>>, vector<64x8xf32>
    %cst_62 = arith.constant dense<0.000000e+00> : vector<64x8xf32>
    %88 = tpu.matmul %86, %87, %cst_62 {dimension_numbers = #tpu.dot_dimension_numbers<[1], [0], [0], [1], [0, 0, 1, 1], [], []>} : vector<64x64xf32>, vector<64x8xf32>, vector<64x8xf32> -> vector<64x8xf32>
    %89 = vector.extract_strided_slice %88 {offsets = [0, 0], sizes = [16, 8], strides = [1, 1]} : vector<64x8xf32> to vector<16x8xf32>
    %90 = vector.extract_strided_slice %4 {offsets = [0, 0], sizes = [8, 32], strides = [1, 1]} : vector<32x32xf32> to vector<8x32xf32>
    %cst_63 = arith.constant dense<0.000000e+00> : vector<16x32xf32>
    %91 = tpu.matmul %89, %90, %cst_63 {dimension_numbers = #tpu.dot_dimension_numbers<[1], [0], [0], [1], [0, 0, 1, 1], [], []>} : vector<16x8xf32>, vector<8x32xf32>, vector<16x32xf32> -> vector<16x32xf32>
    %92 = vector.broadcast %10 : vector<1x32xf32> to vector<16x32xf32>
    %93 = arith.addf %92, %91 : vector<16x32xf32>
    %94 = vector.extract_strided_slice %88 {offsets = [16, 0], sizes = [16, 8], strides = [1, 1]} : vector<64x8xf32> to vector<16x8xf32>
    %95 = vector.extract_strided_slice %4 {offsets = [8, 0], sizes = [8, 32], strides = [1, 1]} : vector<32x32xf32> to vector<8x32xf32>
    %cst_64 = arith.constant dense<0.000000e+00> : vector<16x32xf32>
    %96 = tpu.matmul %94, %95, %cst_64 {dimension_numbers = #tpu.dot_dimension_numbers<[1], [0], [0], [1], [0, 0, 1, 1], [], []>} : vector<16x8xf32>, vector<8x32xf32>, vector<16x32xf32> -> vector<16x32xf32>
    %97 = arith.addf %93, %96 : vector<16x32xf32>
    %98 = vector.extract_strided_slice %88 {offsets = [32, 0], sizes = [16, 8], strides = [1, 1]} : vector<64x8xf32> to vector<16x8xf32>
    %99 = vector.extract_strided_slice %4 {offsets = [16, 0], sizes = [8, 32], strides = [1, 1]} : vector<32x32xf32> to vector<8x32xf32>
    %cst_65 = arith.constant dense<0.000000e+00> : vector<16x32xf32>
    %100 = tpu.matmul %98, %99, %cst_65 {dimension_numbers = #tpu.dot_dimension_numbers<[1], [0], [0], [1], [0, 0, 1, 1], [], []>} : vector<16x8xf32>, vector<8x32xf32>, vector<16x32xf32> -> vector<16x32xf32>
    %101 = arith.addf %97, %100 : vector<16x32xf32>
    %102 = vector.extract_strided_slice %88 {offsets = [48, 0], sizes = [16, 8], strides = [1, 1]} : vector<64x8xf32> to vector<16x8xf32>
    %103 = vector.extract_strided_slice %4 {offsets = [24, 0], sizes = [8, 32], strides = [1, 1]} : vector<32x32xf32> to vector<8x32xf32>
    %cst_66 = arith.constant dense<0.000000e+00> : vector<16x32xf32>
    %104 = tpu.matmul %102, %103, %cst_66 {dimension_numbers = #tpu.dot_dimension_numbers<[1], [0], [0], [1], [0, 0, 1, 1], [], []>} : vector<16x8xf32>, vector<8x32xf32>, vector<16x32xf32> -> vector<16x32xf32>
    %105 = arith.addf %101, %104 : vector<16x32xf32>
    %106 = arith.addf %38, %105 : vector<16x32xf32>
    %107 = vector.extract_strided_slice %13 {offsets = [0, 0], sizes = [1, 32], strides = [1, 1]} : vector<8x32xf32> to vector<1x32xf32>
    %108 = vector.extract_strided_slice %13 {offsets = [4, 0], sizes = [1, 32], strides = [1, 1]} : vector<8x32xf32> to vector<1x32xf32>
    %cst_67 = arith.constant dense<0.000000e+00> : vector<16xf32>
    %109 = vector.multi_reduction <add>, %106, %cst_67 [1] : vector<16x32xf32> to vector<16xf32>
    %110 = vector.shape_cast %109 : vector<16xf32> to vector<16x1xf32>
    %cst_68 = arith.constant 3.200000e+01 : f32
    %111 = vector.broadcast %cst_68 : f32 to vector<16x1xf32>
    %112 = arith.divf %110, %111 : vector<16x1xf32>
    %113 = vector.broadcast %112 : vector<16x1xf32> to vector<16x32xf32>
    %114 = arith.subf %106, %113 : vector<16x32xf32>
    %115 = arith.mulf %114, %114 : vector<16x32xf32>
    %cst_69 = arith.constant dense<0.000000e+00> : vector<16xf32>
    %116 = vector.multi_reduction <add>, %115, %cst_69 [1] : vector<16x32xf32> to vector<16xf32>
    %117 = vector.shape_cast %116 : vector<16xf32> to vector<16x1xf32>
    %cst_70 = arith.constant 3.200000e+01 : f32
    %118 = vector.broadcast %cst_70 : f32 to vector<16x1xf32>
    %119 = arith.divf %117, %118 : vector<16x1xf32>
    %cst_71 = arith.constant 9.99999974E-6 : f32
    %120 = vector.broadcast %cst_71 : f32 to vector<16x1xf32>
    %121 = arith.addf %119, %120 : vector<16x1xf32>
    %122 = math.rsqrt %121 : vector<16x1xf32>
    %123 = vector.broadcast %122 : vector<16x1xf32> to vector<16x32xf32>
    %124 = arith.mulf %114, %123 : vector<16x32xf32>
    %125 = vector.broadcast %107 : vector<1x32xf32> to vector<16x32xf32>
    %126 = arith.mulf %124, %125 : vector<16x32xf32>
    %127 = vector.broadcast %108 : vector<1x32xf32> to vector<16x32xf32>
    %128 = arith.addf %126, %127 : vector<16x32xf32>
    %129 = vector.extract_strided_slice %2 {offsets = [0, 0], sizes = [32, 32], strides = [1, 1]} : vector<32x96xf32> to vector<32x32xf32>
    %cst_72 = arith.constant dense<0.000000e+00> : vector<16x32xf32>
    %130 = tpu.matmul %128, %129, %cst_72 {dimension_numbers = #tpu.dot_dimension_numbers<[1], [0], [0], [1], [0, 0, 1, 1], [], []>} : vector<16x32xf32>, vector<32x32xf32>, vector<16x32xf32> -> vector<16x32xf32>
    %131 = vector.extract_strided_slice %9 {offsets = [0, 0], sizes = [1, 32], strides = [1, 1]} : vector<1x96xf32> to vector<1x32xf32>
    %132 = vector.broadcast %131 : vector<1x32xf32> to vector<16x32xf32>
    %133 = arith.addf %130, %132 : vector<16x32xf32>
    %134 = vector.extract_strided_slice %133 {offsets = [0, 0], sizes = [16, 8], strides = [1, 1]} : vector<16x32xf32> to vector<16x8xf32>
    %c0_73 = arith.constant 0 : index
    %c0_74 = arith.constant 0 : index
    %135 = vector.load %arg12[%c0_73, %c0_74] : memref<64x8xf32, #tpu.memory_space<vmem>>, vector<16x8xf32>
    tpu.vector_store %arg12[%c0_73, %c0_74], %134 {strides = array<i32>} : memref<64x8xf32, #tpu.memory_space<vmem>>, vector<16x8xf32>,
    %136 = vector.extract_strided_slice %133 {offsets = [0, 8], sizes = [16, 8], strides = [1, 1]} : vector<16x32xf32> to vector<16x8xf32>
    %c16_75 = arith.constant 16 : index
    %c0_76 = arith.constant 0 : index
    %137 = vector.load %arg12[%c16_75, %c0_76] : memref<64x8xf32, #tpu.memory_space<vmem>>, vector<16x8xf32>
    tpu.vector_store %arg12[%c16_75, %c0_76], %136 {strides = array<i32>} : memref<64x8xf32, #tpu.memory_space<vmem>>, vector<16x8xf32>,
    %138 = vector.extract_strided_slice %133 {offsets = [0, 16], sizes = [16, 8], strides = [1, 1]} : vector<16x32xf32> to vector<16x8xf32>
    %c32_77 = arith.constant 32 : index
    %c0_78 = arith.constant 0 : index
    %139 = vector.load %arg12[%c32_77, %c0_78] : memref<64x8xf32, #tpu.memory_space<vmem>>, vector<16x8xf32>
    tpu.vector_store %arg12[%c32_77, %c0_78], %138 {strides = array<i32>} : memref<64x8xf32, #tpu.memory_space<vmem>>, vector<16x8xf32>,
    %140 = vector.extract_strided_slice %133 {offsets = [0, 24], sizes = [16, 8], strides = [1, 1]} : vector<16x32xf32> to vector<16x8xf32>
    %c48_79 = arith.constant 48 : index
    %c0_80 = arith.constant 0 : index
    %141 = vector.load %arg12[%c48_79, %c0_80] : memref<64x8xf32, #tpu.memory_space<vmem>>, vector<16x8xf32>
    tpu.vector_store %arg12[%c48_79, %c0_80], %140 {strides = array<i32>} : memref<64x8xf32, #tpu.memory_space<vmem>>, vector<16x8xf32>,
    %c0_81 = arith.constant 0 : index
    %c0_82 = arith.constant 0 : index
    %142 = vector.load %arg7[%c0_81, %c0_82] : memref<64x96xf32, #tpu.memory_space<vmem>>, vector<64x96xf32>
    %c0_83 = arith.constant 0 : index
    %c0_84 = arith.constant 0 : index
    %143 = vector.load %arg12[%c0_83, %c0_84] : memref<64x8xf32, #tpu.memory_space<vmem>>, vector<64x8xf32>
    %c0_85 = arith.constant 0 : index
    %c0_86 = arith.constant 0 : index
    %144 = vector.load %arg13[%c0_85, %c0_86] : memref<96x8xf32, #tpu.memory_space<vmem>>, vector<96x8xf32>
    "tpu.trace_start"() <{level = 10 : i32, message = "nd,md->nm"}> : () -> ()
    %cst_87 = arith.constant dense<0.000000e+00> : vector<64x96xf32>
    %145 = tpu.matmul %143, %144, %cst_87 {dimension_numbers = #tpu.dot_dimension_numbers<[1], [1], [0], [0], [0, 0, 1, 0], [], []>} : vector<64x8xf32>, vector<96x8xf32>, vector<64x96xf32> -> vector<64x96xf32>
    "tpu.trace_stop"() : () -> ()
    %cst_88 = arith.constant 0.353553385 : f32
    %146 = vector.broadcast %cst_88 : f32 to vector<64x96xf32>
    %147 = arith.mulf %145, %146 : vector<64x96xf32>
    %148 = arith.addf %147, %142 : vector<64x96xf32>
    %cst_89 = arith.constant dense<0xFF800000> : vector<64xf32>
    %149 = vector.multi_reduction <maximumf>, %148, %cst_89 [1] : vector<64x96xf32> to vector<64xf32>
    %150 = vector.shape_cast %149 : vector<64xf32> to vector<64x1xf32>
    %151 = vector.broadcast %150 : vector<64x1xf32> to vector<64x96xf32>
    %152 = arith.subf %148, %151 : vector<64x96xf32>
    %153 = math.exp %152 : vector<64x96xf32>
    %cst_90 = arith.constant dense<0.000000e+00> : vector<64xf32>
    %154 = vector.multi_reduction <add>, %153, %cst_90 [1] : vector<64x96xf32> to vector<64xf32>
    %155 = vector.shape_cast %154 : vector<64xf32> to vector<64x1xf32>
    %156 = tpu.reciprocal %155 {approx = true} : vector<64x1xf32> -> vector<64x1xf32>
    %157 = arith.mulf %155, %156 : vector<64x1xf32>
    %cst_91 = arith.constant 2.000000e+00 : f32
    %158 = vector.broadcast %cst_91 : f32 to vector<64x1xf32>
    %159 = arith.subf %158, %157 : vector<64x1xf32>
    %160 = arith.mulf %156, %159 : vector<64x1xf32>
    %161 = vector.broadcast %160 : vector<64x1xf32> to vector<64x96xf32>
    %162 = arith.mulf %153, %161 : vector<64x96xf32>
    %c0_92 = arith.constant 0 : index
    %c0_93 = arith.constant 0 : index
    %163 = vector.load %arg14[%c0_92, %c0_93] : memref<96x8xf32, #tpu.memory_space<vmem>>, vector<96x8xf32>
    %cst_94 = arith.constant dense<0.000000e+00> : vector<64x8xf32>
    %164 = tpu.matmul %162, %163, %cst_94 {dimension_numbers = #tpu.dot_dimension_numbers<[1], [0], [0], [1], [0, 0, 1, 1], [], []>} : vector<64x96xf32>, vector<96x8xf32>, vector<64x8xf32> -> vector<64x8xf32>
    %165 = vector.extract_strided_slice %164 {offsets = [0, 0], sizes = [16, 8], strides = [1, 1]} : vector<64x8xf32> to vector<16x8xf32>
    %166 = vector.extract_strided_slice %5 {offsets = [0, 0], sizes = [8, 32], strides = [1, 1]} : vector<32x32xf32> to vector<8x32xf32>
    %cst_95 = arith.constant dense<0.000000e+00> : vector<16x32xf32>
    %167 = tpu.matmul %165, %166, %cst_95 {dimension_numbers = #tpu.dot_dimension_numbers<[1], [0], [0], [1], [0, 0, 1, 1], [], []>} : vector<16x8xf32>, vector<8x32xf32>, vector<16x32xf32> -> vector<16x32xf32>
    %168 = vector.broadcast %11 : vector<1x32xf32> to vector<16x32xf32>
    %169 = arith.addf %168, %167 : vector<16x32xf32>
    %170 = vector.extract_strided_slice %164 {offsets = [16, 0], sizes = [16, 8], strides = [1, 1]} : vector<64x8xf32> to vector<16x8xf32>
    %171 = vector.extract_strided_slice %5 {offsets = [8, 0], sizes = [8, 32], strides = [1, 1]} : vector<32x32xf32> to vector<8x32xf32>
    %cst_96 = arith.constant dense<0.000000e+00> : vector<16x32xf32>
    %172 = tpu.matmul %170, %171, %cst_96 {dimension_numbers = #tpu.dot_dimension_numbers<[1], [0], [0], [1], [0, 0, 1, 1], [], []>} : vector<16x8xf32>, vector<8x32xf32>, vector<16x32xf32> -> vector<16x32xf32>
    %173 = arith.addf %169, %172 : vector<16x32xf32>
    %174 = vector.extract_strided_slice %164 {offsets = [32, 0], sizes = [16, 8], strides = [1, 1]} : vector<64x8xf32> to vector<16x8xf32>
    %175 = vector.extract_strided_slice %5 {offsets = [16, 0], sizes = [8, 32], strides = [1, 1]} : vector<32x32xf32> to vector<8x32xf32>
    %cst_97 = arith.constant dense<0.000000e+00> : vector<16x32xf32>
    %176 = tpu.matmul %174, %175, %cst_97 {dimension_numbers = #tpu.dot_dimension_numbers<[1], [0], [0], [1], [0, 0, 1, 1], [], []>} : vector<16x8xf32>, vector<8x32xf32>, vector<16x32xf32> -> vector<16x32xf32>
    %177 = arith.addf %173, %176 : vector<16x32xf32>
    %178 = vector.extract_strided_slice %164 {offsets = [48, 0], sizes = [16, 8], strides = [1, 1]} : vector<64x8xf32> to vector<16x8xf32>
    %179 = vector.extract_strided_slice %5 {offsets = [24, 0], sizes = [8, 32], strides = [1, 1]} : vector<32x32xf32> to vector<8x32xf32>
    %cst_98 = arith.constant dense<0.000000e+00> : vector<16x32xf32>
    %180 = tpu.matmul %178, %179, %cst_98 {dimension_numbers = #tpu.dot_dimension_numbers<[1], [0], [0], [1], [0, 0, 1, 1], [], []>} : vector<16x8xf32>, vector<8x32xf32>, vector<16x32xf32> -> vector<16x32xf32>
    %181 = arith.addf %177, %180 : vector<16x32xf32>
    %182 = arith.addf %128, %181 : vector<16x32xf32>
    %183 = vector.extract_strided_slice %13 {offsets = [1, 0], sizes = [1, 32], strides = [1, 1]} : vector<8x32xf32> to vector<1x32xf32>
    %184 = vector.extract_strided_slice %13 {offsets = [5, 0], sizes = [1, 32], strides = [1, 1]} : vector<8x32xf32> to vector<1x32xf32>
    %cst_99 = arith.constant dense<0.000000e+00> : vector<16xf32>
    %185 = vector.multi_reduction <add>, %182, %cst_99 [1] : vector<16x32xf32> to vector<16xf32>
    %186 = vector.shape_cast %185 : vector<16xf32> to vector<16x1xf32>
    %cst_100 = arith.constant 3.200000e+01 : f32
    %187 = vector.broadcast %cst_100 : f32 to vector<16x1xf32>
    %188 = arith.divf %186, %187 : vector<16x1xf32>
    %189 = vector.broadcast %188 : vector<16x1xf32> to vector<16x32xf32>
    %190 = arith.subf %182, %189 : vector<16x32xf32>
    %191 = arith.mulf %190, %190 : vector<16x32xf32>
    %cst_101 = arith.constant dense<0.000000e+00> : vector<16xf32>
    %192 = vector.multi_reduction <add>, %191, %cst_101 [1] : vector<16x32xf32> to vector<16xf32>
    %193 = vector.shape_cast %192 : vector<16xf32> to vector<16x1xf32>
    %cst_102 = arith.constant 3.200000e+01 : f32
    %194 = vector.broadcast %cst_102 : f32 to vector<16x1xf32>
    %195 = arith.divf %193, %194 : vector<16x1xf32>
    %cst_103 = arith.constant 9.99999974E-6 : f32
    %196 = vector.broadcast %cst_103 : f32 to vector<16x1xf32>
    %197 = arith.addf %195, %196 : vector<16x1xf32>
    %198 = math.rsqrt %197 : vector<16x1xf32>
    %199 = vector.broadcast %198 : vector<16x1xf32> to vector<16x32xf32>
    %200 = arith.mulf %190, %199 : vector<16x32xf32>
    %201 = vector.broadcast %183 : vector<1x32xf32> to vector<16x32xf32>
    %202 = arith.mulf %200, %201 : vector<16x32xf32>
    %203 = vector.broadcast %184 : vector<1x32xf32> to vector<16x32xf32>
    %204 = arith.addf %202, %203 : vector<16x32xf32>
    %cst_104 = arith.constant dense<0.000000e+00> : vector<16x32xf32>
    %205 = tpu.matmul %204, %6, %cst_104 {dimension_numbers = #tpu.dot_dimension_numbers<[1], [0], [0], [1], [0, 0, 1, 1], [], []>} : vector<16x32xf32>, vector<32x32xf32>, vector<16x32xf32> -> vector<16x32xf32>
    %206 = vector.broadcast %12 : vector<1x32xf32> to vector<16x32xf32>
    %207 = arith.addf %205, %206 : vector<16x32xf32>
    %208 = arith.addf %204, %207 : vector<16x32xf32>
    %209 = vector.extract_strided_slice %13 {offsets = [2, 0], sizes = [1, 32], strides = [1, 1]} : vector<8x32xf32> to vector<1x32xf32>
    %210 = vector.extract_strided_slice %13 {offsets = [6, 0], sizes = [1, 32], strides = [1, 1]} : vector<8x32xf32> to vector<1x32xf32>
    %cst_105 = arith.constant dense<0.000000e+00> : vector<16xf32>
    %211 = vector.multi_reduction <add>, %208, %cst_105 [1] : vector<16x32xf32> to vector<16xf32>
    %212 = vector.shape_cast %211 : vector<16xf32> to vector<16x1xf32>
    %cst_106 = arith.constant 3.200000e+01 : f32
    %213 = vector.broadcast %cst_106 : f32 to vector<16x1xf32>
    %214 = arith.divf %212, %213 : vector<16x1xf32>
    %215 = vector.broadcast %214 : vector<16x1xf32> to vector<16x32xf32>
    %216 = arith.subf %208, %215 : vector<16x32xf32>
    %217 = arith.mulf %216, %216 : vector<16x32xf32>
    %cst_107 = arith.constant dense<0.000000e+00> : vector<16xf32>
    %218 = vector.multi_reduction <add>, %217, %cst_107 [1] : vector<16x32xf32> to vector<16xf32>
    %219 = vector.shape_cast %218 : vector<16xf32> to vector<16x1xf32>
    %cst_108 = arith.constant 3.200000e+01 : f32
    %220 = vector.broadcast %cst_108 : f32 to vector<16x1xf32>
    %221 = arith.divf %219, %220 : vector<16x1xf32>
    %cst_109 = arith.constant 9.99999974E-6 : f32
    %222 = vector.broadcast %cst_109 : f32 to vector<16x1xf32>
    %223 = arith.addf %221, %222 : vector<16x1xf32>
    %224 = math.rsqrt %223 : vector<16x1xf32>
    %225 = vector.broadcast %224 : vector<16x1xf32> to vector<16x32xf32>
    %226 = arith.mulf %216, %225 : vector<16x32xf32>
    %227 = vector.broadcast %209 : vector<1x32xf32> to vector<16x32xf32>
    %228 = arith.mulf %226, %227 : vector<16x32xf32>
    %229 = vector.broadcast %210 : vector<1x32xf32> to vector<16x32xf32>
    %230 = arith.addf %228, %229 : vector<16x32xf32>
    %cst_110 = arith.constant dense<0.000000e+00> : vector<16x32xf32>
    %231 = tpu.matmul %230, %6, %cst_110 {dimension_numbers = #tpu.dot_dimension_numbers<[1], [0], [0], [1], [0, 0, 1, 1], [], []>} : vector<16x32xf32>, vector<32x32xf32>, vector<16x32xf32> -> vector<16x32xf32>
    %232 = vector.broadcast %12 : vector<1x32xf32> to vector<16x32xf32>
    %233 = arith.addf %231, %232 : vector<16x32xf32>
    %234 = arith.addf %230, %233 : vector<16x32xf32>
    %235 = vector.extract_strided_slice %13 {offsets = [3, 0], sizes = [1, 32], strides = [1, 1]} : vector<8x32xf32> to vector<1x32xf32>
    %236 = vector.extract_strided_slice %13 {offsets = [7, 0], sizes = [1, 32], strides = [1, 1]} : vector<8x32xf32> to vector<1x32xf32>
    %cst_111 = arith.constant dense<0.000000e+00> : vector<16xf32>
    %237 = vector.multi_reduction <add>, %234, %cst_111 [1] : vector<16x32xf32> to vector<16xf32>
    %238 = vector.shape_cast %237 : vector<16xf32> to vector<16x1xf32>
    %cst_112 = arith.constant 3.200000e+01 : f32
    %239 = vector.broadcast %cst_112 : f32 to vector<16x1xf32>
    %240 = arith.divf %238, %239 : vector<16x1xf32>
    %241 = vector.broadcast %240 : vector<16x1xf32> to vector<16x32xf32>
    %242 = arith.subf %234, %241 : vector<16x32xf32>
    %243 = arith.mulf %242, %242 : vector<16x32xf32>
    %cst_113 = arith.constant dense<0.000000e+00> : vector<16xf32>
    %244 = vector.multi_reduction <add>, %243, %cst_113 [1] : vector<16x32xf32> to vector<16xf32>
    %245 = vector.shape_cast %244 : vector<16xf32> to vector<16x1xf32>
    %cst_114 = arith.constant 3.200000e+01 : f32
    %246 = vector.broadcast %cst_114 : f32 to vector<16x1xf32>
    %247 = arith.divf %245, %246 : vector<16x1xf32>
    %cst_115 = arith.constant 9.99999974E-6 : f32
    %248 = vector.broadcast %cst_115 : f32 to vector<16x1xf32>
    %249 = arith.addf %247, %248 : vector<16x1xf32>
    %250 = math.rsqrt %249 : vector<16x1xf32>
    %251 = vector.broadcast %250 : vector<16x1xf32> to vector<16x32xf32>
    %252 = arith.mulf %242, %251 : vector<16x32xf32>
    %253 = vector.broadcast %235 : vector<1x32xf32> to vector<16x32xf32>
    %254 = arith.mulf %252, %253 : vector<16x32xf32>
    %255 = vector.broadcast %236 : vector<1x32xf32> to vector<16x32xf32>
    %256 = arith.addf %254, %255 : vector<16x32xf32>
    %257 = vector.shape_cast %256 : vector<16x32xf32> to vector<8x2x32xf32>
    %c0_116 = arith.constant 0 : index
    %c0_117 = arith.constant 0 : index
    %c0_118 = arith.constant 0 : index
    %258 = vector.load %arg8[%c0_116, %c0_117, %c0_118] : memref<8x2x32xf32, #tpu.memory_space<vmem>>, vector<8x2x32xf32>
    tpu.vector_store %arg8[%c0_116, %c0_117, %c0_118], %257 {strides = array<i32>} : memref<8x2x32xf32, #tpu.memory_space<vmem>>, vector<8x2x32xf32>,
    return
  }
}

</mosaic_0001>

<bundles_post_ra>
// kernel: tpu_custom_call.1
= control target key start
LH: loop header
LB: loop body
LE: loop exit
PB: predicated region body
PF: predicated region fallthrough
CT: control target
= control target key end

     0   :  { %13 = vsyncpa [#allocation9], 0  ;;  %s6174_s0 = inlined_call_operand.hbm [shape: f32[8,2,32], index: 0, kind: input, shape index: {}]   ;;  %s6175_s1 = inlined_call_operand.hbm [shape: f32[12,2,32], index: 1, kind: input, shape index: {}]   ;;  %s6176_s2 = inlined_call_operand.hbm [shape: f32[64,96], index: 2, kind: input, shape index: {}]   ;;  %s6177_s3 = inlined_call_operand.hbm [shape: f32[32,96], index: 3, kind: input, shape index: {}]   ;;  %s6178_s4 = inlined_call_operand.vmem [shape: f32[3,96], index: 4, kind: input, shape index: {}]   ;;  %s6179_s5 = inlined_call_operand.vmem [shape: f32[8,32], index: 5, kind: input, shape index: {}]   ;;  %s6180_s6 = inlined_call_operand.hbm [shape: f32[64,64], index: 6, kind: input, shape index: {}]   ;;  %s6181_s7 = inlined_call_operand.hbm [shape: f32[64,96], index: 7, kind: input, shape index: {}]   ;;  %s6182_s8 = inlined_call_operand.hbm [shape: f32[8,2,32], index: 8, kind: output, shape index: {}]  }
   0x1   :  { %14 = vsyncpa [#allocation12], 0 }
   0x2   :  { %15 = vsyncpa [#allocation15], 0 }
   0x3   :  { %16 = vsyncpa [#allocation18], 0 }
   0x4   :  { %17 = vsyncpa [#allocation10], 0  ;;  %s5119_s27 = smov [#allocation11]   ;;  %s4955_s9 = scalar_lea.hbm %s6175_s1, 384 }
   0x5   :  { %s35_s28 = sshll.u32 %s5119_s27, 4  ;;  %p4956_p0 = scmp.ne.s32.totalorder %s6175_s1, %s4955_s9  ;;  %s36_s28 = int_to_ptr.vmem [resolvable:$true] %s35_s28 }
   0x6   :  { %p4959_p1 = scmp.lt.u32.totalorder %s4955_s9, %s6175_s1 }
   0x8   :  { %p4961_p2 = pnand %p4959_p1, %p4956_p0 }
   0xa   :  { %4964 = shalt.err (!%p4961_p2)
}
   0xb   :  { %s4965_s14 = scalar_lea.vmem %s36_s28, 384  ;;  %p4970_p4 = scmp.lt.s32.totalorder %s36_s28, %s36_s28 }
   0xc   :  { %p4966_p3 = scmp.ne.s32.totalorder %s36_s28, %s4965_s14  ;;  %p4971_p5 = scmp.lt.s32.totalorder %s4965_s14, %s4965_s14 }
   0xe   :  { %p4972_p6 = por %p4971_p5, %p4970_p4 }
  0x10   :  { %p4973_p7 = pnand %p4972_p6, %p4966_p3 }
  0x12   :  { %4976 = shalt.err (!%p4973_p7)
}
  0x13   :  { %s5120_s15 = smov 32   ;;  %s5121_s16 = smov 2  }
  0x14   :  { %41 = dma.hbm_to_vmem [thread:$0]  %s6175_s1, 384, %s36_s28, [#allocation12], %s5120_s15, %s5120_s15, %s5121_s16  }
  0x15   :  { %s5122_s19 = smov [#allocation14]   ;;  %s5123_s21 = smov [#allocation8]  }
  0x16   :  { %s59_s20 = sshll.u32 %s5122_s19, 4  ;;  %s23_s22 = sshll.u32 %s5123_s21, 4  ;;  %s60_s20 = int_to_ptr.vmem [resolvable:$true] %s59_s20  ;;  %s24_s22 = int_to_ptr.vmem [resolvable:$true] %s23_s22 }
  0x17   :  { %s4977_s25 = scalar_lea.hbm %s6177_s3, 512 }
  0x18   :  { %p4978_p8 = scmp.ne.s32.totalorder %s6177_s3, %s4977_s25  ;;  %p4981_p9 = scmp.lt.u32.totalorder %s4977_s25, %s6177_s3 }
  0x1a   :  { %p4983_p10 = pnand %p4981_p9, %p4978_p8 }
  0x1c   :  { %4986 = shalt.err (!%p4983_p10)
}
  0x1d   :  { %s4987_s1 = scalar_lea.vmem %s60_s20, 512  ;;  %p4992_p12 = scmp.lt.s32.totalorder %s60_s20, %s60_s20 }
  0x1e   :  { %p4988_p11 = scmp.ne.s32.totalorder %s60_s20, %s4987_s1  ;;  %p4993_p13 = scmp.lt.s32.totalorder %s4987_s1, %s4987_s1 }
  0x20   :  { %p4994_p0 = por %p4993_p13, %p4992_p12 }
  0x22   :  { %p4995_p1 = pnand %p4994_p0, %p4988_p11 }
  0x24   :  { %4998 = shalt.err (!%p4995_p1)
}
  0x25   :  { %s5124_s28 = smov 128   ;;  %s5125_s9 = smov 8  }
  0x26   :  { %65 = dma.hbm_to_vmem [thread:$0]  %s6177_s3, 512, %s60_s20, [#allocation15], %s5124_s28, %s5124_s28, %s5125_s9  }
  0x27   :  { %s4999_s14 = scalar_lea.hbm %s6174_s0, 256 }
  0x28   :  { %p5000_p2 = scmp.ne.s32.totalorder %s6174_s0, %s4999_s14  ;;  %p5003_p3 = scmp.lt.u32.totalorder %s4999_s14, %s6174_s0 }
  0x2a   :  { %p5005_p4 = pnand %p5003_p3, %p5000_p2 }
  0x2c   :  { %5008 = shalt.err (!%p5005_p4)
}
  0x2d   :  { %s5009_s23 = scalar_lea.vmem %s24_s22, 256  ;;  %p5014_p6 = scmp.lt.s32.totalorder %s24_s22, %s24_s22 }
  0x2e   :  { %p5010_p5 = scmp.ne.s32.totalorder %s24_s22, %s5009_s23  ;;  %p5015_p7 = scmp.lt.s32.totalorder %s5009_s23, %s5009_s23 }
  0x30   :  { %p5016_p8 = por %p5015_p7, %p5014_p6 }
  0x32   :  { %p5017_p9 = pnand %p5016_p8, %p5010_p5 }
  0x34   :  { %5020 = shalt.err (!%p5017_p9)
}
  0x35   :  { %29 = dma.hbm_to_vmem [thread:$0]  %s6174_s0, 256, %s24_s22, [#allocation9], %s5120_s15, %s5120_s15, %s5121_s16  }
  0x36   :  { %s5126_s24 = smov [#allocation13]   ;;  %s5127_s26 = smov [#allocation16]  }
  0x37   :  { %s47_s25 = sshll.u32 %s5126_s24, 4  ;;  %s75_s27 = sshll.u32 %s5127_s26, 4  ;;  %s48_s25 = int_to_ptr.vmem [resolvable:$true] %s47_s25  ;;  %s76_s27 = int_to_ptr.vmem [resolvable:$true] %s75_s27 }
  0x38   :  { %s5021_s1 = scalar_lea.hbm %s6176_s2, 1024 }
  0x39   :  { %p5022_p10 = scmp.ne.s32.totalorder %s6176_s2, %s5021_s1  ;;  %p5025_p11 = scmp.lt.u32.totalorder %s5021_s1, %s6176_s2 }
  0x3b   :  { %p5027_p12 = pnand %p5025_p11, %p5022_p10 }
  0x3d   :  { %5030 = shalt.err (!%p5027_p12)
}
  0x3e   :  { %s5031_s0 = scalar_lea.vmem %s48_s25, 1024  ;;  %p5036_p0 = scmp.lt.s32.totalorder %s48_s25, %s48_s25 }
  0x3f   :  { %p5032_p13 = scmp.ne.s32.totalorder %s48_s25, %s5031_s0  ;;  %p5037_p1 = scmp.lt.s32.totalorder %s5031_s0, %s5031_s0 }
  0x41   :  { %p5038_p2 = por %p5037_p1, %p5036_p0 }
  0x43   :  { %p5039_p3 = pnand %p5038_p2, %p5032_p13 }
  0x45   :  { %5042 = shalt.err (!%p5039_p3)
}
  0x46   :  { %53 = dma.hbm_to_vmem [thread:$0]  %s6176_s2, 1024, %s48_s25, [#allocation12], %s5124_s28, %s5124_s28, %s5125_s9  }
  0x47   :  { %s5043_s19 = scalar_lea.hbm %s6180_s6, 1024 }
  0x48   :  { %p5044_p4 = scmp.ne.s32.totalorder %s6180_s6, %s5043_s19  ;;  %p5047_p5 = scmp.lt.u32.totalorder %s5043_s19, %s6180_s6 }
  0x4a   :  { %p5049_p6 = pnand %p5047_p5, %p5044_p4 }
  0x4c   :  { %5052 = shalt.err (!%p5049_p6)
}
  0x4d   :  { %s5053_s24 = scalar_lea.vmem %s76_s27, 1024  ;;  %p5058_p8 = scmp.lt.s32.totalorder %s76_s27, %s76_s27 }
  0x4e   :  { %p5054_p7 = scmp.ne.s32.totalorder %s76_s27, %s5053_s24  ;;  %p5059_p9 = scmp.lt.s32.totalorder %s5053_s24, %s5053_s24 }
  0x50   :  { %p5060_p10 = por %p5059_p9, %p5058_p8 }
  0x52   :  { %p5061_p11 = pnand %p5060_p10, %p5054_p7 }
  0x54   :  { %5064 = shalt.err (!%p5061_p11)
}
  0x55   :  { %81 = dma.hbm_to_vmem [thread:$0]  %s6180_s6, 1024, %s76_s27, [#allocation15], %s5124_s28, %s5124_s28, %s5125_s9  }
  0x56   :  { %s5128_s26 = smov [#allocation17]   ;;  %s5065_s10 = scalar_lea.hbm %s6181_s7, 1024 }
  0x57   :  { %s87_s29 = sshll.u32 %s5128_s26, 4  ;;  %p5066_p12 = scmp.ne.s32.totalorder %s6181_s7, %s5065_s10  ;;  %s88_s29 = int_to_ptr.vmem [resolvable:$true] %s87_s29 }
  0x58   :  { %p5069_p13 = scmp.lt.u32.totalorder %s5065_s10, %s6181_s7 }
  0x5a   :  { %p5071_p0 = pnand %p5069_p13, %p5066_p12 }
  0x5c   :  { %5074 = shalt.err (!%p5071_p0)
}
  0x5d   :  { %s5075_s22 = scalar_lea.vmem %s88_s29, 1024  ;;  %p5080_p2 = scmp.lt.s32.totalorder %s88_s29, %s88_s29 }
  0x5e   :  { %p5076_p1 = scmp.ne.s32.totalorder %s88_s29, %s5075_s22  ;;  %p5081_p3 = scmp.lt.s32.totalorder %s5075_s22, %s5075_s22 }
  0x60   :  { %p5082_p4 = por %p5081_p3, %p5080_p2 }
  0x62   :  { %p5083_p5 = pnand %p5082_p4, %p5076_p1 }
  0x64   :  { %5086 = shalt.err (!%p5083_p5)
}
  0x65   :  { %93 = dma.hbm_to_vmem [thread:$0]  %s6181_s7, 1024, %s88_s29, [#allocation18], %s5124_s28, %s5124_s28, %s5125_s9  }
  0x66   :  { %5109 = dma.done.wait [#allocation9], 256  }
  0x67   :  { %5110 = vsyncadd [#allocation9], 4294967040 }
  0x68   :  { %5111 = dma.done.wait [#allocation12], 1408  }
  0x69   :  { %5112 = vsyncadd [#allocation12], 4294965888 }
  0x6a   :  { %5113 = dma.done.wait [#allocation15], 1536  }
  0x6b   :  { %5114 = vsyncadd [#allocation15], 4294965760 }
  0x6c   :  { %5115 = dma.done.wait [#allocation18], 1024  }
  0x6d   :  { %5116 = vsyncadd [#allocation18], 4294966272  ;;  %v138_v0 = vlaneseq  ;;  %v5129_v1 = vmov 1983009808   ;;  %v5130_v3 = vmov 0.0|0.0   ;;  %v112_v6 = vld [vmem:[#allocation13] sm:$0xff] }
  0x6e   :  { %v157_v2 = vunpack.c.l.s4 %v5129_v1  ;;  %4674 = vmatprep.subr.bf16.mxu0 %v5130_v3  ;;  %v113_v7 = vld [vmem:[#allocation13 + $0x8] sm:$0xff]  ;;  %v114_v8 = vld [vmem:[#allocation13 + $0x10] sm:$0xff]  ;;  %v115_v11 = vld [vmem:[#allocation13 + $0x18] sm:$0xff]  ;;  %vm225_vm0 = vcmask 261120   ;;  %s5131_s7 = smov 96   ;;  %vm5132_vm1 = vmmov 0  }
  0x6f   :  { %v5285_v4 = vshrl.u32 %v138_v0, 7  ;;  %v4680_v10 = vpack.c.bf16 %v113_v7, %v112_v6  ;;  %v5290_v12 = vld [vmem:[#allocation8] sm:$0x3]  ;;  %v5292_v13 = vld [vmem:[#allocation8 + $0x2] sm:$0x3]  ;;  %v4684_v14 = vpack.c.bf16 %v115_v11, %v114_v8  ;;  %v116_v26 = vld [vmem:[#allocation13 + $0x20] sm:$0xff] }
  0x70   :  { %v158_v5 = vunpack.c.0.s8 %v157_v2  ;;  %v5294_v15 = vld [vmem:[#allocation8 + $0x4] sm:$0x3]  ;;  %v5296_v16 = vld [vmem:[#allocation8 + $0x6] sm:$0x3]  ;;  %v423_v17 = vcombine.low %v5290_v12, %v5292_v13  ;;  %v5300_v18 = vld [vmem:[#allocation8 + $0x8] sm:$0x3] }
  0x71   :  { %4681 = vmatprep.subr.bf16.mxu1 %v4680_v10  ;;  %v424_v19 = vcombine.low %v5294_v15, %v5296_v16  ;;  %v5304_v20 = vld [vmem:[#allocation8 + $0xa] sm:$0x3]  ;;  %v5306_v21 = vld [vmem:[#allocation8 + $0xc] sm:$0x3]  ;;  %v5308_v22 = vld [vmem:[#allocation8 + $0xe] sm:$0x3] }
  0x72   :  { %v5288_v9 = vsub.s32 %v158_v5, %v5285_v4  ;;  %4683 = vmatpush3.bf16.msra.mxu1 %v4680_v10  ;;  %v440_v24 = vcombine.low %v5300_v18, %v5304_v20  ;;  %v441_v25 = vcombine.low %v5306_v21, %v5308_v22  ;;  %v117_v27 = vld [vmem:[#allocation13 + $0x28] sm:$0xff]  ;;  %v5315_v28 = vld [vmem:[#allocation13 + $0x30] sm:$0xff]  ;;  %v5320_v32 = vld [vmem:[#allocation13 + $0x38] sm:$0xff]  ;;  %v5133_v38 = vmov 0.0   ;;  %s5134_s14 = smov 88   ;;  %s5136_s17 = smov 72  }
  0x73   :  { %4685 = vmatprep.subr.bf16.mxu1 %v4684_v14  ;;  %v4850_v30 = vpack.i.bf16 %v117_v27, %v116_v26  ;;  %v5318_v31 = vpack.c.bf16 %v117_v27, %v116_v26  ;;  %v4855_v36 = vpack.i.bf16 %v5320_v32, %v5315_v28  ;;  %4453 = vmatprep.mubr.msk.f32.mxu0 %vm5132_vm1, %v5133_v38  ;;  %v126_v39 = vld [vmem:[#allocation11] sm:$0x3]  ;;  %v127_v40 = vld [vmem:[#allocation11 + $0x2] sm:$0x3]  ;;  %v128_v41 = vld [vmem:[#allocation11 + $0x4] sm:$0x3] }
  0x74   :  { %v431_v23 = vrot.slane %v423_v17, %v5288_v9  ;;  %v438_v29 = vrot.slane %v424_v19, %v5288_v9  ;;  %v448_v33 = vrot.slane %v440_v24, %v5288_v9  ;;  %v455_v34 = vrot.slane %v441_v25, %v5288_v9  ;;  %v129_v42 = vld [vmem:[#allocation11 + $0x6] sm:$0x3]  ;;  %v130_v46 = vld [vmem:[#allocation11 + $0x8] sm:$0x3]  ;;  %v131_v49 = vld [vmem:[#allocation11 + $0xa] sm:$0x3] }
  0x75   :  { %4851 = vrot.lane.b32.xlu0 %v4850_v30, %s5131_s7  ;;  %v154_v43 = vcombine.low %v126_v39, %v127_v40  ;;  %v155_v44 = vcombine.low %v128_v41, %v129_v42  ;;  %v132_v50 = vld [vmem:[#allocation11 + $0xc] sm:$0x3]  ;;  %v133_v51 = vld [vmem:[#allocation11 + $0xe] sm:$0x3]  ;;  %v171_v56 = vcombine.low %v130_v46, %v131_v49  ;;  %v134_v58 = vld [vmem:[#allocation11 + $0x10] sm:$0x3] }
  0x76   :  { %v439_v35 = vcombine.low %v431_v23, %v438_v29  ;;  %4687 = vmatpush3.bf16.msra.mxu1 %v4684_v14  ;;  %v456_v37 = vcombine.low %v448_v33, %v455_v34  ;;  %v172_v57 = vcombine.low %v132_v50, %v133_v51  ;;  %v135_v61 = vld [vmem:[#allocation11 + $0x12] sm:$0x3]  ;;  %v136_v62 = vld [vmem:[#allocation11 + $0x14] sm:$0x3]  ;;  %v137_v63 = vld [vmem:[#allocation11 + $0x16] sm:$0x3] }
  0x77   :  { %v162_v53 = vrot.slane %v154_v43, %v5288_v9  ;;  %v169_v54 = vrot.slane %v155_v44, %v5288_v9  ;;  %v179_v2 = vrot.slane %v171_v56, %v5288_v9  ;;  %v188_v6 = vcombine.low %v134_v58, %v135_v61  ;;  %v5347_v17 = vld [vmem:[%s6178_s4] sm:$0x7]  ;;  %s5135_s4 = smov 80   ;;  %s5137_s18 = smov 120  }
  0x78   :  { %4470 = vmatprep.mubr.msk.f32.mxu1 %vm225_vm0, %v439_v35  ;;  %v186_v5 = vrot.slane %v172_v57, %v5288_v9  ;;  %v189_v7 = vcombine.low %v136_v62, %v137_v63  ;;  %v413_v14 = vsub.s32 0, %v5285_v4  ;;  %vm312_vm2 = vcmask 64512   ;;  %s5138_s19 = smov 112   ;;  %s5139_s21 = smov 104  }
  0x79   :  { %4471 = vmatmul.mubr.msk.f32.vlgmr.msra.gmra.mrb[0].mxu1 %vm225_vm0, %v456_v37  ;;  %4856 = vrot.lane.b32.xlu0 %v4855_v36, %s5131_s7  ;;  %v170_v1 = vcombine.low %v162_v53, %v169_v54  ;;  %v196_v10 = vrot.slane %v188_v6, %v5288_v9  ;;  %s5140_s23 = smov 64   ;;  %s5141_s3 = smov 56   ;;  %vm5407_vm3 = vmpackc.low %vm312_vm2, %vm312_vm2  ;;  %vm821_vm4 = vcmask 523264   ;;  %vm2150_vm5 = vcmask 785408  }
  0x7a   :  { %v187_v8 = vcombine.low %v179_v2, %v186_v5  ;;  %v203_v11 = vrot.slane %v189_v7, %v5288_v9  ;;  %v414_v19 = vrot.slane %v5347_v17, %v413_v14  ;;  %s5142_s20 = smov 48   ;;  %s5143_s24 = smov 40   ;;  %vm4210_vm6 = vcmask 254976  }
  0xe7   :  { %v4852_v45 = vpop.permute.xlu0 %4851 }
  0xe8   :  { %v4854_v47 = vunpack.i.h.bf16 %v4852_v45  ;;  %v4853_v48 = vunpack.i.l.bf16 %v4852_v45 }
  0xea   :  { %v4675_v52 = vpack.c.bf16 %v4854_v47, %v4853_v48 }
  0xeb   :  { %v4857_v55 = vpop.permute.xlu0 %4856 }
  0xec   :  { %v4859_v59 = vunpack.i.h.bf16 %v4857_v55  ;;  %v4858_v60 = vunpack.i.l.bf16 %v4857_v55  ;;  %4676 = vmatpush3.bf16.msra.mxu0 %v4675_v52 }
  0xed   :  { %4677 = vmatprep.subr.bf16.mxu0 %v5130_v3  ;;  %v204_v3 = vcombine.low %v196_v10, %v203_v11 }
  0xee   :  { %v4678_v0 = vpack.c.bf16 %v4859_v59, %v4858_v60 }
  0xf0   :  { %4679 = vmatpush3.bf16.msra.mxu0 %v4678_v0 }
  0xf3   :  { %4454 = vmatmul.mubr.msk.f32.vlgmr.msra.gmra.mrb[0].mxu0 %vm225_vm0, %v170_v1 }
  0xf4   :  { %4456 = vmatprep.mubr.msk.f32.mxu0 %vm5132_vm1, %v5133_v38 }
  0xf7   :  { %4457 = vmatmul.mubr.msk.f32.gmra.mrb[2].mxu0 %vm225_vm0, %v187_v8 }
  0xf8   :  { %4459 = vmatprep.mubr.msk.f32.mxu0 %vm5132_vm1, %v5133_v38 }
  0xfb   :  { %4460 = vmatmul.mubr.msk.f32.gmra.mrb[4].mxu0 %vm225_vm0, %v204_v3 }
 0x14c   :  { %v4472_v23 = vpop.f32.mrb[0].mxu1 }
 0x14d   :  { %v5352_v24 = vadd.f32 %v4472_v23, %v414_v19  ;;  %v527_v25 = vpop.f32.mrb[1].mxu1 }
 0x14e   :  { %v5354_v26 = vadd.f32 %v527_v25, %v414_v19 }
 0x14f   :  { %537 = vst.msk [vmem:[#allocation2 + $0x8] sm:$0xff] %vm312_vm2, %v5352_v24 }
 0x150   :  { %572 = vrot.lane.b32.xlu0 %v5354_v26, %s5134_s14  ;;  %564 = vrot.lane.b32.xlu1 %v5354_v26, %s5131_s7  ;;  %536 = vst.msk [vmem:[#allocation2] sm:$0xff] %vm312_vm2, %v5354_v26 }
 0x154   :  { %580 = vrot.lane.b32.xlu0 %v5354_v26, %s5135_s4  ;;  %566 = vrot.lane.b32.xlu1 %v5352_v24, %s5131_s7 }
 0x156   :  { %v637_v8 = vld [vmem:[#allocation2 + $0x8] sm:$0xff] }
 0x157   :  { %v636_v27 = vld [vmem:[#allocation2] sm:$0xff] }
 0x158   :  { %588 = vrot.lane.b32.xlu0 %v5354_v26, %s5136_s17  ;;  %574 = vrot.lane.b32.xlu1 %v5352_v24, %s5134_s14 }
 0x159   :  { %4489 = vmatprep.mubr.msk.f32.mxu0 %vm312_vm2, %v636_v27 }
 0x15c   :  { %540 = vrot.lane.b32.xlu0 %v5354_v26, %s5137_s18  ;;  %582 = vrot.lane.b32.xlu1 %v5352_v24, %s5135_s4 }
 0x160   :  { %548 = vrot.lane.b32.xlu0 %v5354_v26, %s5138_s19  ;;  %590 = vrot.lane.b32.xlu1 %v5352_v24, %s5136_s17 }
 0x164   :  { %556 = vrot.lane.b32.xlu0 %v5354_v26, %s5139_s21  ;;  %542 = vrot.lane.b32.xlu1 %v5352_v24, %s5137_s18 }
 0x168   :  { %598 = vrot.lane.b32.xlu0 %v5352_v24, %s5140_s23  ;;  %550 = vrot.lane.b32.xlu1 %v5352_v24, %s5138_s19 }
 0x16c   :  { %558 = vrot.lane.b32.xlu1 %v5352_v24, %s5139_s21 }
 0x170   :  { %596 = vrot.lane.b32.xlu1 %v5354_v26, %s5140_s23 }
 0x174   :  { %604 = vrot.lane.b32.xlu1 %v5354_v26, %s5141_s3 }
 0x1c2   :  { %v573_v29 = vpop.permute.xlu0 %572  ;;  %v565_v30 = vpop.permute.xlu1 %564 }
 0x1c3   :  { %578 = vst.msk [vmem:[#allocation3 + $0x10] sm:$0xff] %vm312_vm2, %v573_v29  ;;  %570 = vst.msk [vmem:[#allocation3] sm:$0xff] %vm312_vm2, %v565_v30  ;;  %v629_v29 = vld [vmem:[#allocation16 + $0x8] sm:$0xff] }
 0x1c6   :  { %v581_v33 = vpop.permute.xlu0 %580  ;;  %v567_v34 = vpop.permute.xlu1 %566 }
 0x1c7   :  { %586 = vst.msk [vmem:[#allocation3 + $0x20] sm:$0xff] %vm312_vm2, %v581_v33  ;;  %571 = vst.msk [vmem:[#allocation3 + $0x8] sm:$0xff] %vm312_vm2, %v567_v34  ;;  %v5399_v35 = vpop.f32.mrb[0].mxu0 }
 0x1c8   :  { %v4455_v36 = vpop.f32.mrb[1].mxu0 }
 0x1ca   :  { %v589_v37 = vpop.permute.xlu0 %588  ;;  %v575_v38 = vpop.permute.xlu1 %574  ;;  %v644_v43 = vld [vmem:[#allocation3] sm:$0xff]  ;;  %v646_v51 = vld [vmem:[#allocation3 + $0x10] sm:$0xff] }
 0x1cb   :  { %594 = vst.msk [vmem:[#allocation3 + $0x30] sm:$0xff] %vm312_vm2, %v589_v37  ;;  %579 = vst.msk [vmem:[#allocation3 + $0x18] sm:$0xff] %vm312_vm2, %v575_v38  ;;  %v5403_v39 = vpop.f32.mrb[2].mxu0 }
 0x1cc   :  { %v4458_v40 = vpop.f32.mrb[3].mxu0 }
 0x1cd   :  { %v631_v40 = vld [vmem:[#allocation16 + $0x18] sm:$0xff] }
 0x1ce   :  { %v541_v41 = vpop.permute.xlu0 %540  ;;  %v583_v42 = vpop.permute.xlu1 %582  ;;  %v645_v44 = vld [vmem:[#allocation3 + $0x8] sm:$0xff]  ;;  %v648_v57 = vld [vmem:[#allocation3 + $0x20] sm:$0xff] }
 0x1cf   :  { %546 = vst.msk [vmem:[#allocation2 + $0x10] sm:$0xff] %vm312_vm2, %v541_v41  ;;  %587 = vst.msk [vmem:[#allocation3 + $0x28] sm:$0xff] %vm312_vm2, %v583_v42  ;;  %v4688_v46 = vpack.c.bf16 %v645_v44, %v644_v43  ;;  %v5413_v47 = vpop.f32.mrb[4].mxu0 }
 0x1d0   :  { %v4461_v48 = vpop.f32.mrb[5].mxu0 }
 0x1d1   :  { %4690 = vmatprep.subr.msk.bf16.mxu0 %vm5407_vm3, %v4688_v46 }
 0x1d2   :  { %v549_v49 = vpop.permute.xlu0 %548  ;;  %4693 = vmatpush3.bf16.xpose.msk.msra.mxu0 %vm5407_vm3, %v4688_v46  ;;  %v591_v50 = vpop.permute.xlu1 %590  ;;  %v647_v52 = vld [vmem:[#allocation3 + $0x18] sm:$0xff]  ;;  %v650_v63 = vld [vmem:[#allocation3 + $0x30] sm:$0xff] }
 0x1d3   :  { %554 = vst.msk [vmem:[#allocation2 + $0x20] sm:$0xff] %vm312_vm2, %v549_v49  ;;  %595 = vst.msk [vmem:[#allocation3 + $0x38] sm:$0xff] %vm312_vm2, %v591_v50  ;;  %v4694_v53 = vpack.c.bf16 %v647_v52, %v646_v51  ;;  %v630_v49 = vld [vmem:[#allocation16 + $0x10] sm:$0xff] }
 0x1d5   :  { %4696 = vmatprep.subr.msk.bf16.mxu0 %vm5407_vm3, %v4694_v53 }
 0x1d6   :  { %v557_v54 = vpop.permute.xlu0 %556  ;;  %v543_v55 = vpop.permute.xlu1 %542  ;;  %v649_v56 = vld [vmem:[#allocation3 + $0x28] sm:$0xff]  ;;  %v638_v10 = vld [vmem:[#allocation2 + $0x10] sm:$0xff] }
 0x1d7   :  { %562 = vst.msk [vmem:[#allocation2 + $0x30] sm:$0xff] %vm312_vm2, %v557_v54  ;;  %547 = vst.msk [vmem:[#allocation2 + $0x18] sm:$0xff] %vm312_vm2, %v543_v55  ;;  %v4700_v58 = vpack.c.bf16 %v649_v56, %v648_v57  ;;  %v633_v57 = vld [vmem:[#allocation16 + $0x28] sm:$0xff] }
 0x1da   :  { %v599_v59 = vpop.permute.xlu0 %598  ;;  %4699 = vmatpush3.bf16.xpose.msk.msra.mxu0 %vm5407_vm3, %v4694_v53  ;;  %v551_v60 = vpop.permute.xlu1 %550  ;;  %v651_v62 = vld [vmem:[#allocation3 + $0x38] sm:$0xff]  ;;  %v640_v3 = vld [vmem:[#allocation2 + $0x20] sm:$0xff]  ;;  %v632_v53 = vld [vmem:[#allocation16 + $0x20] sm:$0xff] }
 0x1db   :  { %603 = vst.msk [vmem:[#allocation4 + $0x8] sm:$0xff] %vm312_vm2, %v599_v59  ;;  %555 = vst.msk [vmem:[#allocation2 + $0x28] sm:$0xff] %vm312_vm2, %v551_v60  ;;  %4702 = vmatprep.subr.msk.bf16.mxu0 %vm5407_vm3, %v4700_v58  ;;  %v4706_v0 = vpack.c.bf16 %v651_v62, %v650_v63 }
 0x1de   :  { %v559_v61 = vpop.permute.xlu1 %558  ;;  %v639_v11 = vld [vmem:[#allocation2 + $0x18] sm:$0xff]  ;;  %v642_v23 = vld [vmem:[#allocation2 + $0x30] sm:$0xff] }
 0x1df   :  { %563 = vst.msk [vmem:[#allocation2 + $0x38] sm:$0xff] %vm312_vm2, %v559_v61 }
 0x1e2   :  { %4705 = vmatpush3.bf16.xpose.msk.msra.mxu0 %vm5407_vm3, %v4700_v58  ;;  %v597_v1 = vpop.permute.xlu1 %596  ;;  %v935_v6 = vld [vmem:[#allocation4 + $0x8] sm:$0xff] }
 0x1e3   :  { %602 = vst.msk [vmem:[#allocation4] sm:$0xff] %vm312_vm2, %v597_v1  ;;  %4708 = vmatprep.subr.msk.bf16.mxu0 %vm5407_vm3, %v4706_v0  ;;  %v641_v19 = vld [vmem:[#allocation2 + $0x28] sm:$0xff]  ;;  %v635_v1 = vld [vmem:[#allocation16 + $0x38] sm:$0xff] }
 0x1e6   :  { %v605_v2 = vpop.permute.xlu1 %604  ;;  %v643_v25 = vld [vmem:[#allocation2 + $0x38] sm:$0xff] }
 0x1e7   :  { %610 = vst.msk [vmem:[#allocation4 + $0x10] sm:$0xff] %vm312_vm2, %v605_v2 }
 0x1ea   :  { %4711 = vmatpush3.bf16.xpose.msk.msra.mxu0 %vm5407_vm3, %v4706_v0  ;;  %v934_v5 = vld [vmem:[#allocation4] sm:$0xff] }
 0x1eb   :  { %v4712_v7 = vpack.c.bf16 %v935_v6, %v934_v5  ;;  %4729 = vmatprep.subr.bf16.mxu0 %v5318_v31 }
 0x1ed   :  { %4713 = vmatprep.subr.bf16.mxu1 %v4712_v7 }
 0x1ee   :  { %4715 = vmatpush3.bf16.msra.mxu1 %v4712_v7 }
 0x1f1   :  { %4490 = vmatmul.mubr.msk.f32.vlgmr.msra.gmra.mrb[6].mxu0 %vm312_vm2, %v637_v8  ;;  %v634_v8 = vld [vmem:[#allocation16 + $0x30] sm:$0xff] }
 0x1f2   :  { %4492 = vmatprep.mubr.msk.f32.mxu0 %vm312_vm2, %v638_v10  ;;  %4731 = vmatpush3.bf16.msra.mxu0 %v5318_v31  ;;  %v628_v31 = vld [vmem:[#allocation16] sm:$0xff] }
 0x1f5   :  { %4493 = vmatmul.mubr.msk.f32.gmra.mrb[8].mxu0 %vm312_vm2, %v639_v11 }
 0x1f6   :  { %4495 = vmatprep.mubr.msk.f32.mxu0 %vm312_vm2, %v640_v3 }
 0x1f9   :  { %4496 = vmatmul.mubr.msk.f32.gmra.mrb[10].mxu0 %vm312_vm2, %v641_v19 }
 0x1fa   :  { %4498 = vmatprep.mubr.msk.f32.mxu0 %vm312_vm2, %v642_v23 }
 0x1fd   :  { %4499 = vmatmul.mubr.msk.f32.gmra.mrb[12].mxu0 %vm312_vm2, %v643_v25 }
 0x2c4   :  { %v4491_v27 = vpop.f32.mrb[6].mxu0 }
 0x2c5   :  { %v806_v30 = vmul.f32 0.35355338, %v4491_v27  ;;  %v766_v33 = vpop.f32.mrb[7].mxu0 }
 0x2c6   :  { %v805_v34 = vmul.f32 0.35355338, %v766_v33 }
 0x2c7   :  { %v814_v36 = vadd.f32 %v806_v30, %v629_v29 }
 0x2c8   :  { %v4494_v37 = vpop.f32.mrb[8].mxu0  ;;  %v813_v38 = vadd.f32 %v805_v34, %v628_v31 }
 0x2c9   :  { %v808_v41 = vmul.f32 0.35355338, %v4494_v37  ;;  %v776_v42 = vpop.f32.mrb[9].mxu0  ;;  %v825_v43 = vsel %vm821_vm4, %v814_v36, -inf }
 0x2ca   :  { %v807_v44 = vmul.f32 0.35355338, %v776_v42  ;;  %826 = vmax.xlane.f32.xlu1 %v825_v43  ;;  %v822_v46 = vsel %vm821_vm4, %v813_v38, -inf }
 0x2cb   :  { %823 = vmax.xlane.f32.xlu0 %v822_v46  ;;  %v816_v48 = vadd.f32 %v808_v41, %v631_v40 }
 0x2cc   :  { %v4497_v50 = vpop.f32.mrb[10].mxu0  ;;  %v815_v56 = vadd.f32 %v807_v44, %v630_v49 }
 0x2cd   :  { %v786_v51 = vpop.f32.mrb[11].mxu0  ;;  %v831_v52 = vsel %vm821_vm4, %v816_v48, -inf  ;;  %v810_v54 = vmul.f32 0.35355338, %v4497_v50 }
 0x2ce   :  { %v809_v55 = vmul.f32 0.35355338, %v786_v51  ;;  %v828_v62 = vsel %vm821_vm4, %v815_v56, -inf }
 0x2cf   :  { %832 = vmax.xlane.f32.xlu0 %v831_v52  ;;  %v818_v0 = vadd.f32 %v810_v54, %v633_v57 }
 0x2d0   :  { %v4500_v58 = vpop.f32.mrb[12].mxu0  ;;  %v817_v59 = vadd.f32 %v809_v55, %v632_v53 }
 0x2d1   :  { %v796_v60 = vpop.f32.mrb[13].mxu0  ;;  %v812_v61 = vmul.f32 0.35355338, %v4500_v58  ;;  %v837_v2 = vsel %vm821_vm4, %v818_v0, -inf }
 0x2d2   :  { %v834_v63 = vsel %vm821_vm4, %v817_v59, -inf  ;;  %v811_v7 = vmul.f32 0.35355338, %v796_v60 }
 0x2d3   :  { %829 = vmax.xlane.f32.xlu0 %v828_v62  ;;  %835 = vmax.xlane.f32.xlu1 %v834_v63  ;;  %v5455_v5 = vadd.f32 %v812_v61, %v635_v1  ;;  %v936_v62 = vld [vmem:[#allocation4 + $0x10] sm:$0xff] }
 0x2d4   :  { %v5462_v10 = vadd.f32 %v811_v7, %v634_v8 }
 0x2d5   :  { %v843_v6 = vsel %vm821_vm4, %v5455_v5, -inf }
 0x2d6   :  { %v840_v11 = vsel %vm821_vm4, %v5462_v10, -inf }
 0x2d7   :  { %838 = vmax.xlane.f32.xlu0 %v837_v2 }
 0x2db   :  { %844 = vmax.xlane.f32.xlu0 %v843_v6 }
 0x2e4   :  { %612 = vrot.lane.b32.xlu1 %v5354_v26, %s5142_s20 }
 0x2f1   :  { %606 = vrot.lane.b32.xlu0 %v5352_v24, %s5141_s3 }
 0x308   :  { %841 = vmax.xlane.f32.xlu1 %v840_v11 }
 0x319   :  { %614 = vrot.lane.b32.xlu1 %v5352_v24, %s5142_s20 }
 0x357   :  { %v827_v3 = vpop.xlane.xlu1 %826 }
 0x358   :  { %v847_v19 = vsub.f32 %v814_v36, %v827_v3  ;;  %v824_v23 = vpop.xlane.xlu0 %823 }
 0x359   :  { %v846_v25 = vsub.f32 %v813_v38, %v824_v23 }
 0x35a   :  { %v856_v27 = vmul.f32 1.442695, %v847_v19 }
 0x35b   :  { %v854_v29 = vmul.f32 1.442695, %v846_v25 }
 0x35c   :  { %4870 = vpow2.f32 %v856_v27  ;;  %v833_v30 = vpop.xlane.xlu0 %832 }
 0x35d   :  { %4872 = vpow2.f32 %v854_v29  ;;  %v849_v33 = vsub.f32 %v816_v48, %v833_v30 }
 0x35f   :  { %v860_v31 = vmul.f32 1.442695, %v849_v33 }
 0x360   :  { %v830_v34 = vpop.xlane.xlu0 %829  ;;  %v836_v37 = vpop.xlane.xlu1 %835 }
 0x361   :  { %4874 = vpow2.f32 %v860_v31  ;;  %v848_v40 = vsub.f32 %v815_v56, %v830_v34  ;;  %v850_v41 = vsub.f32 %v817_v59, %v836_v37 }
 0x363   :  { %v858_v42 = vmul.f32 1.442695, %v848_v40  ;;  %v862_v43 = vmul.f32 1.442695, %v850_v41 }
 0x364   :  { %v839_v44 = vpop.xlane.xlu0 %838  ;;  %v613_v46 = vpop.permute.xlu1 %612 }
 0x365   :  { %4876 = vpow2.f32 %v858_v42  ;;  %v851_v36 = vsub.f32 %v818_v0, %v839_v44  ;;  %618 = vst.msk [vmem:[#allocation4 + $0x20] sm:$0xff] %vm312_vm2, %v613_v46 }
 0x366   :  { %v5468_v38 = vpop.eup %4870  ;;  %4878 = vpow2.f32 %v862_v43 }
 0x367   :  { %v5470_v49 = vpop.eup %4872  ;;  %v864_v48 = vmul.f32 1.442695, %v851_v36  ;;  %v873_v50 = vsel %vm821_vm4, %v5468_v38, 0.0 }
 0x368   :  { %874 = vadd.xlane.f32.xlu0 %v873_v50  ;;  %v845_v51 = vpop.xlane.xlu0 %844  ;;  %v870_v52 = vsel %vm821_vm4, %v5470_v49, 0.0 }
 0x369   :  { %4880 = vpow2.f32 %v864_v48  ;;  %871 = vadd.xlane.f32.xlu1 %v870_v52  ;;  %v853_v1 = vsub.f32 %v5455_v5, %v845_v51 }
 0x36b   :  { %v5476_v53 = vpop.eup %4874  ;;  %v868_v7 = vmul.f32 1.442695, %v853_v1 }
 0x36c   :  { %v607_v54 = vpop.permute.xlu0 %606  ;;  %v879_v55 = vsel %vm821_vm4, %v5476_v53, 0.0  ;;  %v938_v3 = vld [vmem:[#allocation4 + $0x20] sm:$0xff] }
 0x36d   :  { %611 = vst.msk [vmem:[#allocation4 + $0x18] sm:$0xff] %vm312_vm2, %v607_v54  ;;  %880 = vadd.xlane.f32.xlu0 %v879_v55 }
 0x36f   :  { %v5481_v56 = vpop.eup %4876 }
 0x370   :  { %v5483_v57 = vpop.eup %4878  ;;  %v876_v58 = vsel %vm821_vm4, %v5481_v56, 0.0 }
 0x371   :  { %v882_v59 = vsel %vm821_vm4, %v5483_v57, 0.0  ;;  %877 = vadd.xlane.f32.xlu1 %v876_v58 }
 0x372   :  { %883 = vadd.xlane.f32.xlu0 %v882_v59 }
 0x373   :  { %v5489_v60 = vpop.eup %4880 }
 0x374   :  { %v885_v61 = vsel %vm821_vm4, %v5489_v60, 0.0  ;;  %v937_v63 = vld [vmem:[#allocation4 + $0x18] sm:$0xff] }
 0x375   :  { %886 = vadd.xlane.f32.xlu1 %v885_v61  ;;  %v4716_v0 = vpack.c.bf16 %v937_v63, %v936_v62 }
 0x377   :  { %4717 = vmatprep.subr.bf16.mxu1 %v4716_v0 }
 0x378   :  { %4719 = vmatpush3.bf16.msra.mxu1 %v4716_v0 }
 0x386   :  { %622 = vrot.lane.b32.xlu1 %v5352_v24, %s5143_s24 }
 0x388   :  { %620 = vrot.lane.b32.xlu0 %v5354_v26, %s5143_s24 }
 0x395   :  { %v842_v2 = vpop.xlane.xlu1 %841 }
 0x396   :  { %v852_v6 = vsub.f32 %v5462_v10, %v842_v2 }
 0x398   :  { %v866_v8 = vmul.f32 1.442695, %v852_v6 }
 0x399   :  { %v615_v11 = vpop.permute.xlu1 %614 }
 0x39a   :  { %4882 = vpow2.f32 %v866_v8  ;;  %619 = vst.msk [vmem:[#allocation4 + $0x28] sm:$0xff] %vm312_vm2, %v615_v11 }
 0x39b   :  { %4884 = vpow2.f32 %v868_v7 }
 0x3a1   :  { %v939_v19 = vld [vmem:[#allocation4 + $0x28] sm:$0xff] }
 0x3a2   :  { %v4720_v23 = vpack.c.bf16 %v939_v19, %v938_v3 }
 0x3a4   :  { %v5498_v25 = vpop.eup %4882  ;;  %4721 = vmatprep.subr.bf16.mxu1 %v4720_v23 }
 0x3a5   :  { %4723 = vmatpush3.bf16.msra.mxu1 %v4720_v23  ;;  %v888_v24 = vsel %vm821_vm4, %v5498_v25, 0.0  ;;  %v5502_v26 = vpop.eup %4884 }
 0x3a6   :  { %v891_v5 = vsel %vm821_vm4, %v5502_v26, 0.0 }
 0x3a7   :  { %889 = vadd.xlane.f32.xlu0 %v888_v24 }
 0x3aa   :  { %892 = vadd.xlane.f32.xlu1 %v891_v5 }
 0x3f5   :  { %v875_v10 = vpop.xlane.xlu0 %874 }
 0x3f6   :  { %v872_v27 = vpop.xlane.xlu1 %871 }
 0x3f7   :  { %4886 = vrcp.f32 %v872_v27 }
 0x3f8   :  { %4888 = vrcp.f32 %v875_v10 }
 0x3fa   :  { %v881_v29 = vpop.xlane.xlu0 %880 }
 0x3fb   :  { %4890 = vrcp.f32 %v881_v29 }
 0x3fe   :  { %v878_v30 = vpop.xlane.xlu1 %877 }
 0x3ff   :  { %v884_v33 = vpop.xlane.xlu0 %883  ;;  %4892 = vrcp.f32 %v878_v30 }
 0x400   :  { %4894 = vrcp.f32 %v884_v33 }
 0x401   :  { %v4887_v31 = vpop.eup %4886 }
 0x402   :  { %v902_v34 = vmul.f32 %v4887_v31, %v872_v27  ;;  %v887_v37 = vpop.xlane.xlu1 %886  ;;  %v4889_v41 = vpop.eup %4888 }
 0x403   :  { %v621_v40 = vpop.permute.xlu0 %620  ;;  %4896 = vrcp.f32 %v887_v37  ;;  %v903_v46 = vmul.f32 %v4889_v41, %v875_v10 }
 0x404   :  { %v910_v42 = vsub.f32 2.0, %v902_v34  ;;  %626 = vst.msk [vmem:[#allocation4 + $0x30] sm:$0xff] %vm312_vm2, %v621_v40 }
 0x405   :  { %v4891_v36 = vpop.eup %4890  ;;  %v911_v54 = vsub.f32 2.0, %v903_v46 }
 0x406   :  { %v918_v43 = vmul.f32 %v4887_v31, %v910_v42  ;;  %v623_v44 = vpop.permute.xlu1 %622  ;;  %v905_v55 = vmul.f32 %v4891_v36, %v881_v29  ;;  %v5528_v42 = vld [vmem:[#allocation14 + $0x8] sm:$0xff] }
 0x407   :  { %627 = vst.msk [vmem:[#allocation4 + $0x38] sm:$0xff] %vm312_vm2, %v623_v44  ;;  %v919_v0 = vmul.f32 %v4889_v41, %v911_v54  ;;  %v5524_v41 = vld [vmem:[#allocation14] sm:$0xff]  ;;  %v1154_v54 = vsub.s32 2, %v5285_v4 }
 0x408   :  { %v926_v48 = vmul.f32 %v5470_v49, %v918_v43  ;;  %v913_v1 = vsub.f32 2.0, %v905_v55 }
 0x409   :  { %v4893_v50 = vpop.eup %4892  ;;  %v927_v49 = vmul.f32 %v5468_v38, %v919_v0  ;;  %v5552_v55 = vrot.slane %v5347_v17, %v1154_v54 }
 0x40a   :  { %v4895_v51 = vpop.eup %4894  ;;  %v904_v52 = vmul.f32 %v4893_v50, %v878_v30  ;;  %4517 = vmatprep.mubr.msk.f32.mxu1 %vm821_vm4, %v926_v48  ;;  %v921_v11 = vmul.f32 %v4891_v36, %v913_v1 }
 0x40b   :  { %v906_v58 = vmul.f32 %v4895_v51, %v884_v33  ;;  %v940_v62 = vld [vmem:[#allocation4 + $0x30] sm:$0xff] }
 0x40c   :  { %v912_v59 = vsub.f32 2.0, %v904_v52  ;;  %v929_v24 = vmul.f32 %v5476_v53, %v921_v11 }
 0x40d   :  { %v4897_v61 = vpop.eup %4896  ;;  %v914_v7 = vsub.f32 2.0, %v906_v58 }
 0x40e   :  { %v941_v63 = vld [vmem:[#allocation4 + $0x38] sm:$0xff]  ;;  %v907_v2 = vmul.f32 %v4897_v61, %v887_v37  ;;  %v920_v8 = vmul.f32 %v4893_v50, %v912_v59  ;;  %v5538_v50 = vld [vmem:[#allocation14 + $0x18] sm:$0xff] }
 0x40f   :  { %v4724_v6 = vpack.c.bf16 %v941_v63, %v940_v62  ;;  %v922_v19 = vmul.f32 %v4895_v51, %v914_v7 }
 0x410   :  { %v915_v3 = vsub.f32 2.0, %v907_v2  ;;  %v928_v23 = vmul.f32 %v5481_v56, %v920_v8 }
 0x411   :  { %4725 = vmatprep.subr.bf16.mxu1 %v4724_v6  ;;  %v930_v10 = vmul.f32 %v5483_v57, %v922_v19 }
 0x412   :  { %4727 = vmatpush3.bf16.msra.mxu1 %v4724_v6  ;;  %v923_v5 = vmul.f32 %v4897_v61, %v915_v3 }
 0x413   :  { %4529 = vmatprep.subr.mxu1 %v5524_v41 }
 0x414   :  { %v931_v38 = vmul.f32 %v5489_v60, %v923_v5 }
 0x415   :  { %4518 = vmatmul.mubr.msk.f32.vlgmr.msra.gmra.mrb[2].mxu1 %vm821_vm4, %v927_v49 }
 0x416   :  { %4520 = vmatprep.mubr.msk.f32.mxu1 %vm821_vm4, %v928_v23  ;;  %4530 = vmatpush3.msra.mxu1 %v5524_v41 }
 0x417   :  { %4534 = vmatprep.subr.mxu1 %v5528_v42 }
 0x419   :  { %4521 = vmatmul.mubr.msk.f32.gmra.mrb[4].mxu1 %vm821_vm4, %v929_v24 }
 0x41a   :  { %4523 = vmatprep.mubr.msk.f32.mxu1 %vm821_vm4, %v930_v10 }
 0x41d   :  { %4524 = vmatmul.mubr.msk.f32.gmra.mrb[6].mxu1 %vm821_vm4, %v931_v38 }
 0x434   :  { %v890_v27 = vpop.xlane.xlu0 %889 }
 0x435   :  { %4898 = vrcp.f32 %v890_v27 }
 0x437   :  { %v893_v56 = vpop.xlane.xlu1 %892 }
 0x438   :  { %4900 = vrcp.f32 %v893_v56 }
 0x43f   :  { %v4899_v29 = vpop.eup %4898 }
 0x440   :  { %v908_v30 = vmul.f32 %v4899_v29, %v890_v27 }
 0x442   :  { %v4901_v33 = vpop.eup %4900  ;;  %v916_v31 = vsub.f32 2.0, %v908_v30 }
 0x443   :  { %v909_v53 = vmul.f32 %v4901_v33, %v893_v56 }
 0x444   :  { %v924_v34 = vmul.f32 %v4899_v29, %v916_v31 }
 0x445   :  { %v917_v37 = vsub.f32 2.0, %v909_v53 }
 0x446   :  { %v932_v57 = vmul.f32 %v5498_v25, %v924_v34  ;;  %v5532_v25 = vld [vmem:[#allocation14 + $0x10] sm:$0xff] }
 0x447   :  { %v925_v40 = vmul.f32 %v4901_v33, %v917_v37  ;;  %v5145_v37 = vmov 842150450  }
 0x448   :  { %4526 = vmatprep.mubr.msk.f32.mxu1 %vm821_vm4, %v932_v57  ;;  %v1522_v57 = vunpack.c.l.s4 %v5145_v37 }
 0x449   :  { %v933_v60 = vmul.f32 %v5502_v26, %v925_v40  ;;  %v5146_v40 = vmov 1414812756  }
 0x44b   :  { %4527 = vmatmul.mubr.msk.f32.gmra.mrb[8].mxu1 %vm821_vm4, %v933_v60  ;;  %v1529_v60 = vunpack.c.l.s4 %v5146_v40 }
 0x4e8   :  { %v4519_v43 = vpop.f32.mrb[2].mxu1 }
 0x4e9   :  { %v1032_v44 = vpop.f32.mrb[3].mxu1 }
 0x4ea   :  { %4531 = vmatprep.mubr.msk.f32.mxu1 %vm312_vm2, %v1032_v44 }
 0x4eb   :  { %4532 = vmatmul.mubr.msk.f32.vlgmr.msra.gmra.mrb[10].mxu1 %vm312_vm2, %v4519_v43  ;;  %v5147_v43 = vmov 1987475062  }
 0x4ec   :  { %v4522_v26 = vpop.f32.mrb[4].mxu1  ;;  %4535 = vmatpush3.msra.mxu1 %v5528_v42  ;;  %v1536_v44 = vunpack.c.l.s4 %v5147_v43 }
 0x4ed   :  { %v1042_v46 = vpop.f32.mrb[5].mxu1  ;;  %4539 = vmatprep.subr.mxu1 %v5532_v25 }
 0x4ee   :  { %4536 = vmatprep.mubr.msk.f32.mxu1 %vm312_vm2, %v1042_v46  ;;  %v1523_v46 = vunpack.c.0.s8 %v1522_v57 }
 0x4f0   :  { %v4525_v36 = vpop.f32.mrb[6].mxu1 }
 0x4f1   :  { %v1052_v48 = vpop.f32.mrb[7].mxu1 }
 0x4f3   :  { %4537 = vmatmul.mubr.msk.f32.vlgmr.msra.gmra.mrb[10].mxu1 %vm312_vm2, %v4522_v26 }
 0x4f4   :  { %4541 = vmatprep.mubr.msk.f32.mxu1 %vm312_vm2, %v1052_v48  ;;  %4540 = vmatpush3.msra.mxu1 %v5532_v25  ;;  %v1537_v48 = vunpack.c.0.s8 %v1536_v44 }
 0x4f5   :  { %4544 = vmatprep.subr.mxu1 %v5538_v50 }
 0x4fb   :  { %4542 = vmatmul.mubr.msk.f32.vlgmr.msra.gmra.mrb[10].mxu1 %vm312_vm2, %v4525_v36  ;;  %v1530_v36 = vunpack.c.0.s8 %v1529_v60 }
 0x4fc   :  { %4545 = vmatpush3.msra.mxu1 %v5538_v50 }
 0x51e   :  { %v4528_v51 = vpop.f32.mrb[8].mxu1 }
 0x51f   :  { %v1062_v52 = vpop.f32.mrb[9].mxu1 }
 0x520   :  { %4546 = vmatprep.mubr.msk.f32.mxu1 %vm312_vm2, %v1062_v52  ;;  %v5578_v52 = vsub.s32 %v1523_v46, %v5285_v4 }
 0x521   :  { %4547 = vmatmul.mubr.msk.f32.vlgmr.msra.gmra.mrb[10].mxu1 %vm312_vm2, %v4528_v51 }
 0x5f4   :  { %v4548_v58 = vpop.f32.mrb[10].mxu1 }
 0x5f5   :  { %v4812_v59 = vadd.f32 %v4548_v58, %v5552_v55  ;;  %v1396_v61 = vpop.f32.mrb[11].mxu1  ;;  %v5581_v58 = vsub.s32 %v1530_v36, %v5285_v4  ;;  %v4732_v36 = vpack.c.bf16 %v5320_v32, %v5315_v28 }
 0x5f6   :  { %v4813_v62 = vadd.f32 %v1396_v61, %v5552_v55 }
 0x5f7   :  { %v1426_v63 = vcombine.high %v4812_v59, %v4812_v59  ;;  %v1433_v0 = vrot.slane %v4812_v59, %v5288_v9  ;;  %v5584_v59 = vsub.s32 %v1537_v48, %v5285_v4  ;;  %4733 = vmatprep.subr.bf16.mxu0 %v4732_v36 }
 0x5f8   :  { %v1409_v1 = vcombine.high %v4813_v62, %v4813_v62  ;;  %v1416_v2 = vrot.slane %v4813_v62, %v5288_v9  ;;  %4735 = vmatpush3.bf16.msra.mxu0 %v4732_v36 }
 0x5f9   :  { %v1440_v6 = vrot.slane %v1426_v63, %v5288_v9  ;;  %v1441_v7 = vcombine.high %v1433_v0, %v1433_v0  ;;  %v1455_v38 = vadd.f32 %v1433_v0, %v5300_v18 }
 0x5fa   :  { %v1423_v8 = vrot.slane %v1409_v1, %v5288_v9  ;;  %v1424_v49 = vcombine.high %v1416_v2, %v1416_v2  ;;  %v1451_v23 = vadd.f32 %v1416_v2, %v5290_v12 }
 0x5fb   :  { %v1442_v11 = vcombine.high %v1440_v6, %v1440_v6  ;;  %v1456_v3 = vadd.f32 %v1441_v7, %v5304_v20  ;;  %v1457_v5 = vadd.f32 %v1440_v6, %v5306_v21 }
 0x5fc   :  { %v1425_v19 = vcombine.high %v1423_v8, %v1423_v8  ;;  %v1452_v24 = vadd.f32 %v1424_v49, %v5292_v13  ;;  %v1453_v27 = vadd.f32 %v1423_v8, %v5294_v15 }
 0x5fd   :  { %v1458_v10 = vadd.f32 %v1442_v11, %v5308_v22  ;;  %v1484_v31 = vcombine.low %v1455_v38, %v1456_v3 }
 0x5fe   :  { %v1454_v56 = vadd.f32 %v1425_v19, %v5296_v16  ;;  %v1467_v29 = vcombine.low %v1451_v23, %v1452_v24  ;;  %v5144_v16 = vmov 269488144  }
 0x5ff   :  { %v1485_v30 = vcombine.low %v1457_v5, %v1458_v10  ;;  %v1492_v21 = vrot.slane %v1484_v31, %v5288_v9  ;;  %v1515_v34 = vunpack.c.l.s4 %v5144_v16 }
 0x600   :  { %v1468_v33 = vcombine.low %v1453_v27, %v1454_v56  ;;  %v1475_v20 = vrot.slane %v1467_v29, %v5288_v9 }
 0x601   :  { %v1499_v13 = vrot.slane %v1485_v30, %v5288_v9  ;;  %v1516_v26 = vunpack.c.0.s8 %v1515_v34 }
 0x602   :  { %v1482_v12 = vrot.slane %v1468_v33, %v5288_v9 }
 0x603   :  { %v1500_v18 = vcombine.low %v1492_v21, %v1499_v13  ;;  %v5575_v51 = vsub.s32 %v1516_v26, %v5285_v4  ;;  %v140_v26 = vsub.s32 1, %v5285_v4 }
 0x604   :  { %v1483_v53 = vcombine.low %v1475_v20, %v1482_v12 }
 0x605   :  { %v1506_v15 = vsel %vm225_vm0, %v1500_v18, 0.0  ;;  %v5636_v46 = vrot.slane %v5347_v17, %v140_v26 }
 0x606   :  { %v1503_v22 = vsel %vm225_vm0, %v1483_v53, 0.0 }
 0x607   :  { %1504 = vadd.xlane.f32.xlu0 %v1503_v22 }
 0x60b   :  { %1507 = vadd.xlane.f32.xlu0 %v1506_v15 }
 0x694   :  { %v1505_v61 = vpop.xlane.xlu0 %1504 }
 0x695   :  { %v1510_v62 = vmul.f32 0.03125, %v1505_v61  ;;  %v1760_v61 = vsub.s32 4, %v5285_v4 }
 0x697   :  { %v1520_v63 = vrot.slane %v1510_v62, %v5575_v51  ;;  %v1527_v0 = vrot.slane %v1510_v62, %v5578_v52  ;;  %v1534_v1 = vrot.slane %v1510_v62, %v5581_v58  ;;  %v1541_v2 = vrot.slane %v1510_v62, %v5584_v59  ;;  %v125_v62 = vld [vmem:[%s6179_s5] sm:$0xff] }
 0x698   :  { %v1508_v6 = vpop.xlane.xlu0 %1507  ;;  %v1727_v17 = vrot.slane %v125_v62, %v413_v14 }
 0x699   :  { %v1511_v7 = vmul.f32 0.03125, %v1508_v6  ;;  %v5590_v8 = vsub.f32 %v1451_v23, %v1520_v63  ;;  %v5592_v49 = vsub.f32 %v1452_v24, %v1527_v0  ;;  %v5594_v11 = vsub.f32 %v1453_v27, %v1534_v1 }
 0x69a   :  { %v5596_v19 = vsub.f32 %v1454_v56, %v1541_v2  ;;  %v1729_v14 = vcombine.high %v1727_v17, %v1727_v17 }
 0x69b   :  { %v1548_v29 = vrot.slane %v1511_v7, %v5575_v51  ;;  %v1555_v30 = vrot.slane %v1511_v7, %v5578_v52  ;;  %v1562_v33 = vrot.slane %v1511_v7, %v5581_v58  ;;  %v1569_v31 = vrot.slane %v1511_v7, %v5584_v59 }
 0x69c   :  { %v1586_v20 = vmul.f32 %v5590_v8, %v5590_v8  ;;  %v1587_v23 = vmul.f32 %v5592_v49, %v5592_v49  ;;  %v1588_v24 = vmul.f32 %v5594_v11, %v5594_v11  ;;  %v1589_v27 = vmul.f32 %v5596_v19, %v5596_v19 }
 0x69d   :  { %v5610_v56 = vsub.f32 %v1455_v38, %v1548_v29  ;;  %v5612_v12 = vsub.f32 %v1456_v3, %v1555_v30  ;;  %v5614_v13 = vsub.f32 %v1457_v5, %v1562_v33  ;;  %v5616_v53 = vsub.f32 %v1458_v10, %v1569_v31 }
 0x69e   :  { %v1602_v21 = vcombine.low %v1586_v20, %v1587_v23  ;;  %v1603_v22 = vcombine.low %v1588_v24, %v1589_v27  ;;  %v1761_v7 = vrot.slane %v125_v62, %v1760_v61 }
 0x69f   :  { %v1590_v18 = vmul.f32 %v5610_v56, %v5610_v56  ;;  %v1591_v15 = vmul.f32 %v5612_v12, %v5612_v12  ;;  %v1592_v16 = vmul.f32 %v5614_v13, %v5614_v13  ;;  %v1593_v38 = vmul.f32 %v5616_v53, %v5616_v53 }
 0x6a0   :  { %v1610_v3 = vrot.slane %v1602_v21, %v5288_v9  ;;  %v1617_v5 = vrot.slane %v1603_v22, %v5288_v9  ;;  %v1770_v33 = vrot.slane %v1761_v7, %v5288_v9 }
 0x6a1   :  { %v1619_v10 = vcombine.low %v1590_v18, %v1591_v15  ;;  %v1620_v34 = vcombine.low %v1592_v16, %v1593_v38 }
 0x6a2   :  { %v1618_v37 = vcombine.low %v1610_v3, %v1617_v5  ;;  %v1778_v3 = vcombine.high %v1770_v33, %v1770_v33 }
 0x6a3   :  { %v1627_v57 = vrot.slane %v1619_v10, %v5288_v9  ;;  %v1634_v40 = vrot.slane %v1620_v34, %v5288_v9 }
 0x6a4   :  { %v1638_v60 = vsel %vm225_vm0, %v1618_v37, 0.0 }
 0x6a5   :  { %1639 = vadd.xlane.f32.xlu1 %v1638_v60  ;;  %v1635_v43 = vcombine.low %v1627_v57, %v1634_v40 }
 0x6a7   :  { %v1641_v44 = vsel %vm225_vm0, %v1635_v43, 0.0 }
 0x6a8   :  { %1642 = vadd.xlane.f32.xlu0 %v1641_v44 }
 0x6b6   :  { %222 = vrot.lane.b32.xlu1 %v5636_v46, %s5131_s7 }
 0x732   :  { %v1640_v48 = vpop.xlane.xlu1 %1639 }
 0x733   :  { %v1644_v63 = vmul.f32 0.03125, %v1640_v48 }
 0x735   :  { %v1646_v0 = vadd.f32 1e-05, %v1644_v63  ;;  %v1643_v1 = vpop.xlane.xlu0 %1642 }
 0x736   :  { %v223_v2 = vpop.permute.xlu1 %222  ;;  %v1645_v6 = vmul.f32 0.03125, %v1643_v1 }
 0x737   :  { %4902 = vrsqrt.f32 %v1646_v0  ;;  %v5649_v28 = vadd.f32 %v5399_v35, %v223_v2  ;;  %v5652_v32 = vadd.f32 %v5403_v39, %v223_v2  ;;  %v5655_v29 = vadd.f32 %v5413_v47, %v223_v2 }
 0x738   :  { %v1647_v30 = vadd.f32 1e-05, %v1645_v6  ;;  %v1763_v35 = vcombine.high %v1761_v7, %v1761_v7  ;;  %v1736_v39 = vrot.slane %v1727_v17, %v5288_v9  ;;  %v1743_v47 = vrot.slane %v1729_v14, %v5288_v9 }
 0x739   :  { %313 = vst.msk [vmem:[#allocation6] sm:$0xff] %vm312_vm2, %v5649_v28  ;;  %314 = vst.msk [vmem:[#allocation6 + $0x8] sm:$0xff] %vm312_vm2, %v5652_v32  ;;  %321 = vrot.lane.b32.xlu1 %v5652_v32, %s5137_s18  ;;  %319 = vrot.lane.b32.xlu0 %v5649_v28, %s5137_s18 }
 0x73a   :  { %315 = vst.msk [vmem:[#allocation6 + $0x10] sm:$0xff] %vm312_vm2, %v5655_v29  ;;  %4904 = vrsqrt.f32 %v1647_v30  ;;  %v1777_v31 = vrot.slane %v1763_v35, %v5288_v9  ;;  %v1744_v27 = vcombine.high %v1736_v39, %v1736_v39  ;;  %v1745_v38 = vcombine.high %v1743_v47, %v1743_v47 }
 0x73c   :  { %v1779_v5 = vcombine.high %v1777_v31, %v1777_v31 }
 0x73d   :  { %323 = vrot.lane.b32.xlu1 %v5655_v29, %s5137_s18  ;;  %331 = vrot.lane.b32.xlu0 %v5649_v28, %s5138_s19 }
 0x740   :  { %v1957_v20 = vld [vmem:[#allocation6] sm:$0xff]  ;;  %v1958_v23 = vld [vmem:[#allocation6 + $0x8] sm:$0xff] }
 0x741   :  { %v4903_v24 = vpop.eup %4902  ;;  %333 = vrot.lane.b32.xlu1 %v5652_v32, %s5138_s19  ;;  %335 = vrot.lane.b32.xlu0 %v5655_v29, %s5138_s19  ;;  %v4736_v21 = vpack.c.bf16 %v1958_v23, %v1957_v20 }
 0x742   :  { %v1658_v22 = vrot.slane %v4903_v24, %v5575_v51  ;;  %v1665_v18 = vrot.slane %v4903_v24, %v5578_v52  ;;  %v1672_v15 = vrot.slane %v4903_v24, %v5581_v58  ;;  %v1679_v16 = vrot.slane %v4903_v24, %v5584_v59 }
 0x743   :  { %4738 = vmatprep.subr.msk.bf16.mxu1 %vm5407_vm3, %v4736_v21 }
 0x744   :  { %v4905_v10 = vpop.eup %4904  ;;  %4741 = vmatpush3.bf16.xpose.msk.msra.mxu1 %vm5407_vm3, %v4736_v21  ;;  %v1716_v34 = vmul.f32 %v1658_v22, %v5590_v8  ;;  %v1717_v37 = vmul.f32 %v1665_v18, %v5592_v49  ;;  %v1718_v57 = vmul.f32 %v1672_v15, %v5594_v11  ;;  %v1719_v40 = vmul.f32 %v1679_v16, %v5596_v19 }
 0x745   :  { %343 = vrot.lane.b32.xlu1 %v5649_v28, %s5139_s21  ;;  %345 = vrot.lane.b32.xlu0 %v5652_v32, %s5139_s21  ;;  %v1686_v60 = vrot.slane %v4905_v10, %v5575_v51  ;;  %v1693_v43 = vrot.slane %v4905_v10, %v5578_v52  ;;  %v1700_v44 = vrot.slane %v4905_v10, %v5581_v58 }
 0x746   :  { %v1707_v8 = vrot.slane %v4905_v10, %v5584_v59  ;;  %v1750_v36 = vmul.f32 %v1736_v39, %v1716_v34  ;;  %v1751_v49 = vmul.f32 %v1744_v27, %v1717_v37  ;;  %v1752_v48 = vmul.f32 %v1743_v47, %v1718_v57 }
 0x747   :  { %v1720_v11 = vmul.f32 %v1686_v60, %v5610_v56  ;;  %v1721_v19 = vmul.f32 %v1693_v43, %v5612_v12  ;;  %v1722_v61 = vmul.f32 %v1700_v44, %v5614_v13  ;;  %v1753_v62 = vmul.f32 %v1745_v38, %v1719_v40 }
 0x748   :  { %v1723_v63 = vmul.f32 %v1707_v8, %v5616_v53  ;;  %v5703_v0 = vadd.f32 %v1770_v33, %v1750_v36  ;;  %v5705_v1 = vadd.f32 %v1778_v3, %v1751_v49  ;;  %v5707_v17 = vadd.f32 %v1777_v31, %v1752_v48 }
 0x749   :  { %347 = vrot.lane.b32.xlu1 %v5655_v29, %s5139_s21  ;;  %v1754_v2 = vmul.f32 %v1736_v39, %v1720_v11  ;;  %v1755_v6 = vmul.f32 %v1744_v27, %v1721_v19  ;;  %v1756_v7 = vmul.f32 %v1743_v47, %v1722_v61  ;;  %v5711_v56 = vadd.f32 %v1779_v5, %v1753_v62 }
 0x74a   :  { %v1757_v12 = vmul.f32 %v1745_v38, %v1723_v63  ;;  %v1800_v13 = vcombine.low %v5703_v0, %v5705_v1 }
 0x74b   :  { %v5715_v30 = vadd.f32 %v1770_v33, %v1754_v2  ;;  %v5717_v53 = vadd.f32 %v1778_v3, %v1755_v6  ;;  %v5719_v14 = vadd.f32 %v1777_v31, %v1756_v7  ;;  %v1801_v35 = vcombine.low %v5707_v17, %v5711_v56 }
 0x74c   :  { %v5723_v20 = vadd.f32 %v1779_v5, %v1757_v12  ;;  %v1808_v39 = vrot.slane %v1800_v13, %v5288_v9  ;;  %v1959_v5 = vld [vmem:[#allocation6 + $0x10] sm:$0xff] }
 0x74d   :  { %v1815_v47 = vrot.slane %v1801_v35, %v5288_v9  ;;  %v1817_v23 = vcombine.low %v5715_v30, %v5717_v53 }
 0x74e   :  { %v1818_v33 = vcombine.low %v5719_v14, %v5723_v20 }
 0x74f   :  { %v1816_v24 = vcombine.low %v1808_v39, %v1815_v47  ;;  %v1825_v27 = vrot.slane %v1817_v23, %v5288_v9 }
 0x750   :  { %v1832_v31 = vrot.slane %v1818_v33, %v5288_v9 }
 0x751   :  { %4557 = vmatprep.mubr.msk.f32.mxu0 %vm225_vm0, %v1816_v24 }
 0x752   :  { %v1833_v21 = vcombine.low %v1825_v27, %v1832_v31 }
 0x754   :  { %4558 = vmatmul.mubr.msk.f32.vlgmr.msra.gmra.mrb[14].mxu0 %vm225_vm0, %v1833_v21 }
 0x7ab   :  { %v322_v22 = vpop.permute.xlu1 %321  ;;  %v320_v18 = vpop.permute.xlu0 %319 }
 0x7ac   :  { %329 = vst.msk [vmem:[#allocation6 + $0x20] sm:$0xff] %vm312_vm2, %v322_v22  ;;  %328 = vst.msk [vmem:[#allocation6 + $0x18] sm:$0xff] %vm312_vm2, %v320_v18 }
 0x7af   :  { %v324_v15 = vpop.permute.xlu1 %323  ;;  %v332_v16 = vpop.permute.xlu0 %331 }
 0x7b0   :  { %330 = vst.msk [vmem:[#allocation6 + $0x28] sm:$0xff] %vm312_vm2, %v324_v15  ;;  %340 = vst.msk [vmem:[#allocation6 + $0x30] sm:$0xff] %vm312_vm2, %v332_v16 }
 0x7b3   :  { %v334_v38 = vpop.permute.xlu1 %333  ;;  %v336_v3 = vpop.permute.xlu0 %335  ;;  %v1960_v10 = vld [vmem:[#allocation6 + $0x18] sm:$0xff]  ;;  %v1961_v40 = vld [vmem:[#allocation6 + $0x20] sm:$0xff] }
 0x7b4   :  { %341 = vst.msk [vmem:[#allocation6 + $0x38] sm:$0xff] %vm312_vm2, %v334_v38  ;;  %342 = vst.msk [vmem:[#allocation6 + $0x40] sm:$0xff] %vm312_vm2, %v336_v3  ;;  %v4742_v34 = vpack.c.bf16 %v1960_v10, %v1959_v5 }
 0x7b6   :  { %4744 = vmatprep.subr.msk.bf16.mxu1 %vm5407_vm3, %v4742_v34 }
 0x7b7   :  { %v344_v37 = vpop.permute.xlu1 %343  ;;  %4747 = vmatpush3.bf16.xpose.msk.msra.mxu1 %vm5407_vm3, %v4742_v34  ;;  %v346_v57 = vpop.permute.xlu0 %345  ;;  %v1962_v60 = vld [vmem:[#allocation6 + $0x28] sm:$0xff]  ;;  %v1963_v36 = vld [vmem:[#allocation6 + $0x30] sm:$0xff] }
 0x7b8   :  { %352 = vst.msk [vmem:[#allocation6 + $0x48] sm:$0xff] %vm312_vm2, %v344_v37  ;;  %353 = vst.msk [vmem:[#allocation6 + $0x50] sm:$0xff] %vm312_vm2, %v346_v57  ;;  %v4748_v43 = vpack.c.bf16 %v1962_v60, %v1961_v40 }
 0x7ba   :  { %4750 = vmatprep.subr.msk.bf16.mxu1 %vm5407_vm3, %v4748_v43 }
 0x7bb   :  { %v348_v44 = vpop.permute.xlu1 %347  ;;  %v1964_v8 = vld [vmem:[#allocation6 + $0x38] sm:$0xff]  ;;  %v1965_v11 = vld [vmem:[#allocation6 + $0x40] sm:$0xff] }
 0x7bc   :  { %354 = vst.msk [vmem:[#allocation6 + $0x58] sm:$0xff] %vm312_vm2, %v348_v44  ;;  %v4754_v49 = vpack.c.bf16 %v1964_v8, %v1963_v36 }
 0x7bf   :  { %4753 = vmatpush3.bf16.xpose.msk.msra.mxu1 %vm5407_vm3, %v4748_v43  ;;  %v1966_v48 = vld [vmem:[#allocation6 + $0x48] sm:$0xff]  ;;  %v1967_v62 = vld [vmem:[#allocation6 + $0x50] sm:$0xff] }
 0x7c0   :  { %4756 = vmatprep.subr.msk.bf16.mxu1 %vm5407_vm3, %v4754_v49  ;;  %v4760_v19 = vpack.c.bf16 %v1966_v48, %v1965_v11  ;;  %v1942_v11 = vld [vmem:[#allocation17 + $0x8] sm:$0xff] }
 0x7c3   :  { %v1968_v61 = vld [vmem:[#allocation6 + $0x58] sm:$0xff] }
 0x7c4   :  { %v4766_v63 = vpack.c.bf16 %v1968_v61, %v1967_v62  ;;  %v1941_v62 = vld [vmem:[#allocation17] sm:$0xff] }
 0x7c7   :  { %4759 = vmatpush3.bf16.xpose.msk.msra.mxu1 %vm5407_vm3, %v4754_v49 }
 0x7c8   :  { %4762 = vmatprep.subr.msk.bf16.mxu1 %vm5407_vm3, %v4760_v19 }
 0x7cf   :  { %4765 = vmatpush3.bf16.xpose.msk.msra.mxu1 %vm5407_vm3, %v4760_v19 }
 0x7d0   :  { %4768 = vmatprep.subr.msk.bf16.mxu1 %vm5407_vm3, %v4766_v63 }
 0x7d7   :  { %4771 = vmatpush3.bf16.xpose.msk.msra.mxu1 %vm5407_vm3, %v4766_v63 }
 0x827   :  { %v4559_v2 = vpop.f32.mrb[14].mxu0 }
 0x828   :  { %v1910_v6 = vadd.f32 %v4559_v2, %v5636_v46  ;;  %v1904_v7 = vpop.f32.mrb[15].mxu0 }
 0x829   :  { %v1905_v12 = vadd.f32 %v1904_v7, %v5636_v46 }
 0x82a   :  { %1914 = vst.msk [vmem:[#allocation5 + $0x8] sm:$0xff] %vm312_vm2, %v1910_v6  ;;  %1919 = vrot.lane.b32.xlu1 %v1910_v6, %s5137_s18 }
 0x82b   :  { %1913 = vst.msk [vmem:[#allocation5] sm:$0xff] %vm312_vm2, %v1905_v12  ;;  %1917 = vrot.lane.b32.xlu0 %v1905_v12, %s5137_s18 }
 0x82e   :  { %1927 = vrot.lane.b32.xlu1 %v1910_v6, %s5138_s19 }
 0x82f   :  { %1925 = vrot.lane.b32.xlu0 %v1905_v12, %s5138_s19 }
 0x831   :  { %v1950_v46 = vld [vmem:[#allocation5 + $0x8] sm:$0xff] }
 0x832   :  { %1935 = vrot.lane.b32.xlu1 %v1910_v6, %s5139_s21  ;;  %v1949_v45 = vld [vmem:[#allocation5] sm:$0xff] }
 0x833   :  { %1933 = vrot.lane.b32.xlu0 %v1905_v12, %s5139_s21  ;;  %4584 = vmatprep.mubr.msk.f32.mxu1 %vm312_vm2, %v1949_v45 }
 0x834   :  { %4585 = vmatmul.mubr.msk.f32.vlgmr.msra.gmra.mrb[12].mxu1 %vm312_vm2, %v1950_v46  ;;  %v1944_v46 = vld [vmem:[#allocation17 + $0x18] sm:$0xff] }
 0x836   :  { %355 = vrot.lane.b32.xlu1 %v5649_v28, %s5131_s7 }
 0x837   :  { %357 = vrot.lane.b32.xlu0 %v5652_v32, %s5131_s7 }
 0x83a   :  { %359 = vrot.lane.b32.xlu1 %v5655_v29, %s5131_s7 }
 0x83b   :  { %367 = vrot.lane.b32.xlu0 %v5649_v28, %s5134_s14 }
 0x83e   :  { %369 = vrot.lane.b32.xlu1 %v5652_v32, %s5134_s14 }
 0x83f   :  { %371 = vrot.lane.b32.xlu0 %v5655_v29, %s5134_s14 }
 0x842   :  { %379 = vrot.lane.b32.xlu1 %v5649_v28, %s5135_s4 }
 0x89c   :  { %v1920_v13 = vpop.permute.xlu1 %1919 }
 0x89d   :  { %1924 = vst.msk [vmem:[#allocation5 + $0x18] sm:$0xff] %vm312_vm2, %v1920_v13  ;;  %v1918_v35 = vpop.permute.xlu0 %1917 }
 0x89e   :  { %1923 = vst.msk [vmem:[#allocation5 + $0x10] sm:$0xff] %vm312_vm2, %v1918_v35 }
 0x8a0   :  { %v1928_v39 = vpop.permute.xlu1 %1927 }
 0x8a1   :  { %1932 = vst.msk [vmem:[#allocation5 + $0x28] sm:$0xff] %vm312_vm2, %v1928_v39  ;;  %v1926_v47 = vpop.permute.xlu0 %1925 }
 0x8a2   :  { %1931 = vst.msk [vmem:[#allocation5 + $0x20] sm:$0xff] %vm312_vm2, %v1926_v47  ;;  %v1943_v47 = vld [vmem:[#allocation17 + $0x10] sm:$0xff] }
 0x8a4   :  { %v1936_v23 = vpop.permute.xlu1 %1935  ;;  %v1952_v27 = vld [vmem:[#allocation5 + $0x18] sm:$0xff] }
 0x8a5   :  { %1940 = vst.msk [vmem:[#allocation5 + $0x38] sm:$0xff] %vm312_vm2, %v1936_v23  ;;  %v1934_v33 = vpop.permute.xlu0 %1933  ;;  %v1951_v24 = vld [vmem:[#allocation5 + $0x10] sm:$0xff] }
 0x8a6   :  { %1939 = vst.msk [vmem:[#allocation5 + $0x30] sm:$0xff] %vm312_vm2, %v1934_v33  ;;  %4587 = vmatprep.mubr.msk.f32.mxu1 %vm312_vm2, %v1951_v24 }
 0x8a7   :  { %4588 = vmatmul.mubr.msk.f32.gmra.mrb[14].mxu1 %vm312_vm2, %v1952_v27 }
 0x8a8   :  { %v356_v31 = vpop.permute.xlu1 %355  ;;  %v1954_v18 = vld [vmem:[#allocation5 + $0x28] sm:$0xff] }
 0x8a9   :  { %364 = vst.msk [vmem:[#allocation7] sm:$0xff] %vm312_vm2, %v356_v31  ;;  %v358_v21 = vpop.permute.xlu0 %357  ;;  %v1953_v22 = vld [vmem:[#allocation5 + $0x20] sm:$0xff] }
 0x8aa   :  { %365 = vst.msk [vmem:[#allocation7 + $0x8] sm:$0xff] %vm312_vm2, %v358_v21  ;;  %4590 = vmatprep.mubr.msk.f32.mxu1 %vm312_vm2, %v1953_v22  ;;  %v1945_v22 = vld [vmem:[#allocation17 + $0x20] sm:$0xff] }
 0x8ab   :  { %4591 = vmatmul.mubr.msk.f32.gmra.mrb[16].mxu1 %vm312_vm2, %v1954_v18 }
 0x8ac   :  { %v360_v15 = vpop.permute.xlu1 %359  ;;  %v1956_v3 = vld [vmem:[#allocation5 + $0x38] sm:$0xff] }
 0x8ad   :  { %366 = vst.msk [vmem:[#allocation7 + $0x10] sm:$0xff] %vm312_vm2, %v360_v15  ;;  %v368_v16 = vpop.permute.xlu0 %367  ;;  %v1955_v38 = vld [vmem:[#allocation5 + $0x30] sm:$0xff] }
 0x8ae   :  { %376 = vst.msk [vmem:[#allocation7 + $0x18] sm:$0xff] %vm312_vm2, %v368_v16  ;;  %4593 = vmatprep.mubr.msk.f32.mxu1 %vm312_vm2, %v1955_v38  ;;  %v1946_v15 = vld [vmem:[#allocation17 + $0x28] sm:$0xff] }
 0x8af   :  { %4594 = vmatmul.mubr.msk.f32.gmra.mrb[18].mxu1 %vm312_vm2, %v1956_v3 }
 0x8b0   :  { %v370_v5 = vpop.permute.xlu1 %369  ;;  %v2263_v10 = vld [vmem:[#allocation7] sm:$0xff] }
 0x8b1   :  { %377 = vst.msk [vmem:[#allocation7 + $0x20] sm:$0xff] %vm312_vm2, %v370_v5  ;;  %v372_v34 = vpop.permute.xlu0 %371  ;;  %v2264_v37 = vld [vmem:[#allocation7 + $0x8] sm:$0xff] }
 0x8b2   :  { %378 = vst.msk [vmem:[#allocation7 + $0x28] sm:$0xff] %vm312_vm2, %v372_v34  ;;  %v4772_v57 = vpack.c.bf16 %v2264_v37, %v2263_v10 }
 0x8b4   :  { %v380_v40 = vpop.permute.xlu1 %379  ;;  %4773 = vmatprep.subr.bf16.mxu0 %v4772_v57  ;;  %v2265_v60 = vld [vmem:[#allocation7 + $0x10] sm:$0xff] }
 0x8b5   :  { %388 = vst.msk [vmem:[#allocation7 + $0x30] sm:$0xff] %vm312_vm2, %v380_v40  ;;  %4775 = vmatpush3.bf16.msra.mxu0 %v4772_v57  ;;  %v2266_v43 = vld [vmem:[#allocation7 + $0x18] sm:$0xff]  ;;  %v1948_v57 = vld [vmem:[#allocation17 + $0x38] sm:$0xff] }
 0x8b6   :  { %v4776_v44 = vpack.c.bf16 %v2266_v43, %v2265_v60 }
 0x8b8   :  { %4777 = vmatprep.subr.bf16.mxu0 %v4776_v44  ;;  %v2267_v8 = vld [vmem:[#allocation7 + $0x20] sm:$0xff] }
 0x8b9   :  { %4779 = vmatpush3.bf16.msra.mxu0 %v4776_v44  ;;  %v2268_v36 = vld [vmem:[#allocation7 + $0x28] sm:$0xff] }
 0x8ba   :  { %v4780_v49 = vpack.c.bf16 %v2268_v36, %v2267_v8 }
 0x8bc   :  { %4781 = vmatprep.subr.bf16.mxu0 %v4780_v49 }
 0x8bd   :  { %4783 = vmatpush3.bf16.msra.mxu0 %v4780_v49 }
 0x907   :  { %v4586_v48 = vpop.f32.mrb[12].mxu1 }
 0x908   :  { %v2135_v19 = vmul.f32 0.35355338, %v4586_v48  ;;  %v2095_v61 = vpop.f32.mrb[13].mxu1 }
 0x909   :  { %v2134_v63 = vmul.f32 0.35355338, %v2095_v61  ;;  %v1947_v61 = vld [vmem:[#allocation17 + $0x30] sm:$0xff] }
 0x90a   :  { %v2143_v2 = vadd.f32 %v2135_v19, %v1942_v11 }
 0x90b   :  { %v2142_v6 = vadd.f32 %v2134_v63, %v1941_v62 }
 0x90c   :  { %v2154_v7 = vsel %vm2150_vm5, %v2143_v2, -inf }
 0x90d   :  { %2155 = vmax.xlane.f32.xlu1 %v2154_v7  ;;  %v2151_v12 = vsel %vm2150_vm5, %v2142_v6, -inf }
 0x90e   :  { %2152 = vmax.xlane.f32.xlu0 %v2151_v12 }
 0x97a   :  { %v4589_v45 = vpop.f32.mrb[14].mxu1 }
 0x97b   :  { %v2137_v13 = vmul.f32 0.35355338, %v4589_v45  ;;  %v2105_v35 = vpop.f32.mrb[15].mxu1 }
 0x97c   :  { %v2136_v39 = vmul.f32 0.35355338, %v2105_v35 }
 0x97d   :  { %v2145_v23 = vadd.f32 %v2137_v13, %v1944_v46 }
 0x97e   :  { %v4592_v33 = vpop.f32.mrb[16].mxu1  ;;  %v2144_v21 = vadd.f32 %v2136_v39, %v1943_v47 }
 0x97f   :  { %v2139_v24 = vmul.f32 0.35355338, %v4592_v33  ;;  %v2115_v27 = vpop.f32.mrb[17].mxu1  ;;  %v2160_v31 = vsel %vm2150_vm5, %v2145_v23, -inf }
 0x980   :  { %v2138_v18 = vmul.f32 0.35355338, %v2115_v27  ;;  %2161 = vmax.xlane.f32.xlu0 %v2160_v31  ;;  %v2157_v10 = vsel %vm2150_vm5, %v2144_v21, -inf }
 0x981   :  { %v2147_v34 = vadd.f32 %v2139_v24, %v1946_v15 }
 0x982   :  { %v4595_v16 = vpop.f32.mrb[18].mxu1  ;;  %v2146_v38 = vadd.f32 %v2138_v18, %v1945_v22 }
 0x983   :  { %v2141_v3 = vmul.f32 0.35355338, %v4595_v16  ;;  %v2125_v5 = vpop.f32.mrb[19].mxu1  ;;  %v2166_v40 = vsel %vm2150_vm5, %v2147_v34, -inf }
 0x984   :  { %2158 = vmax.xlane.f32.xlu0 %v2157_v10  ;;  %v2163_v37 = vsel %vm2150_vm5, %v2146_v38, -inf  ;;  %v2140_v19 = vmul.f32 0.35355338, %v2125_v5 }
 0x985   :  { %2164 = vmax.xlane.f32.xlu1 %v2163_v37  ;;  %v2149_v60 = vadd.f32 %v2141_v3, %v1948_v57 }
 0x986   :  { %v2148_v62 = vadd.f32 %v2140_v19, %v1947_v61 }
 0x987   :  { %v2172_v43 = vsel %vm2150_vm5, %v2149_v60, -inf }
 0x988   :  { %2167 = vmax.xlane.f32.xlu0 %v2166_v40  ;;  %v2169_v63 = vsel %vm2150_vm5, %v2148_v62, -inf }
 0x98c   :  { %2173 = vmax.xlane.f32.xlu0 %v2172_v43  ;;  %v2269_v43 = vld [vmem:[#allocation7 + $0x30] sm:$0xff] }
 0x996   :  { %383 = vrot.lane.b32.xlu1 %v5655_v29, %s5135_s4 }
 0x99a   :  { %v2156_v8 = vpop.xlane.xlu1 %2155 }
 0x99b   :  { %v2153_v44 = vpop.xlane.xlu0 %2152  ;;  %v2176_v49 = vsub.f32 %v2143_v2, %v2156_v8 }
 0x99c   :  { %v2175_v36 = vsub.f32 %v2142_v6, %v2153_v44 }
 0x99d   :  { %v2185_v11 = vmul.f32 1.442695, %v2176_v49 }
 0x99e   :  { %v2183_v48 = vmul.f32 1.442695, %v2175_v36 }
 0x9a0   :  { %4906 = vpow2.f32 %v2183_v48 }
 0x9a1   :  { %4908 = vpow2.f32 %v2185_v11 }
 0x9a2   :  { %381 = vrot.lane.b32.xlu0 %v5652_v32, %s5135_s4 }
 0x9aa   :  { %v5821_v7 = vpop.eup %4906 }
 0x9ab   :  { %v5823_v12 = vpop.eup %4908  ;;  %v2199_v45 = vsel %vm2150_vm5, %v5821_v7, 0.0 }
 0x9ac   :  { %v2202_v2 = vsel %vm2150_vm5, %v5823_v12, 0.0 }
 0x9ba   :  { %2170 = vmax.xlane.f32.xlu1 %v2169_v63 }
 0x9be   :  { %2200 = vadd.xlane.f32.xlu1 %v2199_v45 }
 0x9c1   :  { %2203 = vadd.xlane.f32.xlu0 %v2202_v2 }
 0xa0d   :  { %v2162_v6 = vpop.xlane.xlu0 %2161 }
 0xa0e   :  { %v2178_v46 = vsub.f32 %v2145_v23, %v2162_v6 }
 0xa10   :  { %v2189_v13 = vmul.f32 1.442695, %v2178_v46 }
 0xa11   :  { %v2159_v35 = vpop.xlane.xlu0 %2158 }
 0xa12   :  { %4910 = vpow2.f32 %v2189_v13  ;;  %v2177_v39 = vsub.f32 %v2144_v21, %v2159_v35  ;;  %v2165_v47 = vpop.xlane.xlu1 %2164 }
 0xa13   :  { %v2179_v33 = vsub.f32 %v2146_v38, %v2165_v47 }
 0xa14   :  { %v2187_v24 = vmul.f32 1.442695, %v2177_v39 }
 0xa15   :  { %v2191_v27 = vmul.f32 1.442695, %v2179_v33  ;;  %v2168_v31 = vpop.xlane.xlu0 %2167 }
 0xa16   :  { %4912 = vpow2.f32 %v2187_v24  ;;  %v2180_v22 = vsub.f32 %v2147_v34, %v2168_v31  ;;  %v384_v18 = vpop.permute.xlu1 %383 }
 0xa17   :  { %390 = vst.msk [vmem:[#allocation7 + $0x40] sm:$0xff] %vm312_vm2, %v384_v18  ;;  %4914 = vpow2.f32 %v2191_v27 }
 0xa18   :  { %v2193_v15 = vmul.f32 1.442695, %v2180_v22 }
 0xa19   :  { %v2174_v16 = vpop.xlane.xlu0 %2173 }
 0xa1a   :  { %4916 = vpow2.f32 %v2193_v15  ;;  %v2182_v3 = vsub.f32 %v2149_v60, %v2174_v16 }
 0xa1c   :  { %v5830_v23 = vpop.eup %4910  ;;  %v2197_v5 = vmul.f32 1.442695, %v2182_v3 }
 0xa1d   :  { %v382_v10 = vpop.permute.xlu0 %381  ;;  %v2208_v21 = vsel %vm2150_vm5, %v5830_v23, 0.0 }
 0xa1e   :  { %4918 = vpow2.f32 %v2197_v5  ;;  %389 = vst.msk [vmem:[#allocation7 + $0x38] sm:$0xff] %vm312_vm2, %v382_v10  ;;  %2209 = vadd.xlane.f32.xlu0 %v2208_v21  ;;  %v2271_v33 = vld [vmem:[#allocation7 + $0x40] sm:$0xff] }
 0xa20   :  { %v5835_v38 = vpop.eup %4912 }
 0xa21   :  { %v2205_v34 = vsel %vm2150_vm5, %v5835_v38, 0.0  ;;  %v5839_v37 = vpop.eup %4914 }
 0xa22   :  { %2206 = vadd.xlane.f32.xlu1 %v2205_v34  ;;  %v2211_v40 = vsel %vm2150_vm5, %v5839_v37, 0.0 }
 0xa24   :  { %v5841_v57 = vpop.eup %4916 }
 0xa25   :  { %v2214_v60 = vsel %vm2150_vm5, %v5841_v57, 0.0  ;;  %v2270_v44 = vld [vmem:[#allocation7 + $0x38] sm:$0xff] }
 0xa26   :  { %2212 = vadd.xlane.f32.xlu1 %v2211_v40  ;;  %2215 = vadd.xlane.f32.xlu0 %v2214_v60  ;;  %v4784_v8 = vpack.c.bf16 %v2270_v44, %v2269_v43 }
 0xa28   :  { %v5847_v36 = vpop.eup %4918  ;;  %4785 = vmatprep.subr.bf16.mxu0 %v4784_v8 }
 0xa29   :  { %4787 = vmatpush3.bf16.msra.mxu0 %v4784_v8  ;;  %v2220_v49 = vsel %vm2150_vm5, %v5847_v36, 0.0 }
 0xa2a   :  { %2221 = vadd.xlane.f32.xlu0 %v2220_v49 }
 0xa37   :  { %393 = vrot.lane.b32.xlu1 %v5652_v32, %s5136_s17 }
 0xa40   :  { %391 = vrot.lane.b32.xlu0 %v5649_v28, %s5136_s17 }
 0xa44   :  { %2405 = vrot.lane.b32.xlu0 %v5524_v41, %s5131_s7 }
 0xa47   :  { %v2171_v48 = vpop.xlane.xlu1 %2170 }
 0xa48   :  { %v2181_v11 = vsub.f32 %v2148_v62, %v2171_v48  ;;  %2595 = vrot.lane.b32.xlu0 %v5532_v25, %s5131_s7 }
 0xa4a   :  { %v2195_v19 = vmul.f32 1.442695, %v2181_v11 }
 0xa4b   :  { %v2201_v61 = vpop.xlane.xlu1 %2200 }
 0xa4c   :  { %4920 = vpow2.f32 %v2195_v19 }
 0xa4d   :  { %4922 = vrcp.f32 %v2201_v61 }
 0xa4e   :  { %v2204_v25 = vpop.xlane.xlu0 %2203 }
 0xa4f   :  { %4924 = vrcp.f32 %v2204_v25 }
 0xa56   :  { %v5859_v63 = vpop.eup %4920 }
 0xa57   :  { %v4923_v45 = vpop.eup %4922  ;;  %v2217_v28 = vsel %vm2150_vm5, %v5859_v63, 0.0 }
 0xa58   :  { %v2231_v2 = vmul.f32 %v4923_v45, %v2201_v61 }
 0xa5a   :  { %v2239_v32 = vsub.f32 2.0, %v2231_v2 }
 0xa5b   :  { %2218 = vadd.xlane.f32.xlu1 %v2217_v28 }
 0xa5c   :  { %v2247_v6 = vmul.f32 %v4923_v45, %v2239_v32 }
 0xa5e   :  { %v2255_v41 = vmul.f32 %v5821_v7, %v2247_v6 }
 0xa60   :  { %4620 = vmatprep.mubr.msk.f32.mxu0 %vm2150_vm5, %v2255_v41 }
 0xa6c   :  { %395 = vrot.lane.b32.xlu1 %v5655_v29, %s5136_s17 }
 0xa70   :  { %2500 = vrot.lane.b32.xlu1 %v5528_v42, %s5131_s7 }
 0xa74   :  { %2690 = vrot.lane.b32.xlu1 %v5538_v50, %s5131_s7  ;;  %v4925_v50 = vpop.eup %4924 }
 0xa75   :  { %v2232_v22 = vmul.f32 %v4925_v50, %v2204_v25 }
 0xa77   :  { %v2240_v3 = vsub.f32 2.0, %v2232_v22 }
 0xa79   :  { %v2248_v44 = vmul.f32 %v4925_v50, %v2240_v3 }
 0xa7b   :  { %v2256_v32 = vmul.f32 %v5823_v12, %v2248_v44 }
 0xaab   :  { %v2210_v62 = vpop.xlane.xlu0 %2209 }
 0xaaf   :  { %v2207_v46 = vpop.xlane.xlu1 %2206 }
 0xab0   :  { %4926 = vrcp.f32 %v2207_v46 }
 0xab1   :  { %4928 = vrcp.f32 %v2210_v62 }
 0xab3   :  { %v2213_v13 = vpop.xlane.xlu1 %2212  ;;  %v2216_v35 = vpop.xlane.xlu0 %2215 }
 0xab4   :  { %4930 = vrcp.f32 %v2213_v13 }
 0xab5   :  { %4932 = vrcp.f32 %v2216_v35 }
 0xab7   :  { %v394_v39 = vpop.permute.xlu1 %393  ;;  %v2222_v47 = vpop.xlane.xlu0 %2221 }
 0xab8   :  { %401 = vst.msk [vmem:[#allocation7 + $0x50] sm:$0xff] %vm312_vm2, %v394_v39 }
 0xaba   :  { %v4927_v27 = vpop.eup %4926 }
 0xabb   :  { %v392_v7 = vpop.permute.xlu0 %391  ;;  %v4929_v18 = vpop.eup %4928  ;;  %v2233_v15 = vmul.f32 %v4927_v27, %v2207_v46 }
 0xabc   :  { %400 = vst.msk [vmem:[#allocation7 + $0x48] sm:$0xff] %vm312_vm2, %v392_v7  ;;  %v2234_v5 = vmul.f32 %v4929_v18, %v2210_v62 }
 0xabd   :  { %v2241_v21 = vsub.f32 2.0, %v2233_v15 }
 0xabe   :  { %v4931_v16 = vpop.eup %4930  ;;  %v2242_v8 = vsub.f32 2.0, %v2234_v5 }
 0xabf   :  { %v4933_v10 = vpop.eup %4932  ;;  %v2235_v34 = vmul.f32 %v4931_v16, %v2213_v13  ;;  %v2273_v60 = vld [vmem:[#allocation7 + $0x50] sm:$0xff]  ;;  %v2249_v19 = vmul.f32 %v4927_v27, %v2241_v21  ;;  %v2406_v2 = vpop.permute.xlu0 %2405 }
 0xac0   :  { %v2236_v49 = vmul.f32 %v4933_v10, %v2216_v35  ;;  %v2250_v28 = vmul.f32 %v4929_v18, %v2242_v8 }
 0xac1   :  { %v2243_v61 = vsub.f32 2.0, %v2235_v34  ;;  %v2257_v25 = vmul.f32 %v5835_v38, %v2249_v19 }
 0xac2   :  { %v2244_v6 = vsub.f32 2.0, %v2236_v49  ;;  %v2258_v13 = vmul.f32 %v5830_v23, %v2250_v28 }
 0xac3   :  { %v2272_v29 = vld [vmem:[#allocation7 + $0x48] sm:$0xff]  ;;  %v2251_v62 = vmul.f32 %v4931_v16, %v2243_v61 }
 0xac4   :  { %v4788_v24 = vpack.c.bf16 %v2272_v29, %v2271_v33  ;;  %v2252_v35 = vmul.f32 %v4933_v10, %v2244_v6 }
 0xac5   :  { %v2259_v7 = vmul.f32 %v5839_v37, %v2251_v62 }
 0xac6   :  { %4789 = vmatprep.subr.bf16.mxu0 %v4788_v24  ;;  %v2260_v38 = vmul.f32 %v5841_v57, %v2252_v35 }
 0xac7   :  { %4791 = vmatpush3.bf16.msra.mxu0 %v4788_v24 }
 0xae8   :  { %v2219_v42 = vpop.xlane.xlu1 %2218 }
 0xae9   :  { %4934 = vrcp.f32 %v2219_v42 }
 0xaea   :  { %4936 = vrcp.f32 %v2222_v47 }
 0xaec   :  { %v396_v31 = vpop.permute.xlu1 %395 }
 0xaed   :  { %402 = vst.msk [vmem:[#allocation7 + $0x58] sm:$0xff] %vm312_vm2, %v396_v31 }
 0xaf0   :  { %v2501_v29 = vpop.permute.xlu1 %2500 }
 0xaf3   :  { %v4935_v40 = vpop.eup %4934 }
 0xaf4   :  { %v2274_v43 = vld [vmem:[#allocation7 + $0x58] sm:$0xff]  ;;  %v4937_v11 = vpop.eup %4936  ;;  %v2237_v45 = vmul.f32 %v4935_v40, %v2219_v42  ;;  %v2596_v42 = vpop.permute.xlu0 %2595 }
 0xaf5   :  { %v4792_v48 = vpack.c.bf16 %v2274_v43, %v2273_v60  ;;  %v2238_v41 = vmul.f32 %v4937_v11, %v2222_v47  ;;  %v2691_v50 = vpop.permute.xlu1 %2690 }
 0xaf6   :  { %v2245_v46 = vsub.f32 2.0, %v2237_v45 }
 0xaf7   :  { %4793 = vmatprep.subr.bf16.mxu0 %v4792_v48  ;;  %v2246_v39 = vsub.f32 2.0, %v2238_v41 }
 0xaf8   :  { %4795 = vmatpush3.bf16.msra.mxu0 %v4792_v48  ;;  %v2253_v12 = vmul.f32 %v4935_v40, %v2245_v46 }
 0xaf9   :  { %4632 = vmatprep.subr.mxu0 %v2406_v2  ;;  %v2254_v47 = vmul.f32 %v4937_v11, %v2246_v39 }
 0xafa   :  { %v2261_v33 = vmul.f32 %v5859_v63, %v2253_v12 }
 0xafb   :  { %4621 = vmatmul.mubr.msk.f32.vlgmr.msra.gmra.mrb[16].mxu0 %vm2150_vm5, %v2256_v32  ;;  %v2262_v23 = vmul.f32 %v5847_v36, %v2254_v47 }
 0xafc   :  { %4623 = vmatprep.mubr.msk.f32.mxu0 %vm2150_vm5, %v2257_v25  ;;  %4633 = vmatpush3.msra.mxu0 %v2406_v2 }
 0xafd   :  { %4637 = vmatprep.subr.mxu0 %v2501_v29 }
 0xaff   :  { %4624 = vmatmul.mubr.msk.f32.gmra.mrb[18].mxu0 %vm2150_vm5, %v2258_v13 }
 0xb00   :  { %4626 = vmatprep.mubr.msk.f32.mxu0 %vm2150_vm5, %v2259_v7 }
 0xb03   :  { %4627 = vmatmul.mubr.msk.f32.gmra.mrb[20].mxu0 %vm2150_vm5, %v2260_v38 }
 0xb04   :  { %4629 = vmatprep.mubr.msk.f32.mxu0 %vm2150_vm5, %v2261_v33 }
 0xb07   :  { %4630 = vmatmul.mubr.msk.f32.gmra.mrb[22].mxu0 %vm2150_vm5, %v2262_v23 }
 0xbce   :  { %v4622_v37 = vpop.f32.mrb[16].mxu0 }
 0xbcf   :  { %v2365_v24 = vpop.f32.mrb[17].mxu0 }
 0xbd0   :  { %4634 = vmatprep.mubr.msk.f32.mxu0 %vm312_vm2, %v2365_v24 }
 0xbd1   :  { %4635 = vmatmul.mubr.msk.f32.vlgmr.msra.gmra.mrb[24].mxu0 %vm312_vm2, %v4622_v37 }
 0xbd2   :  { %4638 = vmatpush3.msra.mxu0 %v2501_v29  ;;  %v4625_v57 = vpop.f32.mrb[18].mxu0 }
 0xbd3   :  { %v2375_v63 = vpop.f32.mrb[19].mxu0  ;;  %4642 = vmatprep.subr.mxu0 %v2596_v42 }
 0xbd4   :  { %4639 = vmatprep.mubr.msk.f32.mxu0 %vm312_vm2, %v2375_v63 }
 0xbd5   :  { %4640 = vmatmul.mubr.msk.f32.vlgmr.msra.gmra.mrb[26].mxu0 %vm312_vm2, %v4625_v57 }
 0xbd6   :  { %4643 = vmatpush3.msra.mxu0 %v2596_v42  ;;  %v4628_v36 = vpop.f32.mrb[20].mxu0 }
 0xbd7   :  { %v2385_v27 = vpop.f32.mrb[21].mxu0  ;;  %4647 = vmatprep.subr.mxu0 %v2691_v50 }
 0xbd8   :  { %4644 = vmatprep.mubr.msk.f32.mxu0 %vm312_vm2, %v2385_v27 }
 0xbd9   :  { %4645 = vmatmul.mubr.msk.f32.vlgmr.msra.gmra.mrb[28].mxu0 %vm312_vm2, %v4628_v36 }
 0xbda   :  { %4648 = vmatpush3.msra.mxu0 %v2691_v50  ;;  %v4631_v31 = vpop.f32.mrb[22].mxu0 }
 0xbdb   :  { %v2395_v22 = vpop.f32.mrb[23].mxu0 }
 0xbdc   :  { %4649 = vmatprep.mubr.msk.f32.mxu0 %vm312_vm2, %v2395_v22 }
 0xbdd   :  { %4650 = vmatmul.mubr.msk.f32.vlgmr.msra.gmra.mrb[30].mxu0 %vm312_vm2, %v4631_v31 }
 0xca4   :  { %v4636_v18 = vpop.f32.mrb[24].mxu0 }
 0xca5   :  { %2493 = vrot.lane.b32.xlu1 %v4636_v18, %s5120_s15  ;;  %v2480_v15 = vpop.f32.mrb[25].mxu0 }
 0xca6   :  { %2491 = vrot.lane.b32.xlu0 %v2480_v15, %s5120_s15 }
 0xca8   :  { %v4641_v16 = vpop.f32.mrb[26].mxu0 }
 0xca9   :  { %2588 = vrot.lane.b32.xlu1 %v4641_v16, %s5120_s15  ;;  %v2575_v3 = vpop.f32.mrb[27].mxu0 }
 0xcaa   :  { %2586 = vrot.lane.b32.xlu0 %v2575_v3, %s5120_s15 }
 0xcac   :  { %v4646_v5 = vpop.f32.mrb[28].mxu0 }
 0xcad   :  { %2683 = vrot.lane.b32.xlu1 %v4646_v5, %s5120_s15  ;;  %v2670_v10 = vpop.f32.mrb[29].mxu0 }
 0xcae   :  { %2681 = vrot.lane.b32.xlu0 %v2670_v10, %s5120_s15 }
 0xcb0   :  { %v4651_v21 = vpop.f32.mrb[30].mxu0 }
 0xcb1   :  { %2778 = vrot.lane.b32.xlu1 %v4651_v21, %s5120_s15  ;;  %v2765_v34 = vpop.f32.mrb[31].mxu0 }
 0xcb2   :  { %2776 = vrot.lane.b32.xlu0 %v2765_v34, %s5120_s15 }
 0xd17   :  { %v2494_v40 = vpop.permute.xlu1 %2493 }
 0xd18   :  { %v2492_v60 = vpop.permute.xlu0 %2491  ;;  %v2498_v8 = vadd.f32 %v2494_v40, %v5552_v55 }
 0xd19   :  { %v2497_v49 = vadd.f32 %v2492_v60, %v5552_v55  ;;  %v4950_v60 = vld [vmem:[#allocation14] sm:$0xff] }
 0xd1b   :  { %v2589_v43 = vpop.permute.xlu1 %2588 }
 0xd1c   :  { %v2587_v44 = vpop.permute.xlu0 %2586  ;;  %v2593_v11 = vadd.f32 %v2589_v43, %v2498_v8  ;;  %v4951_v43 = vld [vmem:[#allocation14 + $0x8] sm:$0xff] }
 0xd1d   :  { %v2592_v61 = vadd.f32 %v2587_v44, %v2497_v49  ;;  %v4860_v44 = vpack.i.bf16 %v4951_v43, %v4950_v60 }
 0xd1f   :  { %v2684_v48 = vpop.permute.xlu1 %2683 }
 0xd20   :  { %v2682_v19 = vpop.permute.xlu0 %2681  ;;  %v2688_v45 = vadd.f32 %v2684_v48, %v2593_v11 }
 0xd21   :  { %v2687_v2 = vadd.f32 %v2682_v19, %v2592_v61 }
 0xd23   :  { %v2779_v32 = vpop.permute.xlu1 %2778 }
 0xd24   :  { %v2783_v28 = vadd.f32 %v2779_v32, %v2688_v45  ;;  %v2777_v6 = vpop.permute.xlu0 %2776 }
 0xd25   :  { %v2782_v41 = vadd.f32 %v2777_v6, %v2687_v2 }
 0xd26   :  { %v2810_v25 = vrot.slane %v2783_v28, %v5288_v9  ;;  %v2803_v35 = vcombine.high %v2783_v28, %v2783_v28 }
 0xd27   :  { %v2786_v46 = vcombine.high %v2782_v41, %v2782_v41  ;;  %v2793_v13 = vrot.slane %v2782_v41, %v5288_v9 }
 0xd28   :  { %v2818_v62 = vcombine.high %v2810_v25, %v2810_v25  ;;  %2828 = vrot.lane.b32.xlu0 %v2810_v25, %s5131_s7  ;;  %v2817_v12 = vrot.slane %v2803_v35, %v5288_v9 }
 0xd29   :  { %v2800_v39 = vrot.slane %v2786_v46, %v5288_v9  ;;  %v2801_v7 = vcombine.high %v2793_v13, %v2793_v13 }
 0xd2a   :  { %2830 = vrot.lane.b32.xlu1 %v2818_v62, %s5131_s7  ;;  %v2819_v47 = vcombine.high %v2817_v12, %v2817_v12 }
 0xd2b   :  { %v2802_v38 = vcombine.high %v2800_v39, %v2800_v39 }
 0xd2c   :  { %2820 = vrot.lane.b32.xlu0 %v2793_v13, %s5131_s7 }
 0xd2e   :  { %2822 = vrot.lane.b32.xlu1 %v2801_v7, %s5131_s7 }
 0xd30   :  { %2824 = vrot.lane.b32.xlu0 %v2800_v39, %s5131_s7 }
 0xd32   :  { %2826 = vrot.lane.b32.xlu1 %v2802_v38, %s5131_s7 }
 0xd34   :  { %2832 = vrot.lane.b32.xlu0 %v2817_v12, %s5131_s7 }
 0xd36   :  { %2834 = vrot.lane.b32.xlu1 %v2819_v47, %s5131_s7 }
 0xd9a   :  { %v2829_v33 = vpop.permute.xlu0 %2828 }
 0xd9b   :  { %v2848_v22 = vadd.f32 %v2829_v33, %v5715_v30 }
 0xd9c   :  { %v2831_v23 = vpop.permute.xlu1 %2830 }
 0xd9d   :  { %v2849_v63 = vadd.f32 %v2831_v23, %v5717_v53 }
 0xd9e   :  { %v2821_v29 = vpop.permute.xlu0 %2820 }
 0xd9f   :  { %v2844_v57 = vadd.f32 %v2821_v29, %v5703_v0  ;;  %v2877_v16 = vcombine.low %v2848_v22, %v2849_v63 }
 0xda0   :  { %v2823_v37 = vpop.permute.xlu1 %2822 }
 0xda1   :  { %v2845_v24 = vadd.f32 %v2823_v37, %v5705_v1 }
 0xda2   :  { %v2825_v42 = vpop.permute.xlu0 %2824 }
 0xda3   :  { %v2860_v36 = vcombine.low %v2844_v57, %v2845_v24  ;;  %v2846_v27 = vadd.f32 %v2825_v42, %v5707_v17  ;;  %v2885_v17 = vrot.slane %v2877_v16, %v5288_v9  ;;  %v4952_v16 = vld [vmem:[#allocation14 + $0x10] sm:$0xff] }
 0xda4   :  { %v2827_v50 = vpop.permute.xlu1 %2826 }
 0xda5   :  { %v2847_v31 = vadd.f32 %v2827_v50, %v5711_v56  ;;  %v2868_v5 = vrot.slane %v2860_v36, %v5288_v9 }
 0xda6   :  { %v2833_v18 = vpop.permute.xlu0 %2832 }
 0xda7   :  { %v2861_v15 = vcombine.low %v2846_v27, %v2847_v31  ;;  %v2850_v0 = vadd.f32 %v2833_v18, %v5719_v14 }
 0xda8   :  { %v2835_v3 = vpop.permute.xlu1 %2834 }
 0xda9   :  { %v2875_v1 = vrot.slane %v2861_v15, %v5288_v9  ;;  %v2851_v53 = vadd.f32 %v2835_v3, %v5723_v20  ;;  %v4953_v3 = vld [vmem:[#allocation14 + $0x18] sm:$0xff] }
 0xdab   :  { %v2878_v10 = vcombine.low %v2850_v0, %v2851_v53  ;;  %v2876_v21 = vcombine.low %v2868_v5, %v2875_v1  ;;  %v4865_v5 = vpack.i.bf16 %v4953_v3, %v4952_v16 }
 0xdad   :  { %v2892_v56 = vrot.slane %v2878_v10, %v5288_v9  ;;  %v2896_v30 = vsel %vm225_vm0, %v2876_v21, 0.0 }
 0xdae   :  { %2897 = vadd.xlane.f32.xlu0 %v2896_v30  ;;  %v5986_v30 = vld [vmem:[%s6179_s5] sm:$0xff]  ;;  %s5148_s5 = smov [#allocation19]  }
 0xdaf   :  { %v2893_v34 = vcombine.low %v2885_v17, %v2892_v56  ;;  %v3152_v56 = vsub.s32 5, %v5285_v4  ;;  %s4224_s30 = sshll.u32 %s5148_s5, 4  ;;  %s4225_s30 = int_to_ptr.vmem [resolvable:$true] %s4224_s30 }
 0xdb0   :  { %s5087_s1 = scalar_lea.vmem %s4225_s30, 256  ;;  %p5092_p7 = scmp.lt.s32.totalorder %s4225_s30, %s4225_s30 }
 0xdb1   :  { %v2899_v40 = vsel %vm225_vm0, %v2893_v34, 0.0  ;;  %v3119_v34 = vrot.slane %v5986_v30, %v140_v26  ;;  %v3153_v43 = vrot.slane %v5986_v30, %v3152_v56  ;;  %p5088_p6 = scmp.ne.s32.totalorder %s4225_s30, %s5087_s1  ;;  %p5093_p8 = scmp.lt.s32.totalorder %s5087_s1, %s5087_s1 }
 0xdb2   :  { %2900 = vadd.xlane.f32.xlu1 %v2899_v40 }
 0xdb3   :  { %v3162_v26 = vrot.slane %v3153_v43, %v5288_v9  ;;  %p5094_p9 = por %p5093_p8, %p5092_p7 }
 0xdb5   :  { %p5095_p10 = pnand %p5094_p9, %p5088_p6 }
 0xdc3   :  { %4861 = vrot.lane.b32.xlu1 %v4860_v44, %s5140_s23 }
 0xdc7   :  { %3239 = vrot.lane.b32.xlu1 %v5552_v55, %s5140_s23 }
 0xe3b   :  { %v2898_v14 = vpop.xlane.xlu0 %2897 }
 0xe3c   :  { %v2902_v20 = vmul.f32 0.03125, %v2898_v14  ;;  %v3121_v14 = vcombine.high %v3119_v34, %v3119_v34 }
 0xe3e   :  { %v2912_v8 = vrot.slane %v2902_v20, %v5575_v51  ;;  %v2919_v49 = vrot.slane %v2902_v20, %v5578_v52  ;;  %v2926_v48 = vrot.slane %v2902_v20, %v5581_v58  ;;  %v2933_v11 = vrot.slane %v2902_v20, %v5584_v59 }
 0xe3f   :  { %v2901_v19 = vpop.xlane.xlu1 %2900 }
 0xe40   :  { %v5939_v61 = vsub.f32 %v2844_v57, %v2912_v8  ;;  %v5941_v45 = vsub.f32 %v2845_v24, %v2919_v49  ;;  %v5943_v2 = vsub.f32 %v2846_v27, %v2926_v48  ;;  %v5945_v32 = vsub.f32 %v2847_v31, %v2933_v11 }
 0xe41   :  { %v2903_v55 = vmul.f32 0.03125, %v2901_v19  ;;  %v3155_v49 = vcombine.high %v3153_v43, %v3153_v43  ;;  %v3128_v19 = vrot.slane %v3119_v34, %v5288_v9 }
 0xe42   :  { %v2978_v28 = vmul.f32 %v5939_v61, %v5939_v61  ;;  %v2979_v6 = vmul.f32 %v5941_v45, %v5941_v45  ;;  %v2980_v41 = vmul.f32 %v5943_v2, %v5943_v2  ;;  %v2981_v25 = vmul.f32 %v5945_v32, %v5945_v32 }
 0xe43   :  { %v2940_v62 = vrot.slane %v2903_v55, %v5575_v51  ;;  %v2947_v46 = vrot.slane %v2903_v55, %v5578_v52  ;;  %v2954_v13 = vrot.slane %v2903_v55, %v5581_v58  ;;  %v2961_v35 = vrot.slane %v2903_v55, %v5584_v59  ;;  %v4862_v1 = vpop.permute.xlu1 %4861 }
 0xe44   :  { %v2994_v39 = vcombine.low %v2978_v28, %v2979_v6  ;;  %v2995_v7 = vcombine.low %v2980_v41, %v2981_v25  ;;  %v3135_v55 = vrot.slane %v3121_v14, %v5288_v9  ;;  %v3169_v6 = vrot.slane %v3155_v49, %v5288_v9 }
 0xe45   :  { %v5959_v12 = vsub.f32 %v2848_v22, %v2940_v62  ;;  %v5961_v38 = vsub.f32 %v2849_v63, %v2947_v46  ;;  %v5963_v47 = vsub.f32 %v2850_v0, %v2954_v13  ;;  %v5965_v33 = vsub.f32 %v2851_v53, %v2961_v35 }
 0xe46   :  { %v3002_v23 = vrot.slane %v2994_v39, %v5288_v9  ;;  %v3009_v29 = vrot.slane %v2995_v7, %v5288_v9  ;;  %v4864_v0 = vunpack.i.h.bf16 %v4862_v1  ;;  %v4863_v53 = vunpack.i.l.bf16 %v4862_v1 }
 0xe47   :  { %v2982_v37 = vmul.f32 %v5959_v12, %v5959_v12  ;;  %v2983_v24 = vmul.f32 %v5961_v38, %v5961_v38  ;;  %v2984_v42 = vmul.f32 %v5963_v47, %v5963_v47  ;;  %v2985_v57 = vmul.f32 %v5965_v33, %v5965_v33  ;;  %v6018_v49 = vpop.permute.xlu1 %3239 }
 0xe48   :  { %v3010_v63 = vcombine.low %v3002_v23, %v3009_v29  ;;  %v4796_v10 = vpack.c.bf16 %v4864_v0, %v4863_v53  ;;  %v3136_v25 = vcombine.high %v3128_v19, %v3128_v19  ;;  %v3137_v62 = vcombine.high %v3135_v55, %v3135_v55 }
 0xe49   :  { %v3011_v50 = vcombine.low %v2982_v37, %v2983_v24  ;;  %v3012_v36 = vcombine.low %v2984_v42, %v2985_v57  ;;  %v3170_v7 = vcombine.high %v3162_v26, %v3162_v26  ;;  %v3171_v23 = vcombine.high %v3169_v6, %v3169_v6 }
 0xe4a   :  { %v3030_v27 = vsel %vm225_vm0, %v3010_v63, 0.0  ;;  %4797 = vmatprep.subr.bf16.mxu0 %v4796_v10  ;;  %4805 = vmatprep.subr.bf16.mxu1 %v4796_v10 }
 0xe4b   :  { %3031 = vadd.xlane.f32.xlu0 %v3030_v27  ;;  %v3019_v31 = vrot.slane %v3011_v50, %v5288_v9  ;;  %v3026_v22 = vrot.slane %v3012_v36, %v5288_v9  ;;  %4799 = vmatpush3.bf16.msra.mxu0 %v4796_v10 }
 0xe4c   :  { %4807 = vmatpush3.bf16.msra.mxu1 %v4796_v10 }
 0xe4d   :  { %v3027_v18 = vcombine.low %v3019_v31, %v3026_v22 }
 0xe4f   :  { %v3033_v15 = vsel %vm225_vm0, %v3027_v18, 0.0 }
 0xe50   :  { %3034 = vadd.xlane.f32.xlu0 %v3033_v15 }
 0xe66   :  { %4866 = vrot.lane.b32.xlu0 %v4865_v5, %s5140_s23 }
 0xed8   :  { %v3032_v21 = vpop.xlane.xlu0 %3031 }
 0xed9   :  { %v3036_v17 = vmul.f32 0.03125, %v3032_v21 }
 0xedb   :  { %v3038_v40 = vadd.f32 1e-05, %v3036_v17 }
 0xedd   :  { %4938 = vrsqrt.f32 %v3038_v40  ;;  %v3035_v60 = vpop.xlane.xlu0 %3034 }
 0xede   :  { %v3037_v44 = vmul.f32 0.03125, %v3035_v60 }
 0xee0   :  { %v3039_v20 = vadd.f32 1e-05, %v3037_v44 }
 0xee1   :  { %v4867_v8 = vpop.permute.xlu0 %4866 }
 0xee2   :  { %4940 = vrsqrt.f32 %v3039_v20  ;;  %v4869_v48 = vunpack.i.h.bf16 %v4867_v8  ;;  %v4868_v11 = vunpack.i.l.bf16 %v4867_v8 }
 0xee4   :  { %v4800_v28 = vpack.c.bf16 %v4869_v48, %v4868_v11 }
 0xee6   :  { %4801 = vmatprep.subr.bf16.mxu0 %v4800_v28  ;;  %4809 = vmatprep.subr.bf16.mxu1 %v4800_v28 }
 0xee7   :  { %v4939_v41 = vpop.eup %4938  ;;  %4803 = vmatpush3.bf16.msra.mxu0 %v4800_v28  ;;  %4811 = vmatpush3.bf16.msra.mxu1 %v4800_v28 }
 0xee8   :  { %v3050_v46 = vrot.slane %v4939_v41, %v5575_v51  ;;  %v3057_v13 = vrot.slane %v4939_v41, %v5578_v52  ;;  %v3064_v35 = vrot.slane %v4939_v41, %v5581_v58  ;;  %v3071_v39 = vrot.slane %v4939_v41, %v5584_v59 }
 0xeea   :  { %v3108_v29 = vmul.f32 %v3050_v46, %v5939_v61  ;;  %v3109_v37 = vmul.f32 %v3057_v13, %v5941_v45  ;;  %v3110_v24 = vmul.f32 %v3064_v35, %v5943_v2  ;;  %v3111_v42 = vmul.f32 %v3071_v39, %v5945_v32 }
 0xeec   :  { %v4941_v57 = vpop.eup %4940  ;;  %v3142_v63 = vmul.f32 %v3128_v19, %v3108_v29  ;;  %v3143_v50 = vmul.f32 %v3136_v25, %v3109_v37  ;;  %v3144_v36 = vmul.f32 %v3135_v55, %v3110_v24  ;;  %v3145_v27 = vmul.f32 %v3137_v62, %v3111_v42 }
 0xeed   :  { %v3085_v31 = vrot.slane %v4941_v57, %v5578_v52  ;;  %v3099_v22 = vrot.slane %v4941_v57, %v5584_v59  ;;  %v3078_v18 = vrot.slane %v4941_v57, %v5575_v51  ;;  %v3092_v15 = vrot.slane %v4941_v57, %v5581_v58 }
 0xeee   :  { %v3176_v61 = vadd.f32 %v3162_v26, %v3142_v63  ;;  %v3177_v16 = vadd.f32 %v3170_v7, %v3143_v50  ;;  %v3178_v45 = vadd.f32 %v3169_v6, %v3144_v36  ;;  %v3179_v3 = vadd.f32 %v3171_v23, %v3145_v27 }
 0xeef   :  { %v3113_v2 = vmul.f32 %v3085_v31, %v5961_v38  ;;  %v3115_v32 = vmul.f32 %v3099_v22, %v5965_v33  ;;  %v3112_v5 = vmul.f32 %v3078_v18, %v5959_v12  ;;  %v3114_v1 = vmul.f32 %v3092_v15, %v5963_v47 }
 0xef0   :  { %v3192_v0 = vcombine.low %v3176_v61, %v3177_v16  ;;  %v3193_v53 = vcombine.low %v3178_v45, %v3179_v3 }
 0xef1   :  { %v3147_v10 = vmul.f32 %v3136_v25, %v3113_v2  ;;  %v3149_v21 = vmul.f32 %v3137_v62, %v3115_v32  ;;  %v3146_v17 = vmul.f32 %v3128_v19, %v3112_v5  ;;  %v3148_v56 = vmul.f32 %v3135_v55, %v3114_v1 }
 0xef2   :  { %v3200_v34 = vrot.slane %v3192_v0, %v5288_v9  ;;  %v3207_v40 = vrot.slane %v3193_v53, %v5288_v9 }
 0xef3   :  { %v3181_v60 = vadd.f32 %v3170_v7, %v3147_v10  ;;  %v3183_v43 = vadd.f32 %v3171_v23, %v3149_v21  ;;  %v3180_v44 = vadd.f32 %v3162_v26, %v3146_v17  ;;  %v3182_v38 = vadd.f32 %v3169_v6, %v3148_v56 }
 0xef4   :  { %v3208_v14 = vcombine.low %v3200_v34, %v3207_v40 }
 0xef5   :  { %v3209_v33 = vcombine.low %v3180_v44, %v3181_v60  ;;  %v3210_v20 = vcombine.low %v3182_v38, %v3183_v43 }
 0xef6   :  { %4660 = vmatprep.mubr.msk.f32.mxu0 %vm225_vm0, %v3208_v14 }
 0xef7   :  { %v3217_v12 = vrot.slane %v3209_v33, %v5288_v9  ;;  %v3224_v47 = vrot.slane %v3210_v20, %v5288_v9 }
 0xef9   :  { %v3225_v8 = vcombine.low %v3217_v12, %v3224_v47 }
 0xefb   :  { %4661 = vmatmul.mubr.msk.f32.vlgmr.msra.gmra.mrb[32].mxu0 %vm225_vm0, %v3225_v8 }
 0xfce   :  { %v4662_v48 = vpop.f32.mrb[32].mxu0 }
 0xfcf   :  { %v3318_v11 = vadd.f32 %v4662_v48, %v6018_v49  ;;  %v3312_v19 = vpop.f32.mrb[33].mxu0 }
 0xfd0   :  { %v3313_v55 = vadd.f32 %v3312_v19, %v6018_v49 }
 0xfd1   :  { %v3340_v28 = vcombine.high %v3318_v11, %v3318_v11  ;;  %v3347_v26 = vrot.slane %v3318_v11, %v5288_v9 }
 0xfd2   :  { %v3323_v6 = vcombine.high %v3313_v55, %v3313_v55  ;;  %v3330_v41 = vrot.slane %v3313_v55, %v5288_v9 }
 0xfd3   :  { %v3354_v25 = vrot.slane %v3340_v28, %v5288_v9  ;;  %v3355_v62 = vcombine.high %v3347_v26, %v3347_v26  ;;  %v3369_v39 = vadd.f32 %v3347_v26, %v3180_v44 }
 0xfd4   :  { %v3337_v46 = vrot.slane %v3323_v6, %v5288_v9  ;;  %v3338_v13 = vcombine.high %v3330_v41, %v3330_v41  ;;  %v3365_v29 = vadd.f32 %v3330_v41, %v3176_v61 }
 0xfd5   :  { %v3356_v35 = vcombine.high %v3354_v25, %v3354_v25  ;;  %v3370_v7 = vadd.f32 %v3355_v62, %v3181_v60  ;;  %v3371_v24 = vadd.f32 %v3354_v25, %v3182_v38 }
 0xfd6   :  { %v3339_v23 = vcombine.high %v3337_v46, %v3337_v46  ;;  %v3366_v37 = vadd.f32 %v3338_v13, %v3177_v16  ;;  %v3367_v63 = vadd.f32 %v3337_v46, %v3178_v45 }
 0xfd7   :  { %v3372_v42 = vadd.f32 %v3356_v35, %v3183_v43  ;;  %v3398_v57 = vcombine.low %v3369_v39, %v3370_v7 }
 0xfd8   :  { %v3368_v50 = vadd.f32 %v3339_v23, %v3179_v3  ;;  %v3381_v36 = vcombine.low %v3365_v29, %v3366_v37 }
 0xfd9   :  { %v3399_v27 = vcombine.low %v3371_v24, %v3372_v42  ;;  %v3406_v22 = vrot.slane %v3398_v57, %v5288_v9 }
 0xfda   :  { %v3382_v31 = vcombine.low %v3367_v63, %v3368_v50  ;;  %v3389_v15 = vrot.slane %v3381_v36, %v5288_v9 }
 0xfdb   :  { %v3413_v18 = vrot.slane %v3399_v27, %v5288_v9  ;;  %v3640_v27 = vrot.slane %v5986_v30, %v1154_v54 }
 0xfdc   :  { %v3396_v2 = vrot.slane %v3382_v31, %v5288_v9 }
 0xfdd   :  { %v3414_v32 = vcombine.low %v3406_v22, %v3413_v18 }
 0xfde   :  { %v3397_v5 = vcombine.low %v3389_v15, %v3396_v2  ;;  %v3642_v15 = vcombine.high %v3640_v27, %v3640_v27 }
 0xfdf   :  { %v3420_v61 = vsel %vm225_vm0, %v3414_v32, 0.0  ;;  %v3649_v32 = vrot.slane %v3640_v27, %v5288_v9 }
 0xfe0   :  { %3421 = vadd.xlane.f32.xlu0 %v3420_v61  ;;  %v3417_v16 = vsel %vm225_vm0, %v3397_v5, 0.0  ;;  %v3656_v5 = vrot.slane %v3642_v15, %v5288_v9 }
 0xfe1   :  { %3418 = vadd.xlane.f32.xlu1 %v3417_v16 }
0x106d   :  { %v3422_v45 = vpop.xlane.xlu0 %3421 }
0x106e   :  { %v3424_v3 = vmul.f32 0.03125, %v3422_v45  ;;  %v3419_v1 = vpop.xlane.xlu1 %3418 }
0x106f   :  { %v3423_v0 = vmul.f32 0.03125, %v3419_v1  ;;  %v3658_v1 = vcombine.high %v3656_v5, %v3656_v5 }
0x1070   :  { %v3461_v53 = vrot.slane %v3424_v3, %v5575_v51  ;;  %v3468_v10 = vrot.slane %v3424_v3, %v5578_v52  ;;  %v3475_v21 = vrot.slane %v3424_v3, %v5581_v58  ;;  %v3482_v17 = vrot.slane %v3424_v3, %v5584_v59 }
0x1071   :  { %v3433_v56 = vrot.slane %v3423_v0, %v5575_v51  ;;  %v3440_v34 = vrot.slane %v3423_v0, %v5578_v52  ;;  %v3447_v40 = vrot.slane %v3423_v0, %v5581_v58  ;;  %v3454_v60 = vrot.slane %v3423_v0, %v5584_v59 }
0x1072   :  { %v3495_v43 = vsub.f32 %v3369_v39, %v3461_v53  ;;  %v3496_v44 = vsub.f32 %v3370_v7, %v3468_v10  ;;  %v3497_v38 = vsub.f32 %v3371_v24, %v3475_v21  ;;  %v3498_v14 = vsub.f32 %v3372_v42, %v3482_v17 }
0x1073   :  { %v3491_v33 = vsub.f32 %v3365_v29, %v3433_v56  ;;  %v3492_v20 = vsub.f32 %v3366_v37, %v3440_v34  ;;  %v3493_v12 = vsub.f32 %v3367_v63, %v3447_v40  ;;  %v3494_v47 = vsub.f32 %v3368_v50, %v3454_v60 }
0x1074   :  { %v3503_v8 = vmul.f32 %v3495_v43, %v3495_v43  ;;  %v3504_v48 = vmul.f32 %v3496_v44, %v3496_v44  ;;  %v3505_v11 = vmul.f32 %v3497_v38, %v3497_v38  ;;  %v3506_v19 = vmul.f32 %v3498_v14, %v3498_v14 }
0x1075   :  { %v3499_v55 = vmul.f32 %v3491_v33, %v3491_v33  ;;  %v3500_v28 = vmul.f32 %v3492_v20, %v3492_v20  ;;  %v3501_v26 = vmul.f32 %v3493_v12, %v3493_v12  ;;  %v3502_v6 = vmul.f32 %v3494_v47, %v3494_v47 }
0x1076   :  { %v3532_v41 = vcombine.low %v3503_v8, %v3504_v48  ;;  %v3533_v25 = vcombine.low %v3505_v11, %v3506_v19  ;;  %v3673_v42 = vsub.s32 6, %v5285_v4  ;;  %v3657_v3 = vcombine.high %v3649_v32, %v3649_v32 }
0x1077   :  { %v3515_v62 = vcombine.low %v3499_v55, %v3500_v28  ;;  %v3516_v46 = vcombine.low %v3501_v26, %v3502_v6 }
0x1078   :  { %v3540_v13 = vrot.slane %v3532_v41, %v5288_v9  ;;  %v3547_v35 = vrot.slane %v3533_v25, %v5288_v9  ;;  %v3674_v22 = vrot.slane %v5986_v30, %v3673_v42 }
0x1079   :  { %v3523_v39 = vrot.slane %v3515_v62, %v5288_v9  ;;  %v3530_v7 = vrot.slane %v3516_v46, %v5288_v9 }
0x107a   :  { %v3548_v23 = vcombine.low %v3540_v13, %v3547_v35  ;;  %v3676_v2 = vcombine.high %v3674_v22, %v3674_v22  ;;  %v3683_v61 = vrot.slane %v3674_v22, %v5288_v9 }
0x107b   :  { %v3531_v29 = vcombine.low %v3523_v39, %v3530_v7 }
0x107c   :  { %v3554_v37 = vsel %vm225_vm0, %v3548_v23, 0.0  ;;  %v3690_v16 = vrot.slane %v3676_v2, %v5288_v9  ;;  %v3691_v54 = vcombine.high %v3683_v61, %v3683_v61 }
0x107d   :  { %3555 = vadd.xlane.f32.xlu1 %v3554_v37  ;;  %v3551_v24 = vsel %vm225_vm0, %v3531_v29, 0.0 }
0x107e   :  { %3552 = vadd.xlane.f32.xlu0 %v3551_v24  ;;  %v3692_v0 = vcombine.high %v3690_v16, %v3690_v16 }
0x110a   :  { %v3556_v57 = vpop.xlane.xlu1 %3555 }
0x110b   :  { %v3558_v63 = vmul.f32 0.03125, %v3556_v57  ;;  %v3553_v50 = vpop.xlane.xlu0 %3552 }
0x110c   :  { %v3557_v36 = vmul.f32 0.03125, %v3553_v50 }
0x110d   :  { %v3560_v31 = vadd.f32 1e-05, %v3558_v63 }
0x110e   :  { %v3559_v18 = vadd.f32 1e-05, %v3557_v36 }
0x110f   :  { %4942 = vrsqrt.f32 %v3560_v31 }
0x1110   :  { %4944 = vrsqrt.f32 %v3559_v18 }
0x1119   :  { %v4943_v45 = vpop.eup %4942 }
0x111a   :  { %v4945_v53 = vpop.eup %4944  ;;  %v3599_v10 = vrot.slane %v4943_v45, %v5575_v51  ;;  %v3606_v21 = vrot.slane %v4943_v45, %v5578_v52  ;;  %v3613_v17 = vrot.slane %v4943_v45, %v5581_v58  ;;  %v3620_v56 = vrot.slane %v4943_v45, %v5584_v59 }
0x111b   :  { %v3571_v34 = vrot.slane %v4945_v53, %v5575_v51  ;;  %v3578_v40 = vrot.slane %v4945_v53, %v5578_v52  ;;  %v3585_v60 = vrot.slane %v4945_v53, %v5581_v58  ;;  %v3592_v8 = vrot.slane %v4945_v53, %v5584_v59 }
0x111c   :  { %v3633_v48 = vmul.f32 %v3599_v10, %v3495_v43  ;;  %v3634_v11 = vmul.f32 %v3606_v21, %v3496_v44  ;;  %v3635_v19 = vmul.f32 %v3613_v17, %v3497_v38  ;;  %v3636_v55 = vmul.f32 %v3620_v56, %v3498_v14 }
0x111d   :  { %v3629_v28 = vmul.f32 %v3571_v34, %v3491_v33  ;;  %v3630_v26 = vmul.f32 %v3578_v40, %v3492_v20  ;;  %v3631_v6 = vmul.f32 %v3585_v60, %v3493_v12  ;;  %v3632_v41 = vmul.f32 %v3592_v8, %v3494_v47 }
0x111e   :  { %v3667_v25 = vmul.f32 %v3649_v32, %v3633_v48  ;;  %v3668_v62 = vmul.f32 %v3657_v3, %v3634_v11  ;;  %v3669_v46 = vmul.f32 %v3656_v5, %v3635_v19  ;;  %v3670_v13 = vmul.f32 %v3658_v1, %v3636_v55 }
0x111f   :  { %v3663_v35 = vmul.f32 %v3649_v32, %v3629_v28  ;;  %v3664_v39 = vmul.f32 %v3657_v3, %v3630_v26  ;;  %v3665_v7 = vmul.f32 %v3656_v5, %v3631_v6  ;;  %v3666_v23 = vmul.f32 %v3658_v1, %v3632_v41 }
0x1120   :  { %v3701_v29 = vadd.f32 %v3683_v61, %v3667_v25  ;;  %v3702_v37 = vadd.f32 %v3691_v54, %v3668_v62  ;;  %v3703_v24 = vadd.f32 %v3690_v16, %v3669_v46  ;;  %v3704_v42 = vadd.f32 %v3692_v0, %v3670_v13 }
0x1121   :  { %v3697_v43 = vadd.f32 %v3683_v61, %v3663_v35  ;;  %v3698_v44 = vadd.f32 %v3691_v54, %v3664_v39  ;;  %v3699_v38 = vadd.f32 %v3690_v16, %v3665_v7  ;;  %v3700_v14 = vadd.f32 %v3692_v0, %v3666_v23 }
0x1122   :  { %v3730_v33 = vcombine.low %v3701_v29, %v3702_v37  ;;  %v3731_v20 = vcombine.low %v3703_v24, %v3704_v42 }
0x1123   :  { %v3713_v12 = vcombine.low %v3697_v43, %v3698_v44  ;;  %v3714_v47 = vcombine.low %v3699_v38, %v3700_v14 }
0x1124   :  { %v3738_v57 = vrot.slane %v3730_v33, %v5288_v9  ;;  %v3745_v63 = vrot.slane %v3731_v20, %v5288_v9 }
0x1125   :  { %v3721_v50 = vrot.slane %v3713_v12, %v5288_v9  ;;  %v3728_v36 = vrot.slane %v3714_v47, %v5288_v9 }
0x1126   :  { %v3746_v31 = vcombine.low %v3738_v57, %v3745_v63 }
0x1127   :  { %v3729_v27 = vcombine.low %v3721_v50, %v3728_v36 }
0x1129   :  { %4671 = vmatprep.mubr.msk.f32.mxu1 %vm225_vm0, %v3729_v27 }
0x112a   :  { %4672 = vmatmul.mubr.msk.f32.vlgmr.msra.gmra.mrb[20].mxu1 %vm225_vm0, %v3746_v31 }
0x11fd   :  { %v4673_v22 = vpop.f32.mrb[20].mxu1 }
0x11fe   :  { %v3823_v18 = vadd.f32 %v4673_v22, %v6018_v49  ;;  %v3817_v15 = vpop.f32.mrb[21].mxu1 }
0x11ff   :  { %v3818_v2 = vadd.f32 %v3817_v15, %v6018_v49 }
0x1200   :  { %v3845_v32 = vcombine.high %v3823_v18, %v3823_v18  ;;  %v3852_v5 = vrot.slane %v3823_v18, %v5288_v9 }
0x1201   :  { %v3828_v61 = vcombine.high %v3818_v2, %v3818_v2  ;;  %v3835_v16 = vrot.slane %v3818_v2, %v5288_v9 }
0x1202   :  { %v3859_v45 = vrot.slane %v3845_v32, %v5288_v9  ;;  %v3860_v3 = vcombine.high %v3852_v5, %v3852_v5  ;;  %v3874_v53 = vadd.f32 %v3852_v5, %v3701_v29 }
0x1203   :  { %v3842_v1 = vrot.slane %v3828_v61, %v5288_v9  ;;  %v3843_v54 = vcombine.high %v3835_v16, %v3835_v16  ;;  %v3870_v17 = vadd.f32 %v3835_v16, %v3697_v43 }
0x1204   :  { %v3861_v0 = vcombine.high %v3859_v45, %v3859_v45  ;;  %v3875_v10 = vadd.f32 %v3860_v3, %v3702_v37  ;;  %v3876_v34 = vadd.f32 %v3859_v45, %v3703_v24 }
0x1205   :  { %v3844_v21 = vcombine.high %v3842_v1, %v3842_v1  ;;  %v3871_v56 = vadd.f32 %v3843_v54, %v3698_v44  ;;  %v3872_v60 = vadd.f32 %v3842_v1, %v3699_v38 }
0x1206   :  { %v3877_v49 = vadd.f32 %v3861_v0, %v3704_v42  ;;  %v3903_v40 = vcombine.low %v3874_v53, %v3875_v10 }
0x1207   :  { %v3873_v8 = vadd.f32 %v3844_v21, %v3700_v14  ;;  %v3886_v48 = vcombine.low %v3870_v17, %v3871_v56 }
0x1208   :  { %v3904_v11 = vcombine.low %v3876_v34, %v3877_v49  ;;  %v3911_v55 = vrot.slane %v3903_v40, %v5288_v9 }
0x1209   :  { %v3887_v19 = vcombine.low %v3872_v60, %v3873_v8  ;;  %v3894_v26 = vrot.slane %v3886_v48, %v5288_v9 }
0x120a   :  { %v3918_v28 = vrot.slane %v3904_v11, %v5288_v9 }
0x120b   :  { %v3901_v6 = vrot.slane %v3887_v19, %v5288_v9 }
0x120c   :  { %v3919_v41 = vcombine.low %v3911_v55, %v3918_v28 }
0x120d   :  { %v3902_v25 = vcombine.low %v3894_v26, %v3901_v6 }
0x120e   :  { %v3925_v62 = vsel %vm225_vm0, %v3919_v41, 0.0 }
0x120f   :  { %3926 = vadd.xlane.f32.xlu1 %v3925_v62  ;;  %v3922_v46 = vsel %vm225_vm0, %v3902_v25, 0.0 }
0x1210   :  { %3923 = vadd.xlane.f32.xlu0 %v3922_v46 }
0x129c   :  { %v3927_v13 = vpop.xlane.xlu1 %3926 }
0x129d   :  { %v3929_v35 = vmul.f32 0.03125, %v3927_v13  ;;  %v3924_v39 = vpop.xlane.xlu0 %3923 }
0x129e   :  { %v3928_v7 = vmul.f32 0.03125, %v3924_v39 }
0x129f   :  { %v3966_v23 = vrot.slane %v3929_v35, %v5575_v51  ;;  %v3973_v29 = vrot.slane %v3929_v35, %v5578_v52  ;;  %v3980_v37 = vrot.slane %v3929_v35, %v5581_v58  ;;  %v3987_v24 = vrot.slane %v3929_v35, %v5584_v59 }
0x12a0   :  { %v3938_v42 = vrot.slane %v3928_v7, %v5575_v51  ;;  %v3945_v43 = vrot.slane %v3928_v7, %v5578_v52  ;;  %v3952_v44 = vrot.slane %v3928_v7, %v5581_v58  ;;  %v3959_v38 = vrot.slane %v3928_v7, %v5584_v59 }
0x12a1   :  { %v6089_v14 = vsub.f32 %v3874_v53, %v3966_v23  ;;  %v6091_v33 = vsub.f32 %v3875_v10, %v3973_v29  ;;  %v6093_v20 = vsub.f32 %v3876_v34, %v3980_v37  ;;  %v6095_v12 = vsub.f32 %v3877_v49, %v3987_v24 }
0x12a2   :  { %v6097_v47 = vsub.f32 %v3870_v17, %v3938_v42  ;;  %v6099_v57 = vsub.f32 %v3871_v56, %v3945_v43  ;;  %v6101_v63 = vsub.f32 %v3872_v60, %v3952_v44  ;;  %v6103_v50 = vsub.f32 %v3873_v8, %v3959_v38 }
0x12a3   :  { %v4008_v36 = vmul.f32 %v6089_v14, %v6089_v14  ;;  %v4009_v27 = vmul.f32 %v6091_v33, %v6091_v33  ;;  %v4010_v31 = vmul.f32 %v6093_v20, %v6093_v20  ;;  %v4011_v22 = vmul.f32 %v6095_v12, %v6095_v12 }
0x12a4   :  { %v4004_v18 = vmul.f32 %v6097_v47, %v6097_v47  ;;  %v4005_v15 = vmul.f32 %v6099_v57, %v6099_v57  ;;  %v4006_v2 = vmul.f32 %v6101_v63, %v6101_v63  ;;  %v4007_v32 = vmul.f32 %v6103_v50, %v6103_v50 }
0x12a5   :  { %v4037_v5 = vcombine.low %v4008_v36, %v4009_v27  ;;  %v4038_v61 = vcombine.low %v4010_v31, %v4011_v22  ;;  %v4144_v56 = vsub.s32 3, %v5285_v4  ;;  %v4178_v34 = vsub.s32 7, %v5285_v4 }
0x12a6   :  { %v4020_v16 = vcombine.low %v4004_v18, %v4005_v15  ;;  %v4021_v45 = vcombine.low %v4006_v2, %v4007_v32 }
0x12a7   :  { %v4045_v3 = vrot.slane %v4037_v5, %v5288_v9  ;;  %v4052_v1 = vrot.slane %v4038_v61, %v5288_v9  ;;  %v4145_v11 = vrot.slane %v5986_v30, %v4144_v56  ;;  %v4179_v19 = vrot.slane %v5986_v30, %v4178_v34 }
0x12a8   :  { %v4028_v54 = vrot.slane %v4020_v16, %v5288_v9  ;;  %v4035_v0 = vrot.slane %v4021_v45, %v5288_v9 }
0x12a9   :  { %v4053_v53 = vcombine.low %v4045_v3, %v4052_v1  ;;  %v4147_v28 = vcombine.high %v4145_v11, %v4145_v11  ;;  %v4181_v26 = vcombine.high %v4179_v19, %v4179_v19  ;;  %v4154_v6 = vrot.slane %v4145_v11, %v5288_v9 }
0x12aa   :  { %v4036_v10 = vcombine.low %v4028_v54, %v4035_v0  ;;  %v4188_v4 = vrot.slane %v4179_v19, %v5288_v9 }
0x12ab   :  { %v4059_v21 = vsel %vm225_vm0, %v4053_v53, 0.0  ;;  %v4161_v41 = vrot.slane %v4147_v28, %v5288_v9  ;;  %v4195_v25 = vrot.slane %v4181_v26, %v5288_v9  ;;  %v4162_v62 = vcombine.high %v4154_v6, %v4154_v6 }
0x12ac   :  { %4060 = vadd.xlane.f32.xlu1 %v4059_v21  ;;  %v4056_v17 = vsel %vm225_vm0, %v4036_v10, 0.0  ;;  %v4196_v35 = vcombine.high %v4188_v4, %v4188_v4 }
0x12ad   :  { %4057 = vadd.xlane.f32.xlu0 %v4056_v17  ;;  %v4163_v13 = vcombine.high %v4161_v41, %v4161_v41  ;;  %v4197_v39 = vcombine.high %v4195_v25, %v4195_v25 }
0x1339   :  { %v4061_v49 = vpop.xlane.xlu1 %4060 }
0x133a   :  { %v4063_v40 = vmul.f32 0.03125, %v4061_v49  ;;  %v4058_v60 = vpop.xlane.xlu0 %4057 }
0x133b   :  { %v4062_v8 = vmul.f32 0.03125, %v4058_v60 }
0x133c   :  { %v4065_v48 = vadd.f32 1e-05, %v4063_v40 }
0x133d   :  { %v4064_v55 = vadd.f32 1e-05, %v4062_v8 }
0x133e   :  { %4946 = vrsqrt.f32 %v4065_v48 }
0x133f   :  { %4948 = vrsqrt.f32 %v4064_v55 }
0x1348   :  { %v4947_v46 = vpop.eup %4946 }
0x1349   :  { %v4949_v30 = vpop.eup %4948  ;;  %v4104_v7 = vrot.slane %v4947_v46, %v5575_v51  ;;  %v4111_v23 = vrot.slane %v4947_v46, %v5578_v52  ;;  %v4118_v29 = vrot.slane %v4947_v46, %v5581_v58  ;;  %v4125_v37 = vrot.slane %v4947_v46, %v5584_v59 }
0x134a   :  { %v4076_v24 = vrot.slane %v4949_v30, %v5575_v51  ;;  %v4083_v42 = vrot.slane %v4949_v30, %v5578_v52  ;;  %v4090_v9 = vrot.slane %v4949_v30, %v5581_v58  ;;  %v4097_v43 = vrot.slane %v4949_v30, %v5584_v59 }
0x134b   :  { %v4138_v44 = vmul.f32 %v4104_v7, %v6089_v14  ;;  %v4139_v38 = vmul.f32 %v4111_v23, %v6091_v33  ;;  %v4140_v36 = vmul.f32 %v4118_v29, %v6093_v20  ;;  %v4141_v27 = vmul.f32 %v4125_v37, %v6095_v12 }
0x134c   :  { %v4134_v31 = vmul.f32 %v4076_v24, %v6097_v47  ;;  %v4135_v22 = vmul.f32 %v4083_v42, %v6099_v57  ;;  %v4136_v51 = vmul.f32 %v4090_v9, %v6101_v63  ;;  %v4137_v52 = vmul.f32 %v4097_v43, %v6103_v50 }
0x134d   :  { %v4172_v18 = vmul.f32 %v4154_v6, %v4138_v44  ;;  %v4173_v58 = vmul.f32 %v4162_v62, %v4139_v38  ;;  %v4174_v15 = vmul.f32 %v4161_v41, %v4140_v36  ;;  %v4175_v59 = vmul.f32 %v4163_v13, %v4141_v27 }
0x134e   :  { %v4168_v14 = vmul.f32 %v4154_v6, %v4134_v31  ;;  %v4169_v33 = vmul.f32 %v4162_v62, %v4135_v22  ;;  %v4170_v2 = vmul.f32 %v4161_v41, %v4136_v51  ;;  %v4171_v20 = vmul.f32 %v4163_v13, %v4137_v52 }
0x134f   :  { %v4206_v32 = vadd.f32 %v4188_v4, %v4172_v18  ;;  %v4207_v12 = vadd.f32 %v4196_v35, %v4173_v58  ;;  %v4208_v5 = vadd.f32 %v4195_v25, %v4174_v15  ;;  %v4209_v47 = vadd.f32 %v4197_v39, %v4175_v59 }
0x1350   :  { %v4202_v61 = vadd.f32 %v4188_v4, %v4168_v14  ;;  %v4203_v57 = vadd.f32 %v4196_v35, %v4169_v33  ;;  %v4204_v16 = vadd.f32 %v4195_v25, %v4170_v2  ;;  %v4205_v63 = vadd.f32 %v4197_v39, %v4171_v20 }
0x1351   :  { %4215 = vst.msk [vmem:[#allocation19 + $0x8] sm:$0x3] %vm4210_vm6, %v4206_v32  ;;  %4216 = vst.msk [vmem:[#allocation19 + $0xa] sm:$0x3] %vm4210_vm6, %v4207_v12 }
0x1352   :  { %4217 = vst.msk [vmem:[#allocation19 + $0xc] sm:$0x3] %vm4210_vm6, %v4208_v5  ;;  %4218 = vst.msk [vmem:[#allocation19 + $0xe] sm:$0x3] %vm4210_vm6, %v4209_v47 }
0x1353   :  { %4211 = vst.msk [vmem:[#allocation19] sm:$0x3] %vm4210_vm6, %v4202_v61  ;;  %4212 = vst.msk [vmem:[#allocation19 + $0x2] sm:$0x3] %vm4210_vm6, %v4203_v57 }
0x1354   :  { %4213 = vst.msk [vmem:[#allocation19 + $0x4] sm:$0x3] %vm4210_vm6, %v4204_v16  ;;  %4214 = vst.msk [vmem:[#allocation19 + $0x6] sm:$0x3] %vm4210_vm6, %v4205_v63 }
0x1355   :  { %5098 = shalt.err (!%p5095_p10)
}
0x1356   :  { %s5099_s12 = scalar_lea.hbm %s6182_s8, 256 }
0x1357   :  { %p5100_p11 = scmp.ne.s32.totalorder %s6182_s8, %s5099_s12  ;;  %p5103_p12 = scmp.lt.u32.totalorder %s5099_s12, %s6182_s8 }
0x1359   :  { %p5105_p13 = pnand %p5103_p12, %p5100_p11 }
0x135b   :  { %5108 = shalt.err (!%p5105_p13)
}
0x135c   :  { %4230 = dma.vmem_to_hbm [thread:$0]  %s4225_s30, 256, %s6182_s8, [#allocation10], %s5120_s15, %s5120_s15, %s5121_s16  }
0x135d   :  { %5117 = dma.done.wait [#allocation10], 256  }
0x135e   :  { %5118 = vsyncadd [#allocation10], 4294967040 }
0x135f   :  { %4234 = vsyncpa [#allocation9], 1 }
0x1360   :  { %4235 = vsyncpa [#allocation12], 1 }
0x1361   :  { %4236 = vsyncpa [#allocation15], 1 }
0x1362   :  { %4237 = vsyncpa [#allocation18], 1 }
0x1363   :  { %4238 = vsyncpa [#allocation10], 1 }

</bundles_post_ra>
